<compile_context>
chip_gen: v5e
topology: v5e:2x2
jax: 0.10.0
libtpu: 0.0.40
codegen_flags: <defaults>
</compile_context>

<pallas_src>
import math

import numpy as np
import jax
import jax.numpy as jnp
from jax.experimental import pallas as pl
from jax.experimental.pallas import tpu as pltpu


# ---------------------------------------------------------------------------
# Fused per-image kernel
# ---------------------------------------------------------------------------
def _conv3x3_acc(pad_ref, w_ref, oh, ow, cin, cout):
    """3x3 'same' conv read from a zero-padded VMEM scratch.

    pad_ref: (oh+2, ow+2, cin) f32 scratch holding the zero-padded activation.
    w_ref:   (9, cin, cout) bf16 resident weights, tap t = di*3 + dj.
    Returns the (oh*ow, cout) f32 convolution result (f32 accumulation).
    """
    acc = jnp.zeros((oh * ow, cout), jnp.float32)
    for dj in range(3):
        # One column-band load + one bf16 cast per kw offset, reused by all
        # three kh offsets (3 band materialisations instead of 9 windows).
        band = pad_ref[:, dj:dj + ow, :].astype(jnp.bfloat16)   # (oh+2, ow, cin)
        for di in range(3):
            xs = band[di:di + oh].reshape(oh * ow, cin)          # cheap slice
            acc = acc + jnp.dot(xs, w_ref[di * 3 + dj],
                                preferred_element_type=jnp.float32)
    return acc


def _make_block_kernel(oh, ow, cin, cout):
    n_px = oh * ow

    def kernel(x_ref, w1_ref, s1_ref, b1_ref, w2_ref, s2_ref, b2_ref,
               f_ref, e1_ref, e2_ref, o_ref, xpad_ref, h1pad_ref):
        xf = x_ref[0]                                            # (oh, ow, cin) f32

        # ---- 'same' padding of the input, entirely in VMEM ----
        xpad_ref[...] = jnp.zeros((oh + 2, ow + 2, cin), jnp.float32)
        xpad_ref[1:oh + 1, 1:ow + 1, :] = xf

        # ---- conv1 + BN1 (eval, folded) + ReLU ----
        y1 = _conv3x3_acc(xpad_ref, w1_ref, oh, ow, cin, cout)
        y1 = jnp.maximum(y1 * s1_ref[...] + b1_ref[...], 0.0)    # (n_px, cout)

        # ---- h1 never leaves VMEM: pad it for conv2 ----
        h1pad_ref[...] = jnp.zeros((oh + 2, ow + 2, cout), jnp.float32)
        h1pad_ref[1:oh + 1, 1:ow + 1, :] = y1.reshape(oh, ow, cout)

        # ---- conv2 + BN2 ----
        y2 = _conv3x3_acc(h1pad_ref, w2_ref, oh, ow, cout, cout)
        y2 = y2 * s2_ref[...] + b2_ref[...]                      # (n_px, cout) f32

        # ---- GramSchmidtTransform + Attention:
        #      compressed = (constant_filter * out).sum(spatial) ----
        comp = jnp.sum(f_ref[...] * y2, axis=0, keepdims=True)   # (1, cout)

        # ---- excitation MLP: Linear -> ReLU -> Linear -> Sigmoid (no bias) ----
        v = jnp.broadcast_to(comp, (8, cout))                    # pad M=1 to a sublane
        hid = jnp.maximum(
            jnp.dot(v, e1_ref[...], preferred_element_type=jnp.float32), 0.0)
        z = jnp.dot(hid, e2_ref[...], preferred_element_type=jnp.float32)
        excite = 1.0 / (1.0 + jnp.exp(-z[0:1, :]))               # sigmoid, (1, cout)

        # ---- channel re-scale + identity residual + final ReLU ----
        final = jnp.maximum(y2 * excite + xf.reshape(n_px, cin), 0.0)
        o_ref[0] = final.reshape(oh, ow, cout).astype(o_ref.dtype)

    return kernel


def basic_block_forward(params, x_nchw):
    """BasicBlock.forward (stride=1, downsample=None) on an NCHW f32 input."""
    x = jnp.transpose(x_nchw, (0, 2, 3, 1)).astype(jnp.float32)   # NHWC
    n, h, w, cin = x.shape
    kh, kw, _, cout = params['conv1'].shape
    assert (kh, kw) == (3, 3) and cin == cout, "identity residual / 3x3 only"
    fh, fw, _ = params['ortho_filter'].shape
    assert (fh, fw) == (h, w), "ortho filter must match the feature-map size"
    hid_p = params['exc_w1'].shape[1]

    # Kernel-ready layouts (weight-sized reshapes/casts only, no activation prep).
    w1k = params['conv1'].reshape(9, cin, cout).astype(jnp.bfloat16)
    w2k = params['conv2'].reshape(9, cout, cout).astype(jnp.bfloat16)
    s1, b1 = [p.reshape(1, cout).astype(jnp.float32) for p in params['bn1']]
    s2, b2 = [p.reshape(1, cout).astype(jnp.float32) for p in params['bn2']]
    f = params['ortho_filter'].reshape(h * w, cout).astype(jnp.float32)

    out = pl.pallas_call(
        _make_block_kernel(h, w, cin, cout),
        grid=(n,),                                  # one image / step, batch-parallel
        in_specs=[
            pl.BlockSpec((1, h, w, cin), lambda i: (i, 0, 0, 0)),   # x / residual
            pl.BlockSpec((9, cin, cout), lambda i: (0, 0, 0)),      # conv1 W (resident)
            pl.BlockSpec((1, cout), lambda i: (0, 0)),              # bn1 scale
            pl.BlockSpec((1, cout), lambda i: (0, 0)),              # bn1 bias
            pl.BlockSpec((9, cout, cout), lambda i: (0, 0, 0)),     # conv2 W (resident)
            pl.BlockSpec((1, cout), lambda i: (0, 0)),              # bn2 scale
            pl.BlockSpec((1, cout), lambda i: (0, 0)),              # bn2 bias
            pl.BlockSpec((h * w, cout), lambda i: (0, 0)),          # ortho filter
            pl.BlockSpec((cout, hid_p), lambda i: (0, 0)),          # excitation W1
            pl.BlockSpec((hid_p, cout), lambda i: (0, 0)),          # excitation W2
        ],
        out_specs=pl.BlockSpec((1, h, w, cout), lambda i: (i, 0, 0, 0)),
        out_shape=jax.ShapeDtypeStruct((n, h, w, cout), jnp.float32),
        scratch_shapes=[pltpu.VMEM((h + 2, w + 2, cin), jnp.float32),
                        pltpu.VMEM((h + 2, w + 2, cout), jnp.float32)],
        compiler_params=pltpu.CompilerParams(
            dimension_semantics=("parallel",),
            vmem_limit_bytes=48 * 1024 * 1024),     # headroom for large feature maps
    )(x, w1k, s1, b1, w2k, s2, b2, f, params['exc_w1'], params['exc_w2'])

    return jnp.transpose(out, (0, 3, 1, 2))                         # back to NCHW


# ---------------------------------------------------------------------------
# Pure-JAX f32 reference (same math, used only for the numeric check)
# ---------------------------------------------------------------------------
def reference_forward(params, x_nchw):
    x = jnp.transpose(x_nchw, (0, 2, 3, 1)).astype(jnp.float32)
    conv = lambda v, w: jax.lax.conv_general_dilated(
        v, w, window_strides=(1, 1), padding='SAME',
        dimension_numbers=('NHWC', 'HWIO', 'NHWC'),
        precision=jax.lax.Precision.HIGHEST)
    s1, b1 = params['bn1']
    s2, b2 = params['bn2']
    h1 = jnp.maximum(conv(x, params['conv1']) * s1 + b1, 0.0)
    y2 = conv(h1, params['conv2']) * s2 + b2
    comp = jnp.sum(params['ortho_filter'][None] * y2, axis=(1, 2))   # (n, c)
    hid = jnp.maximum(comp @ params['exc_w1'], 0.0)
    exc = jax.nn.sigmoid(hid @ params['exc_w2'])
    out = jnp.maximum(y2 * exc[:, None, None, :] + x, 0.0)
    return jnp.transpose(out, (0, 3, 1, 2))


# ---------------------------------------------------------------------------
# Parameter construction (init-time host code, mirrors the PyTorch module)
# ---------------------------------------------------------------------------
def _gram_schmidt_np(mat):
    out = []
    for x in mat:
        x = np.array(x, dtype=np.float64)
        for y in out:
            x = x - (np.dot(y, x) / np.dot(y, y)) * y
        x = x / np.linalg.norm(x)
        out.append(x)
    return np.stack(out)


def _orthogonal_filter(key, c, h, w):
    """Mirrors initialize_orthogonal_filters(c, h, w) -> (c, h, w)."""
    if h * w < c:
        assert c % (h * w) == 0
        blocks = []
        for i in range(c // (h * w)):
            r = np.asarray(jax.random.uniform(jax.random.fold_in(key, i),
                                              (h * w, h * w), jnp.float32))
            blocks.append(_gram_schmidt_np(r))
        filt = np.concatenate(blocks, axis=0)
    else:
        r = np.asarray(jax.random.uniform(key, (c, h * w), jnp.float32))
        filt = _gram_schmidt_np(r)
    return jnp.asarray(filt.reshape(c, h, w), dtype=jnp.float32)


def _bn_scale_bias(c, eps=1e-5):
    # Eval-mode BatchNorm2d with freshly initialised affine + running stats.
    gamma = jnp.ones((c,), jnp.float32)
    beta = jnp.zeros((c,), jnp.float32)
    mean = jnp.zeros((c,), jnp.float32)
    var = jnp.ones((c,), jnp.float32)
    scale = gamma / jnp.sqrt(var + eps)
    return scale, beta - mean * scale


def _conv3x3_init(key, cin, cout):
    bound = 1.0 / math.sqrt(3 * 3 * cin)
    return jax.random.uniform(key, (3, 3, cin, cout), jnp.float32, -bound, bound)


def init_basic_block(key, inplanes, planes, height):
    """BasicBlock(inplanes, planes, height, stride=1, downsample=None)."""
    assert inplanes == planes, "identity residual requires inplanes == planes"
    k1, k2, k3, k4, k5 = jax.random.split(key, 5)
    hidden = int(round(planes / 16))
    assert hidden >= 1, "excitation needs round(planes/16) >= 1"
    hidden_p = max(8, ((hidden + 7) // 8) * 8)   # pad hidden to a sublane multiple;
    # the extra W1 columns / W2 rows are zero so the result is exact.
    b1 = 1.0 / math.sqrt(planes)
    w1 = jax.random.uniform(k3, (planes, hidden), jnp.float32, -b1, b1)
    b2 = 1.0 / math.sqrt(hidden)
    w2 = jax.random.uniform(k4, (hidden, planes), jnp.float32, -b2, b2)
    filt = _orthogonal_filter(k5, planes, height, height)        # (c, h, w)
    return {
        'conv1': _conv3x3_init(k1, inplanes, planes),
        'bn1': _bn_scale_bias(planes),
        'conv2': _conv3x3_init(k2, planes, planes),
        'bn2': _bn_scale_bias(planes),
        'exc_w1': jnp.zeros((planes, hidden_p),
                            jnp.float32).at[:, :hidden].set(w1),
        'exc_w2': jnp.zeros((hidden_p, planes),
                            jnp.float32).at[:hidden, :].set(w2),
        'ortho_filter': jnp.transpose(filt, (1, 2, 0)),          # (h, w, c)
    }


# ---------------------------------------------------------------------------
if __name__ == "__main__":
    key = jax.random.PRNGKey(0)
    kp, kx = jax.random.split(key)

    # Small but valid config: excitation needs round(planes / 16) >= 1 and the
    # GramSchmidt filter requires height == feature-map size.  batch=4 gives
    # each v7x TensorCore at least two grid steps to pipeline over.
    batch, planes, height = 4, 64, 16
    params = init_basic_block(kp, planes, planes, height)
    x = jax.random.normal(kx, (batch, planes, height, height), jnp.float32)

    fwd = jax.jit(basic_block_forward)
    y = jax.block_until_ready(fwd(params, x))

    assert y.shape == (batch, planes, height, height), y.shape
    assert bool(jnp.all(jnp.isfinite(y)))
    assert bool(jnp.all(y >= 0.0))                 # final ReLU

    # Numerical check against a pure-JAX f32 reference (bf16 MXU tolerance).
    y_ref = jax.block_until_ready(jax.jit(reference_forward)(params, x))
    max_err = float(jnp.max(jnp.abs(y - y_ref)))
    assert max_err < 0.1, f"max abs error vs reference: {max_err}"

    print("KERNEL_OK")
</pallas_src>

<mosaic_0001>
module attributes {stable_mosaic.version = 11 : i64} {
  func.func @kernel(%arg0: i32, %arg1: memref<1x16x16x64xf32, #tpu.memory_space<vmem>>, %arg2: memref<9x64x64xbf16, #tpu.memory_space<vmem>>, %arg3: memref<1x64xf32, #tpu.memory_space<vmem>>, %arg4: memref<1x64xf32, #tpu.memory_space<vmem>>, %arg5: memref<9x64x64xbf16, #tpu.memory_space<vmem>>, %arg6: memref<1x64xf32, #tpu.memory_space<vmem>>, %arg7: memref<1x64xf32, #tpu.memory_space<vmem>>, %arg8: memref<256x64xf32, #tpu.memory_space<vmem>>, %arg9: memref<64x8xf32, #tpu.memory_space<vmem>>, %arg10: memref<8x64xf32, #tpu.memory_space<vmem>>, %arg11: memref<1x16x16x64xf32, #tpu.memory_space<vmem>>, %arg12: memref<18x18x64xf32, #tpu.memory_space<vmem>>, %arg13: memref<18x18x64xf32, #tpu.memory_space<vmem>>) attributes {dimension_semantics = [#tpu.dimension_semantics<parallel>], iteration_bounds = array<i64: 4>, scalar_prefetch = 0 : i64, scratch_operands = 2 : i64, tpu.core_type = #tpu.core_type<tc>, window_params = [{transform_indices = @transform_0, window_bounds = array<i64: 1, 16, 16, 64>}, {pipeline_mode = #tpu.pipeline_mode<synchronous>, transform_indices = @transform_1, window_bounds = array<i64: 9, 64, 64>}, {pipeline_mode = #tpu.pipeline_mode<synchronous>, transform_indices = @transform_2, window_bounds = array<i64: 1, 64>}, {pipeline_mode = #tpu.pipeline_mode<synchronous>, transform_indices = @transform_3, window_bounds = array<i64: 1, 64>}, {pipeline_mode = #tpu.pipeline_mode<synchronous>, transform_indices = @transform_4, window_bounds = array<i64: 9, 64, 64>}, {pipeline_mode = #tpu.pipeline_mode<synchronous>, transform_indices = @transform_5, window_bounds = array<i64: 1, 64>}, {pipeline_mode = #tpu.pipeline_mode<synchronous>, transform_indices = @transform_6, window_bounds = array<i64: 1, 64>}, {pipeline_mode = #tpu.pipeline_mode<synchronous>, transform_indices = @transform_7, window_bounds = array<i64: 256, 64>}, {pipeline_mode = #tpu.pipeline_mode<synchronous>, transform_indices = @transform_8, window_bounds = array<i64: 64, 8>}, {pipeline_mode = #tpu.pipeline_mode<synchronous>, transform_indices = @transform_9, window_bounds = array<i64: 8, 64>}, {transform_indices = @transform_10, window_bounds = array<i64: 1, 16, 16, 64>}]} {
    %c0 = arith.constant 0 : index
    %c0_0 = arith.constant 0 : index
    %c0_1 = arith.constant 0 : index
    %c0_2 = arith.constant 0 : index
    %0 = vector.load %arg1[%c0, %c0_0, %c0_1, %c0_2] : memref<1x16x16x64xf32, #tpu.memory_space<vmem>>, vector<1x16x16x64xf32>
    %1 = vector.shape_cast %0 : vector<1x16x16x64xf32> to vector<16x16x64xf32>
    %cst = arith.constant 0.000000e+00 : f32
    %2 = vector.broadcast %cst : f32 to vector<18x18x64xf32>
    %c0_3 = arith.constant 0 : index
    %c0_4 = arith.constant 0 : index
    %c0_5 = arith.constant 0 : index
    %3 = vector.load %arg12[%c0_3, %c0_4, %c0_5] : memref<18x18x64xf32, #tpu.memory_space<vmem>>, vector<18x18x64xf32>
    tpu.vector_store %arg12[%c0_3, %c0_4, %c0_5], %2 {strides = array<i32>} : memref<18x18x64xf32, #tpu.memory_space<vmem>>, vector<18x18x64xf32>,
    %c1 = arith.constant 1 : index
    %c1_6 = arith.constant 1 : index
    %c0_7 = arith.constant 0 : index
    %4 = vector.load %arg12[%c1, %c1_6, %c0_7] : memref<18x18x64xf32, #tpu.memory_space<vmem>>, vector<16x16x64xf32>
    tpu.vector_store %arg12[%c1, %c1_6, %c0_7], %1 {strides = array<i32>} : memref<18x18x64xf32, #tpu.memory_space<vmem>>, vector<16x16x64xf32>,
    %cst_8 = arith.constant 0.000000e+00 : f32
    %5 = vector.broadcast %cst_8 : f32 to vector<256x64xf32>
    %c0_9 = arith.constant 0 : index
    %c0_10 = arith.constant 0 : index
    %c0_11 = arith.constant 0 : index
    %6 = vector.load %arg12[%c0_9, %c0_10, %c0_11] : memref<18x18x64xf32, #tpu.memory_space<vmem>>, vector<18x16x64xf32>
    %7 = arith.truncf %6 : vector<18x16x64xf32> to vector<18x16x64xbf16>
    %8 = vector.extract_strided_slice %7 {offsets = [0, 0, 0], sizes = [16, 16, 64], strides = [1, 1, 1]} : vector<18x16x64xbf16> to vector<16x16x64xbf16>
    %9 = vector.shape_cast %8 : vector<16x16x64xbf16> to vector<256x64xbf16>
    %c0_12 = arith.constant 0 : index
    %c0_13 = arith.constant 0 : index
    %c0_14 = arith.constant 0 : index
    %10 = vector.load %arg2[%c0_12, %c0_13, %c0_14] : memref<9x64x64xbf16, #tpu.memory_space<vmem>>, vector<1x64x64xbf16>
    %11 = vector.shape_cast %10 : vector<1x64x64xbf16> to vector<64x64xbf16>
    %cst_15 = arith.constant dense<0.000000e+00> : vector<256x64xf32>
    %12 = tpu.matmul %9, %11, %cst_15 {dimension_numbers = #tpu.dot_dimension_numbers<[1], [0], [0], [1], [0, 0, 1, 1], [], []>} : vector<256x64xbf16>, vector<64x64xbf16>, vector<256x64xf32> -> vector<256x64xf32>
    %13 = arith.addf %5, %12 : vector<256x64xf32>
    %14 = vector.extract_strided_slice %7 {offsets = [1, 0, 0], sizes = [16, 16, 64], strides = [1, 1, 1]} : vector<18x16x64xbf16> to vector<16x16x64xbf16>
    %15 = vector.shape_cast %14 : vector<16x16x64xbf16> to vector<256x64xbf16>
    %c3 = arith.constant 3 : index
    %c0_16 = arith.constant 0 : index
    %c0_17 = arith.constant 0 : index
    %16 = vector.load %arg2[%c3, %c0_16, %c0_17] : memref<9x64x64xbf16, #tpu.memory_space<vmem>>, vector<1x64x64xbf16>
    %17 = vector.shape_cast %16 : vector<1x64x64xbf16> to vector<64x64xbf16>
    %cst_18 = arith.constant dense<0.000000e+00> : vector<256x64xf32>
    %18 = tpu.matmul %15, %17, %cst_18 {dimension_numbers = #tpu.dot_dimension_numbers<[1], [0], [0], [1], [0, 0, 1, 1], [], []>} : vector<256x64xbf16>, vector<64x64xbf16>, vector<256x64xf32> -> vector<256x64xf32>
    %19 = arith.addf %13, %18 : vector<256x64xf32>
    %20 = vector.extract_strided_slice %7 {offsets = [2, 0, 0], sizes = [16, 16, 64], strides = [1, 1, 1]} : vector<18x16x64xbf16> to vector<16x16x64xbf16>
    %21 = vector.shape_cast %20 : vector<16x16x64xbf16> to vector<256x64xbf16>
    %c6 = arith.constant 6 : index
    %c0_19 = arith.constant 0 : index
    %c0_20 = arith.constant 0 : index
    %22 = vector.load %arg2[%c6, %c0_19, %c0_20] : memref<9x64x64xbf16, #tpu.memory_space<vmem>>, vector<1x64x64xbf16>
    %23 = vector.shape_cast %22 : vector<1x64x64xbf16> to vector<64x64xbf16>
    %cst_21 = arith.constant dense<0.000000e+00> : vector<256x64xf32>
    %24 = tpu.matmul %21, %23, %cst_21 {dimension_numbers = #tpu.dot_dimension_numbers<[1], [0], [0], [1], [0, 0, 1, 1], [], []>} : vector<256x64xbf16>, vector<64x64xbf16>, vector<256x64xf32> -> vector<256x64xf32>
    %25 = arith.addf %19, %24 : vector<256x64xf32>
    %c0_22 = arith.constant 0 : index
    %c1_23 = arith.constant 1 : index
    %c0_24 = arith.constant 0 : index
    %26 = vector.load %arg12[%c0_22, %c1_23, %c0_24] : memref<18x18x64xf32, #tpu.memory_space<vmem>>, vector<18x16x64xf32>
    %27 = arith.truncf %26 : vector<18x16x64xf32> to vector<18x16x64xbf16>
    %28 = vector.extract_strided_slice %27 {offsets = [0, 0, 0], sizes = [16, 16, 64], strides = [1, 1, 1]} : vector<18x16x64xbf16> to vector<16x16x64xbf16>
    %29 = vector.shape_cast %28 : vector<16x16x64xbf16> to vector<256x64xbf16>
    %c1_25 = arith.constant 1 : index
    %c0_26 = arith.constant 0 : index
    %c0_27 = arith.constant 0 : index
    %30 = vector.load %arg2[%c1_25, %c0_26, %c0_27] : memref<9x64x64xbf16, #tpu.memory_space<vmem>>, vector<1x64x64xbf16>
    %31 = vector.shape_cast %30 : vector<1x64x64xbf16> to vector<64x64xbf16>
    %cst_28 = arith.constant dense<0.000000e+00> : vector<256x64xf32>
    %32 = tpu.matmul %29, %31, %cst_28 {dimension_numbers = #tpu.dot_dimension_numbers<[1], [0], [0], [1], [0, 0, 1, 1], [], []>} : vector<256x64xbf16>, vector<64x64xbf16>, vector<256x64xf32> -> vector<256x64xf32>
    %33 = arith.addf %25, %32 : vector<256x64xf32>
    %34 = vector.extract_strided_slice %27 {offsets = [1, 0, 0], sizes = [16, 16, 64], strides = [1, 1, 1]} : vector<18x16x64xbf16> to vector<16x16x64xbf16>
    %35 = vector.shape_cast %34 : vector<16x16x64xbf16> to vector<256x64xbf16>
    %c4 = arith.constant 4 : index
    %c0_29 = arith.constant 0 : index
    %c0_30 = arith.constant 0 : index
    %36 = vector.load %arg2[%c4, %c0_29, %c0_30] : memref<9x64x64xbf16, #tpu.memory_space<vmem>>, vector<1x64x64xbf16>
    %37 = vector.shape_cast %36 : vector<1x64x64xbf16> to vector<64x64xbf16>
    %cst_31 = arith.constant dense<0.000000e+00> : vector<256x64xf32>
    %38 = tpu.matmul %35, %37, %cst_31 {dimension_numbers = #tpu.dot_dimension_numbers<[1], [0], [0], [1], [0, 0, 1, 1], [], []>} : vector<256x64xbf16>, vector<64x64xbf16>, vector<256x64xf32> -> vector<256x64xf32>
    %39 = arith.addf %33, %38 : vector<256x64xf32>
    %40 = vector.extract_strided_slice %27 {offsets = [2, 0, 0], sizes = [16, 16, 64], strides = [1, 1, 1]} : vector<18x16x64xbf16> to vector<16x16x64xbf16>
    %41 = vector.shape_cast %40 : vector<16x16x64xbf16> to vector<256x64xbf16>
    %c7 = arith.constant 7 : index
    %c0_32 = arith.constant 0 : index
    %c0_33 = arith.constant 0 : index
    %42 = vector.load %arg2[%c7, %c0_32, %c0_33] : memref<9x64x64xbf16, #tpu.memory_space<vmem>>, vector<1x64x64xbf16>
    %43 = vector.shape_cast %42 : vector<1x64x64xbf16> to vector<64x64xbf16>
    %cst_34 = arith.constant dense<0.000000e+00> : vector<256x64xf32>
    %44 = tpu.matmul %41, %43, %cst_34 {dimension_numbers = #tpu.dot_dimension_numbers<[1], [0], [0], [1], [0, 0, 1, 1], [], []>} : vector<256x64xbf16>, vector<64x64xbf16>, vector<256x64xf32> -> vector<256x64xf32>
    %45 = arith.addf %39, %44 : vector<256x64xf32>
    %c0_35 = arith.constant 0 : index
    %c2 = arith.constant 2 : index
    %c0_36 = arith.constant 0 : index
    %46 = vector.load %arg12[%c0_35, %c2, %c0_36] : memref<18x18x64xf32, #tpu.memory_space<vmem>>, vector<18x16x64xf32>
    %47 = arith.truncf %46 : vector<18x16x64xf32> to vector<18x16x64xbf16>
    %48 = vector.extract_strided_slice %47 {offsets = [0, 0, 0], sizes = [16, 16, 64], strides = [1, 1, 1]} : vector<18x16x64xbf16> to vector<16x16x64xbf16>
    %49 = vector.shape_cast %48 : vector<16x16x64xbf16> to vector<256x64xbf16>
    %c2_37 = arith.constant 2 : index
    %c0_38 = arith.constant 0 : index
    %c0_39 = arith.constant 0 : index
    %50 = vector.load %arg2[%c2_37, %c0_38, %c0_39] : memref<9x64x64xbf16, #tpu.memory_space<vmem>>, vector<1x64x64xbf16>
    %51 = vector.shape_cast %50 : vector<1x64x64xbf16> to vector<64x64xbf16>
    %cst_40 = arith.constant dense<0.000000e+00> : vector<256x64xf32>
    %52 = tpu.matmul %49, %51, %cst_40 {dimension_numbers = #tpu.dot_dimension_numbers<[1], [0], [0], [1], [0, 0, 1, 1], [], []>} : vector<256x64xbf16>, vector<64x64xbf16>, vector<256x64xf32> -> vector<256x64xf32>
    %53 = arith.addf %45, %52 : vector<256x64xf32>
    %54 = vector.extract_strided_slice %47 {offsets = [1, 0, 0], sizes = [16, 16, 64], strides = [1, 1, 1]} : vector<18x16x64xbf16> to vector<16x16x64xbf16>
    %55 = vector.shape_cast %54 : vector<16x16x64xbf16> to vector<256x64xbf16>
    %c5 = arith.constant 5 : index
    %c0_41 = arith.constant 0 : index
    %c0_42 = arith.constant 0 : index
    %56 = vector.load %arg2[%c5, %c0_41, %c0_42] : memref<9x64x64xbf16, #tpu.memory_space<vmem>>, vector<1x64x64xbf16>
    %57 = vector.shape_cast %56 : vector<1x64x64xbf16> to vector<64x64xbf16>
    %cst_43 = arith.constant dense<0.000000e+00> : vector<256x64xf32>
    %58 = tpu.matmul %55, %57, %cst_43 {dimension_numbers = #tpu.dot_dimension_numbers<[1], [0], [0], [1], [0, 0, 1, 1], [], []>} : vector<256x64xbf16>, vector<64x64xbf16>, vector<256x64xf32> -> vector<256x64xf32>
    %59 = arith.addf %53, %58 : vector<256x64xf32>
    %60 = vector.extract_strided_slice %47 {offsets = [2, 0, 0], sizes = [16, 16, 64], strides = [1, 1, 1]} : vector<18x16x64xbf16> to vector<16x16x64xbf16>
    %61 = vector.shape_cast %60 : vector<16x16x64xbf16> to vector<256x64xbf16>
    %c8 = arith.constant 8 : index
    %c0_44 = arith.constant 0 : index
    %c0_45 = arith.constant 0 : index
    %62 = vector.load %arg2[%c8, %c0_44, %c0_45] : memref<9x64x64xbf16, #tpu.memory_space<vmem>>, vector<1x64x64xbf16>
    %63 = vector.shape_cast %62 : vector<1x64x64xbf16> to vector<64x64xbf16>
    %cst_46 = arith.constant dense<0.000000e+00> : vector<256x64xf32>
    %64 = tpu.matmul %61, %63, %cst_46 {dimension_numbers = #tpu.dot_dimension_numbers<[1], [0], [0], [1], [0, 0, 1, 1], [], []>} : vector<256x64xbf16>, vector<64x64xbf16>, vector<256x64xf32> -> vector<256x64xf32>
    %65 = arith.addf %59, %64 : vector<256x64xf32>
    %c0_47 = arith.constant 0 : index
    %c0_48 = arith.constant 0 : index
    %66 = vector.load %arg3[%c0_47, %c0_48] : memref<1x64xf32, #tpu.memory_space<vmem>>, vector<1x64xf32>
    %67 = vector.broadcast %66 : vector<1x64xf32> to vector<256x64xf32>
    %68 = arith.mulf %65, %67 : vector<256x64xf32>
    %c0_49 = arith.constant 0 : index
    %c0_50 = arith.constant 0 : index
    %69 = vector.load %arg4[%c0_49, %c0_50] : memref<1x64xf32, #tpu.memory_space<vmem>>, vector<1x64xf32>
    %70 = vector.broadcast %69 : vector<1x64xf32> to vector<256x64xf32>
    %71 = arith.addf %68, %70 : vector<256x64xf32>
    %cst_51 = arith.constant 0.000000e+00 : f32
    %72 = vector.broadcast %cst_51 : f32 to vector<256x64xf32>
    %73 = arith.maximumf %71, %72 : vector<256x64xf32>
    %cst_52 = arith.constant 0.000000e+00 : f32
    %74 = vector.broadcast %cst_52 : f32 to vector<18x18x64xf32>
    %c0_53 = arith.constant 0 : index
    %c0_54 = arith.constant 0 : index
    %c0_55 = arith.constant 0 : index
    %75 = vector.load %arg13[%c0_53, %c0_54, %c0_55] : memref<18x18x64xf32, #tpu.memory_space<vmem>>, vector<18x18x64xf32>
    tpu.vector_store %arg13[%c0_53, %c0_54, %c0_55], %74 {strides = array<i32>} : memref<18x18x64xf32, #tpu.memory_space<vmem>>, vector<18x18x64xf32>,
    %76 = vector.shape_cast %73 : vector<256x64xf32> to vector<16x16x64xf32>
    %c1_56 = arith.constant 1 : index
    %c1_57 = arith.constant 1 : index
    %c0_58 = arith.constant 0 : index
    %77 = vector.load %arg13[%c1_56, %c1_57, %c0_58] : memref<18x18x64xf32, #tpu.memory_space<vmem>>, vector<16x16x64xf32>
    tpu.vector_store %arg13[%c1_56, %c1_57, %c0_58], %76 {strides = array<i32>} : memref<18x18x64xf32, #tpu.memory_space<vmem>>, vector<16x16x64xf32>,
    %cst_59 = arith.constant 0.000000e+00 : f32
    %78 = vector.broadcast %cst_59 : f32 to vector<256x64xf32>
    %c0_60 = arith.constant 0 : index
    %c0_61 = arith.constant 0 : index
    %c0_62 = arith.constant 0 : index
    %79 = vector.load %arg13[%c0_60, %c0_61, %c0_62] : memref<18x18x64xf32, #tpu.memory_space<vmem>>, vector<18x16x64xf32>
    %80 = arith.truncf %79 : vector<18x16x64xf32> to vector<18x16x64xbf16>
    %81 = vector.extract_strided_slice %80 {offsets = [0, 0, 0], sizes = [16, 16, 64], strides = [1, 1, 1]} : vector<18x16x64xbf16> to vector<16x16x64xbf16>
    %82 = vector.shape_cast %81 : vector<16x16x64xbf16> to vector<256x64xbf16>
    %c0_63 = arith.constant 0 : index
    %c0_64 = arith.constant 0 : index
    %c0_65 = arith.constant 0 : index
    %83 = vector.load %arg5[%c0_63, %c0_64, %c0_65] : memref<9x64x64xbf16, #tpu.memory_space<vmem>>, vector<1x64x64xbf16>
    %84 = vector.shape_cast %83 : vector<1x64x64xbf16> to vector<64x64xbf16>
    %cst_66 = arith.constant dense<0.000000e+00> : vector<256x64xf32>
    %85 = tpu.matmul %82, %84, %cst_66 {dimension_numbers = #tpu.dot_dimension_numbers<[1], [0], [0], [1], [0, 0, 1, 1], [], []>} : vector<256x64xbf16>, vector<64x64xbf16>, vector<256x64xf32> -> vector<256x64xf32>
    %86 = arith.addf %78, %85 : vector<256x64xf32>
    %87 = vector.extract_strided_slice %80 {offsets = [1, 0, 0], sizes = [16, 16, 64], strides = [1, 1, 1]} : vector<18x16x64xbf16> to vector<16x16x64xbf16>
    %88 = vector.shape_cast %87 : vector<16x16x64xbf16> to vector<256x64xbf16>
    %c3_67 = arith.constant 3 : index
    %c0_68 = arith.constant 0 : index
    %c0_69 = arith.constant 0 : index
    %89 = vector.load %arg5[%c3_67, %c0_68, %c0_69] : memref<9x64x64xbf16, #tpu.memory_space<vmem>>, vector<1x64x64xbf16>
    %90 = vector.shape_cast %89 : vector<1x64x64xbf16> to vector<64x64xbf16>
    %cst_70 = arith.constant dense<0.000000e+00> : vector<256x64xf32>
    %91 = tpu.matmul %88, %90, %cst_70 {dimension_numbers = #tpu.dot_dimension_numbers<[1], [0], [0], [1], [0, 0, 1, 1], [], []>} : vector<256x64xbf16>, vector<64x64xbf16>, vector<256x64xf32> -> vector<256x64xf32>
    %92 = arith.addf %86, %91 : vector<256x64xf32>
    %93 = vector.extract_strided_slice %80 {offsets = [2, 0, 0], sizes = [16, 16, 64], strides = [1, 1, 1]} : vector<18x16x64xbf16> to vector<16x16x64xbf16>
    %94 = vector.shape_cast %93 : vector<16x16x64xbf16> to vector<256x64xbf16>
    %c6_71 = arith.constant 6 : index
    %c0_72 = arith.constant 0 : index
    %c0_73 = arith.constant 0 : index
    %95 = vector.load %arg5[%c6_71, %c0_72, %c0_73] : memref<9x64x64xbf16, #tpu.memory_space<vmem>>, vector<1x64x64xbf16>
    %96 = vector.shape_cast %95 : vector<1x64x64xbf16> to vector<64x64xbf16>
    %cst_74 = arith.constant dense<0.000000e+00> : vector<256x64xf32>
    %97 = tpu.matmul %94, %96, %cst_74 {dimension_numbers = #tpu.dot_dimension_numbers<[1], [0], [0], [1], [0, 0, 1, 1], [], []>} : vector<256x64xbf16>, vector<64x64xbf16>, vector<256x64xf32> -> vector<256x64xf32>
    %98 = arith.addf %92, %97 : vector<256x64xf32>
    %c0_75 = arith.constant 0 : index
    %c1_76 = arith.constant 1 : index
    %c0_77 = arith.constant 0 : index
    %99 = vector.load %arg13[%c0_75, %c1_76, %c0_77] : memref<18x18x64xf32, #tpu.memory_space<vmem>>, vector<18x16x64xf32>
    %100 = arith.truncf %99 : vector<18x16x64xf32> to vector<18x16x64xbf16>
    %101 = vector.extract_strided_slice %100 {offsets = [0, 0, 0], sizes = [16, 16, 64], strides = [1, 1, 1]} : vector<18x16x64xbf16> to vector<16x16x64xbf16>
    %102 = vector.shape_cast %101 : vector<16x16x64xbf16> to vector<256x64xbf16>
    %c1_78 = arith.constant 1 : index
    %c0_79 = arith.constant 0 : index
    %c0_80 = arith.constant 0 : index
    %103 = vector.load %arg5[%c1_78, %c0_79, %c0_80] : memref<9x64x64xbf16, #tpu.memory_space<vmem>>, vector<1x64x64xbf16>
    %104 = vector.shape_cast %103 : vector<1x64x64xbf16> to vector<64x64xbf16>
    %cst_81 = arith.constant dense<0.000000e+00> : vector<256x64xf32>
    %105 = tpu.matmul %102, %104, %cst_81 {dimension_numbers = #tpu.dot_dimension_numbers<[1], [0], [0], [1], [0, 0, 1, 1], [], []>} : vector<256x64xbf16>, vector<64x64xbf16>, vector<256x64xf32> -> vector<256x64xf32>
    %106 = arith.addf %98, %105 : vector<256x64xf32>
    %107 = vector.extract_strided_slice %100 {offsets = [1, 0, 0], sizes = [16, 16, 64], strides = [1, 1, 1]} : vector<18x16x64xbf16> to vector<16x16x64xbf16>
    %108 = vector.shape_cast %107 : vector<16x16x64xbf16> to vector<256x64xbf16>
    %c4_82 = arith.constant 4 : index
    %c0_83 = arith.constant 0 : index
    %c0_84 = arith.constant 0 : index
    %109 = vector.load %arg5[%c4_82, %c0_83, %c0_84] : memref<9x64x64xbf16, #tpu.memory_space<vmem>>, vector<1x64x64xbf16>
    %110 = vector.shape_cast %109 : vector<1x64x64xbf16> to vector<64x64xbf16>
    %cst_85 = arith.constant dense<0.000000e+00> : vector<256x64xf32>
    %111 = tpu.matmul %108, %110, %cst_85 {dimension_numbers = #tpu.dot_dimension_numbers<[1], [0], [0], [1], [0, 0, 1, 1], [], []>} : vector<256x64xbf16>, vector<64x64xbf16>, vector<256x64xf32> -> vector<256x64xf32>
    %112 = arith.addf %106, %111 : vector<256x64xf32>
    %113 = vector.extract_strided_slice %100 {offsets = [2, 0, 0], sizes = [16, 16, 64], strides = [1, 1, 1]} : vector<18x16x64xbf16> to vector<16x16x64xbf16>
    %114 = vector.shape_cast %113 : vector<16x16x64xbf16> to vector<256x64xbf16>
    %c7_86 = arith.constant 7 : index
    %c0_87 = arith.constant 0 : index
    %c0_88 = arith.constant 0 : index
    %115 = vector.load %arg5[%c7_86, %c0_87, %c0_88] : memref<9x64x64xbf16, #tpu.memory_space<vmem>>, vector<1x64x64xbf16>
    %116 = vector.shape_cast %115 : vector<1x64x64xbf16> to vector<64x64xbf16>
    %cst_89 = arith.constant dense<0.000000e+00> : vector<256x64xf32>
    %117 = tpu.matmul %114, %116, %cst_89 {dimension_numbers = #tpu.dot_dimension_numbers<[1], [0], [0], [1], [0, 0, 1, 1], [], []>} : vector<256x64xbf16>, vector<64x64xbf16>, vector<256x64xf32> -> vector<256x64xf32>
    %118 = arith.addf %112, %117 : vector<256x64xf32>
    %c0_90 = arith.constant 0 : index
    %c2_91 = arith.constant 2 : index
    %c0_92 = arith.constant 0 : index
    %119 = vector.load %arg13[%c0_90, %c2_91, %c0_92] : memref<18x18x64xf32, #tpu.memory_space<vmem>>, vector<18x16x64xf32>
    %120 = arith.truncf %119 : vector<18x16x64xf32> to vector<18x16x64xbf16>
    %121 = vector.extract_strided_slice %120 {offsets = [0, 0, 0], sizes = [16, 16, 64], strides = [1, 1, 1]} : vector<18x16x64xbf16> to vector<16x16x64xbf16>
    %122 = vector.shape_cast %121 : vector<16x16x64xbf16> to vector<256x64xbf16>
    %c2_93 = arith.constant 2 : index
    %c0_94 = arith.constant 0 : index
    %c0_95 = arith.constant 0 : index
    %123 = vector.load %arg5[%c2_93, %c0_94, %c0_95] : memref<9x64x64xbf16, #tpu.memory_space<vmem>>, vector<1x64x64xbf16>
    %124 = vector.shape_cast %123 : vector<1x64x64xbf16> to vector<64x64xbf16>
    %cst_96 = arith.constant dense<0.000000e+00> : vector<256x64xf32>
    %125 = tpu.matmul %122, %124, %cst_96 {dimension_numbers = #tpu.dot_dimension_numbers<[1], [0], [0], [1], [0, 0, 1, 1], [], []>} : vector<256x64xbf16>, vector<64x64xbf16>, vector<256x64xf32> -> vector<256x64xf32>
    %126 = arith.addf %118, %125 : vector<256x64xf32>
    %127 = vector.extract_strided_slice %120 {offsets = [1, 0, 0], sizes = [16, 16, 64], strides = [1, 1, 1]} : vector<18x16x64xbf16> to vector<16x16x64xbf16>
    %128 = vector.shape_cast %127 : vector<16x16x64xbf16> to vector<256x64xbf16>
    %c5_97 = arith.constant 5 : index
    %c0_98 = arith.constant 0 : index
    %c0_99 = arith.constant 0 : index
    %129 = vector.load %arg5[%c5_97, %c0_98, %c0_99] : memref<9x64x64xbf16, #tpu.memory_space<vmem>>, vector<1x64x64xbf16>
    %130 = vector.shape_cast %129 : vector<1x64x64xbf16> to vector<64x64xbf16>
    %cst_100 = arith.constant dense<0.000000e+00> : vector<256x64xf32>
    %131 = tpu.matmul %128, %130, %cst_100 {dimension_numbers = #tpu.dot_dimension_numbers<[1], [0], [0], [1], [0, 0, 1, 1], [], []>} : vector<256x64xbf16>, vector<64x64xbf16>, vector<256x64xf32> -> vector<256x64xf32>
    %132 = arith.addf %126, %131 : vector<256x64xf32>
    %133 = vector.extract_strided_slice %120 {offsets = [2, 0, 0], sizes = [16, 16, 64], strides = [1, 1, 1]} : vector<18x16x64xbf16> to vector<16x16x64xbf16>
    %134 = vector.shape_cast %133 : vector<16x16x64xbf16> to vector<256x64xbf16>
    %c8_101 = arith.constant 8 : index
    %c0_102 = arith.constant 0 : index
    %c0_103 = arith.constant 0 : index
    %135 = vector.load %arg5[%c8_101, %c0_102, %c0_103] : memref<9x64x64xbf16, #tpu.memory_space<vmem>>, vector<1x64x64xbf16>
    %136 = vector.shape_cast %135 : vector<1x64x64xbf16> to vector<64x64xbf16>
    %cst_104 = arith.constant dense<0.000000e+00> : vector<256x64xf32>
    %137 = tpu.matmul %134, %136, %cst_104 {dimension_numbers = #tpu.dot_dimension_numbers<[1], [0], [0], [1], [0, 0, 1, 1], [], []>} : vector<256x64xbf16>, vector<64x64xbf16>, vector<256x64xf32> -> vector<256x64xf32>
    %138 = arith.addf %132, %137 : vector<256x64xf32>
    %c0_105 = arith.constant 0 : index
    %c0_106 = arith.constant 0 : index
    %139 = vector.load %arg6[%c0_105, %c0_106] : memref<1x64xf32, #tpu.memory_space<vmem>>, vector<1x64xf32>
    %140 = vector.broadcast %139 : vector<1x64xf32> to vector<256x64xf32>
    %141 = arith.mulf %138, %140 : vector<256x64xf32>
    %c0_107 = arith.constant 0 : index
    %c0_108 = arith.constant 0 : index
    %142 = vector.load %arg7[%c0_107, %c0_108] : memref<1x64xf32, #tpu.memory_space<vmem>>, vector<1x64xf32>
    %143 = vector.broadcast %142 : vector<1x64xf32> to vector<256x64xf32>
    %144 = arith.addf %141, %143 : vector<256x64xf32>
    %c0_109 = arith.constant 0 : index
    %c0_110 = arith.constant 0 : index
    %145 = vector.load %arg8[%c0_109, %c0_110] : memref<256x64xf32, #tpu.memory_space<vmem>>, vector<256x64xf32>
    %146 = arith.mulf %145, %144 : vector<256x64xf32>
    %cst_111 = arith.constant dense<0.000000e+00> : vector<64xf32>
    %147 = vector.multi_reduction <add>, %146, %cst_111 [0] : vector<256x64xf32> to vector<64xf32>
    %148 = vector.shape_cast %147 : vector<64xf32> to vector<1x64xf32>
    %149 = vector.shape_cast %148 : vector<1x64xf32> to vector<1x64xf32>
    %150 = vector.broadcast %149 : vector<1x64xf32> to vector<8x64xf32>
    %c0_112 = arith.constant 0 : index
    %c0_113 = arith.constant 0 : index
    %151 = vector.load %arg9[%c0_112, %c0_113] : memref<64x8xf32, #tpu.memory_space<vmem>>, vector<64x8xf32>
    %cst_114 = arith.constant dense<0.000000e+00> : vector<8x8xf32>
    %152 = tpu.matmul %150, %151, %cst_114 {dimension_numbers = #tpu.dot_dimension_numbers<[1], [0], [0], [1], [0, 0, 1, 1], [], []>} : vector<8x64xf32>, vector<64x8xf32>, vector<8x8xf32> -> vector<8x8xf32>
    %cst_115 = arith.constant 0.000000e+00 : f32
    %153 = vector.broadcast %cst_115 : f32 to vector<8x8xf32>
    %154 = arith.maximumf %152, %153 : vector<8x8xf32>
    %c0_116 = arith.constant 0 : index
    %c0_117 = arith.constant 0 : index
    %155 = vector.load %arg10[%c0_116, %c0_117] : memref<8x64xf32, #tpu.memory_space<vmem>>, vector<8x64xf32>
    %cst_118 = arith.constant dense<0.000000e+00> : vector<8x64xf32>
    %156 = tpu.matmul %154, %155, %cst_118 {dimension_numbers = #tpu.dot_dimension_numbers<[1], [0], [0], [1], [0, 0, 1, 1], [], []>} : vector<8x8xf32>, vector<8x64xf32>, vector<8x64xf32> -> vector<8x64xf32>
    %157 = vector.extract_strided_slice %156 {offsets = [0, 0], sizes = [1, 64], strides = [1, 1]} : vector<8x64xf32> to vector<1x64xf32>
    %cst_119 = arith.constant 0.000000e+00 : f32
    %158 = vector.broadcast %cst_119 : f32 to vector<1x64xf32>
    %159 = arith.subf %158, %157 : vector<1x64xf32>
    %160 = math.exp %159 : vector<1x64xf32>
    %cst_120 = arith.constant 1.000000e+00 : f32
    %161 = vector.broadcast %cst_120 : f32 to vector<1x64xf32>
    %162 = arith.addf %161, %160 : vector<1x64xf32>
    %cst_121 = arith.constant 1.000000e+00 : f32
    %163 = vector.broadcast %cst_121 : f32 to vector<1x64xf32>
    %164 = arith.divf %163, %162 : vector<1x64xf32>
    %165 = vector.broadcast %164 : vector<1x64xf32> to vector<256x64xf32>
    %166 = arith.mulf %144, %165 : vector<256x64xf32>
    %167 = vector.shape_cast %1 : vector<16x16x64xf32> to vector<256x64xf32>
    %168 = arith.addf %166, %167 : vector<256x64xf32>
    %cst_122 = arith.constant 0.000000e+00 : f32
    %169 = vector.broadcast %cst_122 : f32 to vector<256x64xf32>
    %170 = arith.maximumf %168, %169 : vector<256x64xf32>
    %171 = vector.shape_cast %170 : vector<256x64xf32> to vector<16x16x64xf32>
    %c0_123 = arith.constant 0 : index
    %c0_124 = arith.constant 0 : index
    %c0_125 = arith.constant 0 : index
    %c0_126 = arith.constant 0 : index
    %172 = vector.load %arg11[%c0_123, %c0_124, %c0_125, %c0_126] : memref<1x16x16x64xf32, #tpu.memory_space<vmem>>, vector<1x16x16x64xf32>
    %173 = vector.shape_cast %172 : vector<1x16x16x64xf32> to vector<16x16x64xf32>
    %174 = vector.shape_cast %171 : vector<16x16x64xf32> to vector<1x16x16x64xf32>
    tpu.vector_store %arg11[%c0_123, %c0_124, %c0_125, %c0_126], %174 {strides = array<i32>} : memref<1x16x16x64xf32, #tpu.memory_space<vmem>>, vector<1x16x16x64xf32>,
    return
  }
  func.func @transform_0(%arg0: i32) -> (i32, i32, i32, i32) {
    %c0_i32 = arith.constant 0 : i32
    %c0_i32_0 = arith.constant 0 : i32
    %c0_i32_1 = arith.constant 0 : i32
    %c0_i32_2 = arith.constant 0 : i32
    return %arg0, %c0_i32, %c0_i32_0, %c0_i32_1 : i32, i32, i32, i32
  }
  func.func @transform_1(%arg0: i32) -> (i32, i32, i32) {
    %c0_i32 = arith.constant 0 : i32
    %c0_i32_0 = arith.constant 0 : i32
    %c0_i32_1 = arith.constant 0 : i32
    %c0_i32_2 = arith.constant 0 : i32
    return %c0_i32, %c0_i32_0, %c0_i32_1 : i32, i32, i32
  }
  func.func @transform_2(%arg0: i32) -> (i32, i32) {
    %c0_i32 = arith.constant 0 : i32
    %c0_i32_0 = arith.constant 0 : i32
    %c0_i32_1 = arith.constant 0 : i32
    return %c0_i32, %c0_i32_0 : i32, i32
  }
  func.func @transform_3(%arg0: i32) -> (i32, i32) {
    %c0_i32 = arith.constant 0 : i32
    %c0_i32_0 = arith.constant 0 : i32
    %c0_i32_1 = arith.constant 0 : i32
    return %c0_i32, %c0_i32_0 : i32, i32
  }
  func.func @transform_4(%arg0: i32) -> (i32, i32, i32) {
    %c0_i32 = arith.constant 0 : i32
    %c0_i32_0 = arith.constant 0 : i32
    %c0_i32_1 = arith.constant 0 : i32
    %c0_i32_2 = arith.constant 0 : i32
    return %c0_i32, %c0_i32_0, %c0_i32_1 : i32, i32, i32
  }
  func.func @transform_5(%arg0: i32) -> (i32, i32) {
    %c0_i32 = arith.constant 0 : i32
    %c0_i32_0 = arith.constant 0 : i32
    %c0_i32_1 = arith.constant 0 : i32
    return %c0_i32, %c0_i32_0 : i32, i32
  }
  func.func @transform_6(%arg0: i32) -> (i32, i32) {
    %c0_i32 = arith.constant 0 : i32
    %c0_i32_0 = arith.constant 0 : i32
    %c0_i32_1 = arith.constant 0 : i32
    return %c0_i32, %c0_i32_0 : i32, i32
  }
  func.func @transform_7(%arg0: i32) -> (i32, i32) {
    %c0_i32 = arith.constant 0 : i32
    %c0_i32_0 = arith.constant 0 : i32
    %c0_i32_1 = arith.constant 0 : i32
    return %c0_i32, %c0_i32_0 : i32, i32
  }
  func.func @transform_8(%arg0: i32) -> (i32, i32) {
    %c0_i32 = arith.constant 0 : i32
    %c0_i32_0 = arith.constant 0 : i32
    %c0_i32_1 = arith.constant 0 : i32
    return %c0_i32, %c0_i32_0 : i32, i32
  }
  func.func @transform_9(%arg0: i32) -> (i32, i32) {
    %c0_i32 = arith.constant 0 : i32
    %c0_i32_0 = arith.constant 0 : i32
    %c0_i32_1 = arith.constant 0 : i32
    return %c0_i32, %c0_i32_0 : i32, i32
  }
  func.func @transform_10(%arg0: i32) -> (i32, i32, i32, i32) {
    %c0_i32 = arith.constant 0 : i32
    %c0_i32_0 = arith.constant 0 : i32
    %c0_i32_1 = arith.constant 0 : i32
    %c0_i32_2 = arith.constant 0 : i32
    return %arg0, %c0_i32, %c0_i32_0, %c0_i32_1 : i32, i32, i32, i32
  }
}

</mosaic_0001>

<bundles_post_ra>
// kernel: basic_block_forward.1
= control target key start
LH: loop header
LB: loop body
LE: loop exit
PB: predicated region body
PF: predicated region fallthrough
CT: control target
= control target key end

     0   :  { %15 = vsyncpa [#allocation5], 0  ;;  %s8714_s0 = inlined_call_operand.vmem [shape: f32[4,16,16,64], index: 0, kind: input, shape index: {}]   ;;  %s8715_s1 = inlined_call_operand.vmem [shape: bf16[9,64,64], index: 1, kind: input, shape index: {}]   ;;  %s8716_s2 = inlined_call_operand.vmem [shape: f32[1,64], index: 2, kind: input, shape index: {}]   ;;  %s8717_s3 = inlined_call_operand.vmem [shape: f32[1,64], index: 3, kind: input, shape index: {}]   ;;  %s8718_s4 = inlined_call_operand.vmem [shape: bf16[9,64,64], index: 4, kind: input, shape index: {}]   ;;  %s8719_s5 = inlined_call_operand.vmem [shape: f32[1,64], index: 5, kind: input, shape index: {}]   ;;  %s8720_s6 = inlined_call_operand.vmem [shape: f32[1,64], index: 6, kind: input, shape index: {}]   ;;  %s8721_s7 = inlined_call_operand.hbm [shape: f32[256,64], index: 7, kind: input, shape index: {}]   ;;  %s8722_s8 = inlined_call_operand.vmem [shape: f32[64,8], index: 8, kind: input, shape index: {}]   ;;  %s8723_s9 = inlined_call_operand.vmem [shape: f32[8,64], index: 9, kind: input, shape index: {}]   ;;  %s8724_s10 = inlined_call_operand.hbm [shape: f32[4,16,16,64], index: 10, kind: output, shape index: {}]  }
   0x1   :  { %16 = vsyncpa [#allocation6], 0 }
   0x2   :  { %18 = vsyncpa [#allocation6 + $0x1], 0  ;;  %s6152_s13 = smov 0   ;;  %s6154_s14 = smov 0  }
   0x3   :  { %s6156_s15 = smov 0   ;;  %s6158_s16 = smov 0  }
   0x4 LB: > { %s6173_s17 = sadd.s32 4294967295, %s6089_s16   ;;  %s5126_s18 = sadd.s32 4294967294, %s6089_s16   ;;  %s6089_s16 = sphi %s6158_s16, %s8868_s16   ;;  %s6085_s15 = sphi %s6156_s15, %s8867_s15   ;;  %s6081_s14 = sphi %s6154_s14, %s8866_s14   ;;  %s6077_s13 = sphi %s6152_s13, %s8865_s13  }
   0x5   : > { %s6177_s19 = sadd.s32 1, %s6089_s16   ;;  %s246_s20 = sadd.s32 1, %s6085_s15 }
   0x6   : > { %s243_s21 = ssub.s32 %s6089_s16, %s6177_s19  ;;  %p256_p0 = scmp.ne.s32.totalorder %s6085_s15, %s6081_s14 }
   0x7   : > { %p244_p1 = scmp.eq.s32.totalorder %s243_s21, 0  ;;  %p257_p2 = scmp.eq.s32.totalorder %s6173_s17, 3 }
   0x8   : > { %p262_p3 = scmp.ne.s32.totalorder %s6081_s14, %s6077_s13  ;;  %p263_p4 = scmp.eq.s32.totalorder %s5126_s18, 3 }
   0x9   : > { %s6188_s22 = scalar_select %p244_p1, %s6085_s15, %s246_s20  }
   0xa   : > { %p6190_p5 = por %p257_p2, %p256_p0  ;;  %p6194_p6 = por %p263_p4, %p262_p3 }
   0xb   : > { %p5127_p7 = scmp.ge.s32.totalorder %s6089_s16, 1  ;;  %p270_p8 = scmp.lt.s32.totalorder %s6089_s16, 5 }
   0xc   : > { %p5942_p9 = scmp.eq.s32.totalorder %s6173_s17, 0  ;;  %s299_s27 = sshll.u32 %s8721_s7, 4  ;;  %s300_s27 = int_to_ptr.hbm [resolvable:$true] %s299_s27 }
   0xd   : > { %p271_p10 = pnand %p5127_p7, %p270_p8  ;;  %s6091_s28 = smov [#allocation4]  }
   0xe   : > { %s301_s29 = sshll.u32 %s6091_s28, 4  ;;  %s6092_s30 = smov 128   ;;  %s302_s29 = int_to_ptr.vmem [resolvable:$true] %s301_s29 }
   0xf   : > { %p5934_p11 = pneg %p271_p10  ;;  %s6093_s11 = smov 8  }
  0x10   : > { %331 = sbr.rel (%p271_p10) target bundleno = 1950 (0x79e), region = 60 }
  0x11   : > { %p5935_p12 = pnand %p5942_p9, %p5934_p11 }
  0x13   : > { %5937 = dma.hbm_to_vmem [thread:$0]  (!%p5935_p12), %s300_s27, 4096, %s302_s29, [#allocation5], %s6092_s30, %s6092_s30, %s6093_s11  }
  0x15   : > { %6068 = dma.done.wait (%p5942_p9), [#allocation5], 4096  }
  0x16   : > { %6070 = vsyncadd (%p5942_p9), [#allocation5], 4294963200  ;;  %p370_p13 = scmp.lt.s32.totalorder %s6173_s17, 3  ;;  %vm408_vm0 = vcmask 523264   ;;  %vm411_vm1 = vcmask 517120   ;;  %v6094_v0 = vmov 0.0  }
  0x17   : > { %413 = vst.msk [vmem:[#allocation2 + $0x18] sm:$0xff] %vm408_vm0, %v6094_v0  ;;  %v5854_v1 = vld [vmem:[%s8715_s1 + $0x78] sm:$0xff]  ;;  %v5853_v3 = vld [vmem:[%s8715_s1 + $0x70] sm:$0xff]  ;;  %v5852_v7 = vld [vmem:[%s8715_s1 + $0x68] sm:$0xff]  ;;  %vm4864_vm2 = vcmask 64512   ;;  %s367_s27 = sand.u32 1, %s6081_s14  }
  0x18   : > { %s371_s12 = scalar_select %p370_p13, %s6173_s17, 3  ;;  %414 = vst.msk [vmem:[#allocation2 + $0x20] sm:$0xff] %vm408_vm0, %v6094_v0  ;;  %v5850_v2 = vld [vmem:[%s8715_s1 + $0x18] sm:$0xff]  ;;  %742 = vmatpush.bf16.msra.mxu0 %v5854_v1  ;;  %5920 = vmatpush.bf16.msra.mxu2 %v5854_v1  ;;  %v5849_v5 = vld [vmem:[%s8715_s1 + $0x10] sm:$0xff]  ;;  %v5848_v8 = vld [vmem:[%s8715_s1 + $0x8] sm:$0xff] }
  0x19   : > { %415 = vst.msk [vmem:[#allocation2 + $0x28] sm:$0x3] %vm411_vm1, %v6094_v0  ;;  %863 = vmatpush.bf16.msra.mxu1 %v5850_v2  ;;  %5924 = vmatpush.bf16.msra.mxu3 %v5850_v2  ;;  %v5851_v9 = vld [vmem:[%s8715_s1 + $0x60] sm:$0xff]  ;;  %v5866_v25 = vld [vmem:[%s8715_s1 + $0x98] sm:$0xff]  ;;  %v5865_v63 = vld [vmem:[%s8715_s1 + $0x90] sm:$0xff]  ;;  %s5132_s28 = sshll.u32 %s367_s27, 8 }
  0x1a   : > { %s5846_s18 = sshll.u32 %s371_s12, 8  ;;  %409 = vst.msk [vmem:[#allocation2] sm:$0xff] %vm408_vm0, %v6094_v0  ;;  %v5847_v11 = vld [vmem:[%s8715_s1] sm:$0xff]  ;;  %v5858_v31 = vld [vmem:[%s8715_s1 + $0xd8] sm:$0xff]  ;;  %s8553_s29 = scalar_lea.vmem [#allocation7], %s5132_s28 }
  0x1b   : > { %410 = vst.msk [vmem:[#allocation2 + $0x8] sm:$0xff] %vm408_vm0, %v6094_v0  ;;  %s6225_s25 = scalar_lea.vmem %s8714_s0, %s5846_s18  ;;  %v5862_v32 = vld [vmem:[%s8715_s1 + $0x38] sm:$0xff]  ;;  %s5919_s30 = sshll.u32 %s6173_s17, 8 }
  0x1c   : > { %412 = vst.msk [vmem:[#allocation2 + $0x10] sm:$0x3] %vm411_vm1, %v6094_v0  ;;  %v6243_v4 = vld [vmem:[%s6225_s25] sm:$0xff]  ;;  %v6251_v6 = vld [vmem:[%s6225_s25 + $0x8] sm:$0xff]  ;;  %743 = vmatpush.bf16.msra.mxu0 %v5853_v3  ;;  %5921 = vmatpush.bf16.msra.mxu2 %v5853_v3  ;;  %v6472_v26 = vld [vmem:[%s6225_s25 + $0x90] sm:$0xff]  ;;  %s5048_s12 = scalar_lea.hbm %s8724_s10, %s5919_s30  ;;  %s5049_s18 = sshll.u32 %s8553_s29, 4  ;;  %s5050_s18 = int_to_ptr.vmem [resolvable:$true] %s5049_s18 }
  0x1d   : > { %416 = vst.msk [vmem:[#allocation2 + $0x30] sm:$0xff] %vm408_vm0, %v6094_v0  ;;  %864 = vmatpush.bf16.msra.mxu1 %v5849_v5  ;;  %5925 = vmatpush.bf16.msra.mxu3 %v5849_v5  ;;  %v6477_v27 = vld [vmem:[%s6225_s25 + $0x98] sm:$0xff]  ;;  %v6482_v28 = vld [vmem:[%s6225_s25 + $0x80] sm:$0xff]  ;;  %v6489_v29 = vld [vmem:[%s6225_s25 + $0x88] sm:$0xff]  ;;  %s5051_s20 = sshll.u32 %s5048_s12, 4  ;;  %s5037_s21 = scalar_lea.sflag [#allocation6], %s367_s27  ;;  %s5052_s20 = int_to_ptr.hbm [resolvable:$true] %s5051_s20 }
  0x1e   : > { %417 = vst.msk [vmem:[#allocation2 + $0x38] sm:$0xff] %vm408_vm0, %v6094_v0  ;;  %v6494_v30 = vld [vmem:[%s6225_s25 + $0x10] sm:$0xff]  ;;  %v6505_v33 = vld [vmem:[%s6225_s25 + $0x18] sm:$0xff]  ;;  %v6510_v34 = vld [vmem:[%s6225_s25 + $0xa0] sm:$0xff]  ;;  %s6043_s17 = scalar_lea.hbm %s8724_s10, 1024 }
  0x1f   : > { %8767 = vst [vmem:[#allocation10_spill] sm:$0xff] %v6243_v4  ;;  %v6515_v35 = vld [vmem:[%s6225_s25 + $0xa8] sm:$0xff]  ;;  %v6520_v36 = vld [vmem:[%s6225_s25 + $0x20] sm:$0xff]  ;;  %v6530_v39 = vld [vmem:[%s6225_s25 + $0xb0] sm:$0xff] }
  0x20   : > { %418 = vst.msk [vmem:[#allocation2 + $0x40] sm:$0x3] %vm411_vm1, %v6094_v0  ;;  %744 = vmatpush.bf16.msra.mxu0 %v5852_v7  ;;  %5922 = vmatpush.bf16.msra.mxu2 %v5852_v7  ;;  %v6525_v37 = vld [vmem:[%s6225_s25 + $0x28] sm:$0xff]  ;;  %v6535_v42 = vld [vmem:[%s6225_s25 + $0xb8] sm:$0xff]  ;;  %v6565_v2 = vld [vmem:[%s6225_s25 + $0xc0] sm:$0xff] }
  0x21   : > { %8768 = vst [vmem:[#allocation11_spill] sm:$0xff] %v6251_v6  ;;  %865 = vmatpush.bf16.msra.mxu1 %v5848_v8  ;;  %5926 = vmatpush.bf16.msra.mxu3 %v5848_v8  ;;  %v497_v18 = vld [vmem:[#allocation2] sm:$0xff]  ;;  %v6560_v1 = vld [vmem:[%s6225_s25 + $0x38] sm:$0xff]  ;;  %v6574_v7 = vld [vmem:[%s6225_s25 + $0xc8] sm:$0xff] }
  0x22   : > { %465 = vst.msk [vmem:[#allocation2 + $0x19] sm:$0xff] %vm408_vm0, %v6243_v4  ;;  %v498_v19 = vld [vmem:[#allocation2 + $0x8] sm:$0xff]  ;;  %v533_v20 = vpack.c.bf16 %v497_v18, %v497_v18 }
  0x23   : > { %466 = vst.msk [vmem:[#allocation2 + $0x21] sm:$0xff] %vm408_vm0, %v6251_v6  ;;  %v534_v21 = vpack.c.bf16 %v498_v19, %v498_v19 }
  0x24   : > { %419 = vst.msk [vmem:[#allocation2 + $0x48] sm:$0xff] %vm408_vm0, %v6094_v0  ;;  %745 = vmatpush.bf16.msra.mxu0 %v5851_v9  ;;  %5923 = vmatpush.bf16.msra.mxu2 %v5851_v9  ;;  %v829_v22 = vunpack.c.l.b16 %v533_v20  ;;  %v5857_v20 = vld [vmem:[%s8715_s1 + $0xd0] sm:$0xff] }
  0x25   : > { %420 = vst.msk [vmem:[#allocation2 + $0x50] sm:$0xff] %vm408_vm0, %v6094_v0  ;;  %866 = vmatpush.bf16.msra.mxu1 %v5847_v11  ;;  %5927 = vmatpush.bf16.msra.mxu3 %v5847_v11  ;;  %v830_v23 = vunpack.c.l.b16 %v534_v21  ;;  %v5861_v21 = vld [vmem:[%s8715_s1 + $0x30] sm:$0xff] }
  0x26   : > { %421 = vst.msk [vmem:[#allocation2 + $0x58] sm:$0x3] %vm411_vm1, %v6094_v0 }
  0x27   : > { %422 = vst.msk [vmem:[#allocation2 + $0x60] sm:$0xff] %vm408_vm0, %v6094_v0  ;;  %v831_v24 = vpack.c.b16 %v830_v23, %v829_v22  ;;  %v6595_v22 = vld [vmem:[%s6225_s25 + $0x40] sm:$0xff]  ;;  %v6598_v23 = vld [vmem:[%s6225_s25 + $0x48] sm:$0xff] }
  0x28   : > { %423 = vst.msk [vmem:[#allocation2 + $0x68] sm:$0xff] %vm408_vm0, %v6094_v0  ;;  %1509 = vmatpush.bf16.msrb.mxu0 %v5866_v25  ;;  %993 = vmatpush.bf16.msrb.mxu2 %v5858_v31  ;;  %v6606_v25 = vld [vmem:[%s6225_s25 + $0xd8] sm:$0xff] }
  0x29   : > { %v499_v10 = vld [vmem:[#allocation2 + $0x18] sm:$0xff]  ;;  %424 = vst.msk [vmem:[#allocation2 + $0x70] sm:$0x3] %vm411_vm1, %v6094_v0  ;;  %5191 = vmatmul.msk.bf16.vlgmr.msra.gmra.mxu1 %vm408_vm0, %v831_v24  ;;  %1347 = vmatpush.bf16.msrb.mxu3 %v5862_v32  ;;  %v6603_v24 = vld [vmem:[%s6225_s25 + $0xd0] sm:$0xff] }
  0x2a   : > { %v500_v12 = vld [vmem:[#allocation2 + $0x20] sm:$0xff]  ;;  %v535_v13 = vpack.c.bf16 %v499_v10, %v499_v10  ;;  %425 = vst.msk [vmem:[#allocation2 + $0x78] sm:$0xff] %vm408_vm0, %v6094_v0 }
  0x2b   : > { %v536_v14 = vpack.c.bf16 %v500_v12, %v500_v12  ;;  %426 = vst.msk [vmem:[#allocation2 + $0x80] sm:$0xff] %vm408_vm0, %v6094_v0 }
  0x2c   : > { %v618_v15 = vunpack.c.l.b16 %v535_v13  ;;  %427 = vst.msk [vmem:[#allocation2 + $0x88] sm:$0x3] %vm411_vm1, %v6094_v0  ;;  %1510 = vmatpush.bf16.msrb.mxu0 %v5865_v63  ;;  %994 = vmatpush.bf16.msrb.mxu2 %v5857_v20  ;;  %v6668_v20 = vld [vmem:[%s6225_s25 + $0x60] sm:$0xff] }
  0x2d   : > { %v619_v16 = vunpack.c.l.b16 %v536_v14  ;;  %428 = vst.msk [vmem:[#allocation2 + $0x90] sm:$0xff] %vm408_vm0, %v6094_v0  ;;  %1348 = vmatpush.bf16.msrb.mxu3 %v5861_v21  ;;  %v6671_v21 = vld [vmem:[%s6225_s25 + $0x68] sm:$0xff] }
  0x2e   : > { %429 = vst.msk [vmem:[#allocation2 + $0x98] sm:$0xff] %vm408_vm0, %v6094_v0 }
  0x2f   : > { %v6291_v17 = vpack.c.b16 %v619_v16, %v618_v15  ;;  %430 = vst.msk [vmem:[#allocation2 + $0xa0] sm:$0x3] %vm411_vm1, %v6094_v0 }
  0x30   : > { %431 = vst.msk [vmem:[#allocation2 + $0xa8] sm:$0xff] %vm408_vm0, %v6094_v0 }
  0x31   : > { %5159 = vmatmul.msk.bf16.vlgmr.msra.gmra.mxu0 %vm408_vm0, %v6291_v17  ;;  %432 = vst.msk [vmem:[#allocation2 + $0xb0] sm:$0xff] %vm408_vm0, %v6094_v0 }
  0x32   : > { %433 = vst.msk [vmem:[#allocation2 + $0xb8] sm:$0x3] %vm411_vm1, %v6094_v0 }
  0x33   : > { %434 = vst.msk [vmem:[#allocation2 + $0xc0] sm:$0xff] %vm408_vm0, %v6094_v0 }
  0x34   : > { %435 = vst.msk [vmem:[#allocation2 + $0xc8] sm:$0xff] %vm408_vm0, %v6094_v0 }
  0x35   : > { %436 = vst.msk [vmem:[#allocation2 + $0xd0] sm:$0x3] %vm411_vm1, %v6094_v0 }
  0x36   : > { %437 = vst.msk [vmem:[#allocation2 + $0xd8] sm:$0xff] %vm408_vm0, %v6094_v0 }
  0x37   : > { %438 = vst.msk [vmem:[#allocation2 + $0xe0] sm:$0xff] %vm408_vm0, %v6094_v0 }
  0x38   : > { %439 = vst.msk [vmem:[#allocation2 + $0xe8] sm:$0x3] %vm411_vm1, %v6094_v0 }
  0x39   : > { %440 = vst.msk [vmem:[#allocation2 + $0xf0] sm:$0xff] %vm408_vm0, %v6094_v0  ;;  %5192 = vmatmul.msk.bf16.gmra.mxu1 %vm408_vm0, %v6291_v17 }
  0x3a   : > { %441 = vst.msk [vmem:[#allocation2 + $0xf8] sm:$0xff] %vm408_vm0, %v6094_v0 }
  0x3b   : > { %442 = vst.msk [vmem:[#allocation2 + $0x100] sm:$0x3] %vm411_vm1, %v6094_v0 }
  0x3c   : > { %443 = vst.msk [vmem:[#allocation2 + $0x108] sm:$0xff] %vm408_vm0, %v6094_v0 }
  0x3d   : > { %444 = vst.msk [vmem:[#allocation2 + $0x110] sm:$0xff] %vm408_vm0, %v6094_v0 }
  0x3e   : > { %445 = vst.msk [vmem:[#allocation2 + $0x118] sm:$0x3] %vm411_vm1, %v6094_v0 }
  0x3f   : > { %446 = vst.msk [vmem:[#allocation2 + $0x120] sm:$0xff] %vm408_vm0, %v6094_v0 }
  0x40   : > { %447 = vst.msk [vmem:[#allocation2 + $0x128] sm:$0xff] %vm408_vm0, %v6094_v0 }
  0x41   : > { %448 = vst.msk [vmem:[#allocation2 + $0x130] sm:$0x3] %vm411_vm1, %v6094_v0 }
  0x42   : > { %449 = vst.msk [vmem:[#allocation2 + $0x138] sm:$0xff] %vm408_vm0, %v6094_v0 }
  0x43   : > { %450 = vst.msk [vmem:[#allocation2 + $0x140] sm:$0xff] %vm408_vm0, %v6094_v0 }
  0x44   : > { %451 = vst.msk [vmem:[#allocation2 + $0x148] sm:$0x3] %vm411_vm1, %v6094_v0 }
  0x45   : > { %452 = vst.msk [vmem:[#allocation2 + $0x150] sm:$0xff] %vm408_vm0, %v6094_v0 }
  0x46   : > { %453 = vst.msk [vmem:[#allocation2 + $0x158] sm:$0xff] %vm408_vm0, %v6094_v0 }
  0x47   : > { %454 = vst.msk [vmem:[#allocation2 + $0x160] sm:$0x3] %vm411_vm1, %v6094_v0 }
  0x48   : > { %455 = vst.msk [vmem:[#allocation2 + $0x168] sm:$0xff] %vm408_vm0, %v6094_v0 }
  0x49   : > { %456 = vst.msk [vmem:[#allocation2 + $0x170] sm:$0xff] %vm408_vm0, %v6094_v0 }
  0x4a   : > { %457 = vst.msk [vmem:[#allocation2 + $0x178] sm:$0x3] %vm411_vm1, %v6094_v0 }
  0x4b   : > { %458 = vst.msk [vmem:[#allocation2 + $0x180] sm:$0xff] %vm408_vm0, %v6094_v0 }
  0x4c   : > { %459 = vst.msk [vmem:[#allocation2 + $0x188] sm:$0xff] %vm408_vm0, %v6094_v0 }
  0x4d   : > { %460 = vst.msk [vmem:[#allocation2 + $0x190] sm:$0x3] %vm411_vm1, %v6094_v0 }
  0x4e   : > { %461 = vst.msk [vmem:[#allocation2 + $0x198] sm:$0xff] %vm408_vm0, %v6094_v0 }
  0x4f   : > { %462 = vst.msk [vmem:[#allocation2 + $0x1a0] sm:$0xff] %vm408_vm0, %v6094_v0 }
  0x50   : > { %463 = vst.msk [vmem:[#allocation2 + $0x1a8] sm:$0x3] %vm411_vm1, %v6094_v0 }
  0x51   : > { %2570 = vst.msk [vmem:[#allocation3] sm:$0xff] %vm408_vm0, %v6094_v0 }
  0x52   : > { %2571 = vst.msk [vmem:[#allocation3 + $0x8] sm:$0xff] %vm408_vm0, %v6094_v0 }
  0x53   : > { %2572 = vst.msk [vmem:[#allocation3 + $0x10] sm:$0x3] %vm411_vm1, %v6094_v0 }
  0x54   : > { %2573 = vst.msk [vmem:[#allocation3 + $0x18] sm:$0xff] %vm408_vm0, %v6094_v0 }
  0x55   : > { %2574 = vst.msk [vmem:[#allocation3 + $0x20] sm:$0xff] %vm408_vm0, %v6094_v0 }
  0x56   : > { %2575 = vst.msk [vmem:[#allocation3 + $0x28] sm:$0x3] %vm411_vm1, %v6094_v0 }
  0x57   : > { %2576 = vst.msk [vmem:[#allocation3 + $0x30] sm:$0xff] %vm408_vm0, %v6094_v0 }
  0x58   : > { %2577 = vst.msk [vmem:[#allocation3 + $0x38] sm:$0xff] %vm408_vm0, %v6094_v0 }
  0x59   : > { %2578 = vst.msk [vmem:[#allocation3 + $0x40] sm:$0x3] %vm411_vm1, %v6094_v0 }
  0x5a   : > { %2579 = vst.msk [vmem:[#allocation3 + $0x48] sm:$0xff] %vm408_vm0, %v6094_v0 }
  0x5b   : > { %2580 = vst.msk [vmem:[#allocation3 + $0x50] sm:$0xff] %vm408_vm0, %v6094_v0 }
  0x5c   : > { %2581 = vst.msk [vmem:[#allocation3 + $0x58] sm:$0x3] %vm411_vm1, %v6094_v0 }
  0x5d   : > { %2582 = vst.msk [vmem:[#allocation3 + $0x60] sm:$0xff] %vm408_vm0, %v6094_v0 }
  0x5e   : > { %2583 = vst.msk [vmem:[#allocation3 + $0x68] sm:$0xff] %vm408_vm0, %v6094_v0 }
  0x5f   : > { %2584 = vst.msk [vmem:[#allocation3 + $0x70] sm:$0x3] %vm411_vm1, %v6094_v0 }
  0x60   : > { %2585 = vst.msk [vmem:[#allocation3 + $0x78] sm:$0xff] %vm408_vm0, %v6094_v0 }
  0x61   : > { %2586 = vst.msk [vmem:[#allocation3 + $0x80] sm:$0xff] %vm408_vm0, %v6094_v0 }
  0x62   : > { %2587 = vst.msk [vmem:[#allocation3 + $0x88] sm:$0x3] %vm411_vm1, %v6094_v0 }
  0x63   : > { %2588 = vst.msk [vmem:[#allocation3 + $0x90] sm:$0xff] %vm408_vm0, %v6094_v0 }
  0x64   : > { %2589 = vst.msk [vmem:[#allocation3 + $0x98] sm:$0xff] %vm408_vm0, %v6094_v0 }
  0x65   : > { %2590 = vst.msk [vmem:[#allocation3 + $0xa0] sm:$0x3] %vm411_vm1, %v6094_v0 }
  0x66   : > { %2591 = vst.msk [vmem:[#allocation3 + $0xa8] sm:$0xff] %vm408_vm0, %v6094_v0 }
  0x67   : > { %2592 = vst.msk [vmem:[#allocation3 + $0xb0] sm:$0xff] %vm408_vm0, %v6094_v0 }
  0x68   : > { %2593 = vst.msk [vmem:[#allocation3 + $0xb8] sm:$0x3] %vm411_vm1, %v6094_v0 }
  0x69   : > { %2594 = vst.msk [vmem:[#allocation3 + $0xc0] sm:$0xff] %vm408_vm0, %v6094_v0 }
  0x6a   : > { %2595 = vst.msk [vmem:[#allocation3 + $0xc8] sm:$0xff] %vm408_vm0, %v6094_v0 }
  0x6b   : > { %2596 = vst.msk [vmem:[#allocation3 + $0xd0] sm:$0x3] %vm411_vm1, %v6094_v0 }
  0x6c   : > { %2597 = vst.msk [vmem:[#allocation3 + $0xd8] sm:$0xff] %vm408_vm0, %v6094_v0 }
  0x6d   : > { %2598 = vst.msk [vmem:[#allocation3 + $0xe0] sm:$0xff] %vm408_vm0, %v6094_v0 }
  0x6e   : > { %2599 = vst.msk [vmem:[#allocation3 + $0xe8] sm:$0x3] %vm411_vm1, %v6094_v0 }
  0x6f   : > { %2600 = vst.msk [vmem:[#allocation3 + $0xf0] sm:$0xff] %vm408_vm0, %v6094_v0 }
  0x70   : > { %2601 = vst.msk [vmem:[#allocation3 + $0xf8] sm:$0xff] %vm408_vm0, %v6094_v0 }
  0x71   : > { %2602 = vst.msk [vmem:[#allocation3 + $0x100] sm:$0x3] %vm411_vm1, %v6094_v0 }
  0x72   : > { %2603 = vst.msk [vmem:[#allocation3 + $0x108] sm:$0xff] %vm408_vm0, %v6094_v0 }
  0x73   : > { %2604 = vst.msk [vmem:[#allocation3 + $0x110] sm:$0xff] %vm408_vm0, %v6094_v0 }
  0x74   : > { %2605 = vst.msk [vmem:[#allocation3 + $0x118] sm:$0x3] %vm411_vm1, %v6094_v0 }
  0x75   : > { %2606 = vst.msk [vmem:[#allocation3 + $0x120] sm:$0xff] %vm408_vm0, %v6094_v0 }
  0x76   : > { %2607 = vst.msk [vmem:[#allocation3 + $0x128] sm:$0xff] %vm408_vm0, %v6094_v0 }
  0x77   : > { %2608 = vst.msk [vmem:[#allocation3 + $0x130] sm:$0x3] %vm411_vm1, %v6094_v0 }
  0x78   : > { %2609 = vst.msk [vmem:[#allocation3 + $0x138] sm:$0xff] %vm408_vm0, %v6094_v0 }
  0x79   : > { %2610 = vst.msk [vmem:[#allocation3 + $0x140] sm:$0xff] %vm408_vm0, %v6094_v0 }
  0x7a   : > { %2611 = vst.msk [vmem:[#allocation3 + $0x148] sm:$0x3] %vm411_vm1, %v6094_v0 }
  0x7b   : > { %2612 = vst.msk [vmem:[#allocation3 + $0x150] sm:$0xff] %vm408_vm0, %v6094_v0 }
  0x7c   : > { %2613 = vst.msk [vmem:[#allocation3 + $0x158] sm:$0xff] %vm408_vm0, %v6094_v0 }
  0x7d   : > { %2614 = vst.msk [vmem:[#allocation3 + $0x160] sm:$0x3] %vm411_vm1, %v6094_v0 }
  0x7e   : > { %2615 = vst.msk [vmem:[#allocation3 + $0x168] sm:$0xff] %vm408_vm0, %v6094_v0 }
  0x7f   : > { %2616 = vst.msk [vmem:[#allocation3 + $0x170] sm:$0xff] %vm408_vm0, %v6094_v0 }
  0x80   : > { %2617 = vst.msk [vmem:[#allocation3 + $0x178] sm:$0x3] %vm411_vm1, %v6094_v0 }
  0x81   : > { %2618 = vst.msk [vmem:[#allocation3 + $0x180] sm:$0xff] %vm408_vm0, %v6094_v0 }
  0x82   : > { %2619 = vst.msk [vmem:[#allocation3 + $0x188] sm:$0xff] %vm408_vm0, %v6094_v0 }
  0x83   : > { %2620 = vst.msk [vmem:[#allocation3 + $0x190] sm:$0x3] %vm411_vm1, %v6094_v0 }
  0x84   : > { %2621 = vst.msk [vmem:[#allocation3 + $0x198] sm:$0xff] %vm408_vm0, %v6094_v0 }
  0x85   : > { %8769 = vst [vmem:[#allocation12_spill] sm:$0xff] %v6472_v26 }
  0x86   : > { %2622 = vst.msk [vmem:[#allocation3 + $0x1a0] sm:$0xff] %vm408_vm0, %v6094_v0 }
  0x87   : > { %8770 = vst [vmem:[#allocation13_spill] sm:$0xff] %v6477_v27 }
  0x88   : > { %2623 = vst.msk [vmem:[#allocation3 + $0x1a8] sm:$0x3] %vm411_vm1, %v6094_v0  ;;  %v6557_v0 = vld [vmem:[%s6225_s25 + $0x30] sm:$0xff] }
  0x89   : > { %8771 = vst [vmem:[#allocation14_spill] sm:$0xff] %v6482_v28 }
  0x8a   : > { %483 = vst.msk [vmem:[#allocation2 + $0xf1] sm:$0xff] %vm408_vm0, %v6472_v26 }
  0x8b   : > { %8772 = vst [vmem:[#allocation15_spill] sm:$0xff] %v6489_v29 }
  0x8c   : > { %484 = vst.msk [vmem:[#allocation2 + $0xf9] sm:$0xff] %vm408_vm0, %v6477_v27 }
  0x8d   : > { %8773 = vst [vmem:[#allocation16_spill] sm:$0xff] %v6494_v30 }
  0x8e   : > { %481 = vst.msk [vmem:[#allocation2 + $0xd9] sm:$0xff] %vm408_vm0, %v6482_v28 }
  0x8f   : > { %8774 = vst [vmem:[#allocation17_spill] sm:$0xff] %v6505_v33 }
  0x90   : > { %482 = vst.msk [vmem:[#allocation2 + $0xe1] sm:$0xff] %vm408_vm0, %v6489_v29 }
  0x91   : > { %8775 = vst [vmem:[#allocation18_spill] sm:$0xff] %v6510_v34  ;;  %v517_v38 = vld [vmem:[#allocation2 + $0xf0] sm:$0xff] }
  0x92   : > { %467 = vst.msk [vmem:[#allocation2 + $0x31] sm:$0xff] %vm408_vm0, %v6494_v30  ;;  %v553_v41 = vpack.c.bf16 %v517_v38, %v517_v38 }
  0x93   : > { %8776 = vst [vmem:[#allocation19_spill] sm:$0xff] %v6515_v35  ;;  %v518_v40 = vld [vmem:[#allocation2 + $0xf8] sm:$0xff] }
  0x94   : > { %468 = vst.msk [vmem:[#allocation2 + $0x39] sm:$0xff] %vm408_vm0, %v6505_v33  ;;  %v554_v43 = vpack.c.bf16 %v518_v40, %v518_v40  ;;  %v636_v45 = vunpack.c.l.b16 %v553_v41 }
  0x95   : > { %8777 = vst [vmem:[#allocation20_spill] sm:$0xff] %v6520_v36  ;;  %v515_v44 = vld [vmem:[#allocation2 + $0xd8] sm:$0xff] }
  0x96   : > { %485 = vst.msk [vmem:[#allocation2 + $0x109] sm:$0xff] %vm408_vm0, %v6510_v34  ;;  %v551_v47 = vpack.c.bf16 %v515_v44, %v515_v44  ;;  %v637_v48 = vunpack.c.l.b16 %v554_v43 }
  0x97   : > { %8778 = vst [vmem:[#allocation21_spill] sm:$0xff] %v6525_v37  ;;  %v516_v46 = vld [vmem:[#allocation2 + $0xe0] sm:$0xff] }
  0x98   : > { %486 = vst.msk [vmem:[#allocation2 + $0x111] sm:$0xff] %vm408_vm0, %v6515_v35  ;;  %v552_v49 = vpack.c.bf16 %v516_v46, %v516_v46  ;;  %v634_v51 = vunpack.c.l.b16 %v551_v47  ;;  %v6543_v54 = vpack.c.b16 %v637_v48, %v636_v45 }
  0x99   : > { %8779 = vst [vmem:[#allocation22_spill] sm:$0xff] %v6530_v39  ;;  %v501_v50 = vld [vmem:[#allocation2 + $0x30] sm:$0xff] }
  0x9a   : > { %469 = vst.msk [vmem:[#allocation2 + $0x49] sm:$0xff] %vm408_vm0, %v6520_v36  ;;  %v537_v53 = vpack.c.bf16 %v501_v50, %v501_v50  ;;  %v635_v55 = vunpack.c.l.b16 %v552_v49  ;;  %5168 = vmatmul.msk.bf16.vlgmr.msra.gmra.mxu2 %vm408_vm0, %v6543_v54 }
  0x9b   : > { %8780 = vst [vmem:[#allocation23_spill] sm:$0xff] %v6535_v42  ;;  %v502_v52 = vld [vmem:[#allocation2 + $0x38] sm:$0xff] }
  0x9c   : > { %470 = vst.msk [vmem:[#allocation2 + $0x51] sm:$0xff] %vm408_vm0, %v6525_v37  ;;  %v538_v56 = vpack.c.bf16 %v502_v52, %v502_v52  ;;  %v620_v57 = vunpack.c.l.b16 %v537_v53  ;;  %v6547_v58 = vpack.c.b16 %v635_v55, %v634_v51  ;;  %v5864_v52 = vld [vmem:[%s8715_s1 + $0x88] sm:$0xff]  ;;  %v6633_v55 = vld [vmem:[%s6225_s25 + $0x50] sm:$0xff] }
  0x9d   : > { %487 = vst.msk [vmem:[#allocation2 + $0x121] sm:$0xff] %vm408_vm0, %v6530_v39  ;;  %v519_v60 = vld [vmem:[#allocation2 + $0x108] sm:$0xff]  ;;  %1511 = vmatpush.bf16.msrb.mxu0 %v5864_v52 }
  0x9e   : > { %488 = vst.msk [vmem:[#allocation2 + $0x129] sm:$0xff] %vm408_vm0, %v6535_v42  ;;  %v621_v59 = vunpack.c.l.b16 %v538_v56  ;;  %5200 = vmatmul.msk.bf16.vlgmr.msra.gmra.mxu3 %vm408_vm0, %v6547_v58  ;;  %v555_v3 = vpack.c.bf16 %v519_v60, %v519_v60  ;;  %v5856_v53 = vld [vmem:[%s8715_s1 + $0xc8] sm:$0xff]  ;;  %v6636_v56 = vld [vmem:[%s6225_s25 + $0x58] sm:$0xff] }
  0x9f   : > { %v520_v61 = vld [vmem:[#allocation2 + $0x110] sm:$0xff]  ;;  %8781 = vst [vmem:[#allocation24_spill] sm:$0xff] %v6557_v0  ;;  %995 = vmatpush.bf16.msrb.mxu2 %v5856_v53 }
  0xa0   : > { %v6551_v62 = vpack.c.b16 %v621_v59, %v620_v57  ;;  %8782 = vst [vmem:[#allocation25_spill] sm:$0xff] %v6560_v1  ;;  %v556_v5 = vpack.c.bf16 %v520_v61, %v520_v61  ;;  %v638_v10 = vunpack.c.l.b16 %v555_v3  ;;  %v6641_v57 = vld [vmem:[%s6225_s25 + $0xe0] sm:$0xff]  ;;  %v6644_v59 = vld [vmem:[%s6225_s25 + $0xe8] sm:$0xff] }
  0xa1   : > { %471 = vst.msk [vmem:[#allocation2 + $0x61] sm:$0xff] %vm408_vm0, %v6557_v0  ;;  %v503_v8 = vld [vmem:[#allocation2 + $0x48] sm:$0xff] }
  0xa2   : > { %8783 = vst [vmem:[#allocation26_spill] sm:$0xff] %v6565_v2  ;;  %5160 = vmatmul.msk.bf16.gmra.mxu0 %vm408_vm0, %v6551_v62  ;;  %5193 = vmatmul.msk.bf16.gmra.mxu1 %vm408_vm0, %v6551_v62  ;;  %v639_v11 = vunpack.c.l.b16 %v556_v5  ;;  %v539_v12 = vpack.c.bf16 %v503_v8, %v503_v8 }
  0xa3   : > { %472 = vst.msk [vmem:[#allocation2 + $0x69] sm:$0xff] %vm408_vm0, %v6560_v1  ;;  %v504_v9 = vld [vmem:[#allocation2 + $0x50] sm:$0xff] }
  0xa4   : > { %8784 = vst [vmem:[#allocation27_spill] sm:$0xff] %v6574_v7  ;;  %v540_v13 = vpack.c.bf16 %v504_v9, %v504_v9  ;;  %v6580_v14 = vpack.c.b16 %v639_v11, %v638_v10  ;;  %v622_v15 = vunpack.c.l.b16 %v539_v12  ;;  %v521_v18 = vld [vmem:[#allocation2 + $0x120] sm:$0xff] }
  0xa5   : > { %489 = vst.msk [vmem:[#allocation2 + $0x139] sm:$0xff] %vm408_vm0, %v6565_v2  ;;  %v522_v19 = vld [vmem:[#allocation2 + $0x128] sm:$0xff]  ;;  %v557_v31 = vpack.c.bf16 %v521_v18, %v521_v18 }
  0xa6   : > { %490 = vst.msk [vmem:[#allocation2 + $0x141] sm:$0xff] %vm408_vm0, %v6574_v7  ;;  %v623_v16 = vunpack.c.l.b16 %v540_v13  ;;  %v558_v32 = vpack.c.bf16 %v522_v19, %v522_v19  ;;  %v5860_v19 = vld [vmem:[%s8715_s1 + $0x28] sm:$0xff] }
  0xa7   : > { %8785 = vst [vmem:[#allocation28_spill] sm:$0xff] %v6595_v22  ;;  %v640_v41 = vunpack.c.l.b16 %v557_v31  ;;  %v6676_v31 = vld [vmem:[%s6225_s25 + $0xf0] sm:$0xff]  ;;  %1349 = vmatpush.bf16.msrb.mxu3 %v5860_v19 }
  0xa8   : > { %v6584_v17 = vpack.c.b16 %v623_v16, %v622_v15  ;;  %8786 = vst [vmem:[#allocation29_spill] sm:$0xff] %v6598_v23  ;;  %v505_v38 = vld [vmem:[#allocation2 + $0x60] sm:$0xff]  ;;  %v641_v43 = vunpack.c.l.b16 %v558_v32  ;;  %v6679_v32 = vld [vmem:[%s6225_s25 + $0xf8] sm:$0xff] }
  0xa9   : > { %473 = vst.msk [vmem:[#allocation2 + $0x79] sm:$0xff] %vm408_vm0, %v6595_v22  ;;  %v541_v44 = vpack.c.bf16 %v505_v38, %v505_v38 }
  0xaa   : > { %5169 = vmatmul.msk.bf16.gmra.mxu2 %vm408_vm0, %v6580_v14  ;;  %8787 = vst [vmem:[#allocation30_spill] sm:$0xff] %v6603_v24  ;;  %v506_v40 = vld [vmem:[#allocation2 + $0x68] sm:$0xff]  ;;  %v6618_v46 = vpack.c.b16 %v641_v43, %v640_v41 }
  0xab   : > { %8788 = vst [vmem:[#allocation31_spill] sm:$0xff] %v6606_v25  ;;  %v542_v45 = vpack.c.bf16 %v506_v40, %v506_v40  ;;  %v624_v47 = vunpack.c.l.b16 %v541_v44 }
  0xac   : > { %474 = vst.msk [vmem:[#allocation2 + $0x81] sm:$0xff] %vm408_vm0, %v6598_v23  ;;  %v523_v50 = vld [vmem:[#allocation2 + $0x138] sm:$0xff] }
  0xad   : > { %491 = vst.msk [vmem:[#allocation2 + $0x151] sm:$0xff] %vm408_vm0, %v6603_v24  ;;  %v625_v48 = vunpack.c.l.b16 %v542_v45  ;;  %v524_v51 = vld [vmem:[#allocation2 + $0x140] sm:$0xff]  ;;  %v559_v60 = vpack.c.bf16 %v523_v50, %v523_v50 }
  0xae   : > { %5201 = vmatmul.msk.bf16.gmra.mxu3 %vm408_vm0, %v6543_v54  ;;  %492 = vst.msk [vmem:[#allocation2 + $0x159] sm:$0xff] %vm408_vm0, %v6606_v25  ;;  %v560_v61 = vpack.c.bf16 %v524_v51, %v524_v51 }
  0xaf   : > { %v6622_v49 = vpack.c.b16 %v625_v48, %v624_v47  ;;  %8789 = vst [vmem:[#allocation32_spill] sm:$0xff] %v6633_v55  ;;  %v642_v5 = vunpack.c.l.b16 %v559_v60 }
  0xb0   : > { %8790 = vst [vmem:[#allocation33_spill] sm:$0xff] %v6636_v56  ;;  %v507_v63 = vld [vmem:[#allocation2 + $0x78] sm:$0xff]  ;;  %v643_v8 = vunpack.c.l.b16 %v560_v61 }
  0xb1   : > { %475 = vst.msk [vmem:[#allocation2 + $0x91] sm:$0xff] %vm408_vm0, %v6633_v55  ;;  %v543_v9 = vpack.c.bf16 %v507_v63, %v507_v63  ;;  %v5855_v63 = vld [vmem:[%s8715_s1 + $0xc0] sm:$0xff] }
  0xb2   : > { %5161 = vmatmul.msk.bf16.gmra.mxu0 %vm408_vm0, %v6584_v17  ;;  %5194 = vmatmul.msk.bf16.gmra.mxu1 %vm408_vm0, %v6584_v17  ;;  %8791 = vst [vmem:[#allocation34_spill] sm:$0xff] %v6641_v57  ;;  %v6656_v11 = vpack.c.b16 %v643_v8, %v642_v5  ;;  %v5863_v5 = vld [vmem:[%s8715_s1 + $0x80] sm:$0xff]  ;;  %v6709_v8 = vld [vmem:[%s6225_s25 + $0x70] sm:$0xff] }
  0xb3   : > { %8792 = vst [vmem:[#allocation35_spill] sm:$0xff] %v6644_v59  ;;  %v508_v3 = vld [vmem:[#allocation2 + $0x80] sm:$0xff]  ;;  %v626_v12 = vunpack.c.l.b16 %v543_v9  ;;  %v6712_v9 = vld [vmem:[%s6225_s25 + $0x78] sm:$0xff]  ;;  %996 = vmatpush.bf16.msrb.mxu2 %v5855_v63  ;;  %1512 = vmatpush.bf16.msrb.mxu0 %v5863_v5  ;;  %s6037_s25 = sshra.s32 %s5052_s20, 4  ;;  %s6038_s25 = int_to_ptr.hbm [resolvable:$true] %s6037_s25 }
  0xb4   : > { %476 = vst.msk [vmem:[#allocation2 + $0x99] sm:$0xff] %vm408_vm0, %v6636_v56  ;;  %v544_v10 = vpack.c.bf16 %v508_v3, %v508_v3  ;;  %v525_v16 = vld [vmem:[#allocation2 + $0x150] sm:$0xff]  ;;  %v5859_v3 = vld [vmem:[%s8715_s1 + $0x20] sm:$0xff]  ;;  %s6039_s26 = scalar_lea.hbm %s6038_s25, 256  ;;  %p6044_p3 = scmp.lt.s32.totalorder %s6038_s25, %s8724_s10 }
  0xb5   : > { %493 = vst.msk [vmem:[#allocation2 + $0x169] sm:$0xff] %vm408_vm0, %v6641_v57  ;;  %v526_v18 = vld [vmem:[#allocation2 + $0x158] sm:$0xff]  ;;  %v561_v38 = vpack.c.bf16 %v525_v16, %v525_v16  ;;  %1350 = vmatpush.bf16.msrb.mxu3 %v5859_v3  ;;  %v1121_v24 = vld [vmem:[#allocation2 + $0x81] sm:$0xff]  ;;  %p6040_p0 = scmp.ne.s32.totalorder %s6038_s25, %s6039_s26  ;;  %p6045_p4 = scmp.lt.s32.totalorder %s6043_s17, %s6039_s26 }
  0xb6   : > { %494 = vst.msk [vmem:[#allocation2 + $0x171] sm:$0xff] %vm408_vm0, %v6644_v59  ;;  %v627_v13 = vunpack.c.l.b16 %v544_v10  ;;  %v562_v40 = vpack.c.bf16 %v526_v18, %v526_v18  ;;  %v1157_v2 = vpack.c.bf16 %v1121_v24, %v1121_v24 }
  0xb7   : > { %8793 = vst [vmem:[#allocation36_spill] sm:$0xff] %v6668_v20  ;;  %v644_v44 = vunpack.c.l.b16 %v561_v38  ;;  %p6041_p1 = pnand %p6040_p0, %p6190_p5  ;;  %p6046_p7 = por %p6045_p4, %p6044_p3 }
  0xb8   : > { %v6660_v15 = vpack.c.b16 %v627_v13, %v626_v12  ;;  %8794 = vst [vmem:[#allocation37_spill] sm:$0xff] %v6671_v21  ;;  %v509_v41 = vld [vmem:[#allocation2 + $0x90] sm:$0xff]  ;;  %v645_v45 = vunpack.c.l.b16 %v562_v40 }
  0xb9   : > { %477 = vst.msk [vmem:[#allocation2 + $0xa9] sm:$0xff] %vm408_vm0, %v6668_v20  ;;  %v545_v47 = vpack.c.bf16 %v509_v41, %v509_v41  ;;  %p6042_p2 = pneg %p6041_p1 }
  0xba   : > { %5170 = vmatmul.msk.bf16.gmra.mxu2 %vm408_vm0, %v6618_v46  ;;  %8795 = vst [vmem:[#allocation38_spill] sm:$0xff] %v6676_v31  ;;  %v6691_v50 = vpack.c.b16 %v645_v45, %v644_v44 }
  0xbb   : > { %8796 = vst [vmem:[#allocation39_spill] sm:$0xff] %v6679_v32  ;;  %v510_v43 = vld [vmem:[#allocation2 + $0x98] sm:$0xff]  ;;  %v628_v51 = vunpack.c.l.b16 %v545_v47  ;;  %p6047_p8 = pnand %p6046_p7, %p6042_p2 }
  0xbc   : > { %478 = vst.msk [vmem:[#allocation2 + $0xb1] sm:$0xff] %vm408_vm0, %v6671_v21  ;;  %v546_v48 = vpack.c.bf16 %v510_v43, %v510_v43  ;;  %v527_v60 = vld [vmem:[#allocation2 + $0x168] sm:$0xff] }
  0xbd   : > { %495 = vst.msk [vmem:[#allocation2 + $0x181] sm:$0xff] %vm408_vm0, %v6676_v31  ;;  %v528_v61 = vld [vmem:[#allocation2 + $0x170] sm:$0xff]  ;;  %v563_v10 = vpack.c.bf16 %v527_v60, %v527_v60 }
  0xbe   : > { %5202 = vmatmul.msk.bf16.gmra.mxu3 %vm408_vm0, %v6580_v14  ;;  %496 = vst.msk [vmem:[#allocation2 + $0x189] sm:$0xff] %vm408_vm0, %v6679_v32  ;;  %v629_v52 = vunpack.c.l.b16 %v546_v48  ;;  %v564_v12 = vpack.c.bf16 %v528_v61, %v528_v61 }
  0xbf   : > { %8797 = vst [vmem:[#allocation40_spill] sm:$0xff] %v6709_v8  ;;  %v646_v18 = vunpack.c.l.b16 %v563_v10 }
  0xc0   : > { %v6695_v53 = vpack.c.b16 %v629_v52, %v628_v51  ;;  %8798 = vst [vmem:[#allocation41_spill] sm:$0xff] %v6712_v9  ;;  %v511_v13 = vld [vmem:[#allocation2 + $0xa8] sm:$0xff]  ;;  %v647_v19 = vunpack.c.l.b16 %v564_v12  ;;  %v747_v12 = vpop.f32.mrf.mxu0 }
  0xc1   : > { %479 = vst.msk [vmem:[#allocation2 + $0xc1] sm:$0xff] %vm408_vm0, %v6709_v8  ;;  %v547_v38 = vpack.c.bf16 %v511_v13, %v511_v13  ;;  %v1129_v8 = vld [vmem:[#allocation2 + $0xe1] sm:$0xff] }
  0xc2   : > { %5162 = vmatmul.msk.bf16.gmra.mxu0 %vm408_vm0, %v6622_v49  ;;  %5195 = vmatmul.msk.bf16.gmra.mxu1 %vm408_vm0, %v6622_v49  ;;  %480 = vst.msk [vmem:[#allocation2 + $0xc9] sm:$0xff] %vm408_vm0, %v6712_v9  ;;  %v6722_v41 = vpack.c.b16 %v647_v19, %v646_v18  ;;  %v868_v19 = vpop.f32.mrf.mxu1  ;;  %v1165_v20 = vpack.c.bf16 %v1129_v8, %v1129_v8 }
  0xc3   : > { %v512_v16 = vld [vmem:[#allocation2 + $0xb0] sm:$0xff]  ;;  %v630_v43 = vunpack.c.l.b16 %v547_v38  ;;  %v6736_v38 = vadd.f32 %v868_v19, %v747_v12 }
  0xc4   : > { %v548_v40 = vpack.c.bf16 %v512_v16, %v512_v16  ;;  %v529_v47 = vld [vmem:[#allocation2 + $0x180] sm:$0xff]  ;;  %v1114_v12 = vld [vmem:[#allocation2 + $0x31] sm:$0xff] }
  0xc5   : > { %v530_v48 = vld [vmem:[#allocation2 + $0x188] sm:$0xff]  ;;  %v565_v51 = vpack.c.bf16 %v529_v47, %v529_v47  ;;  %v5870_v47 = vld [vmem:[%s8715_s1 + $0xf8] sm:$0xff] }
  0xc6   : > { %v631_v44 = vunpack.c.l.b16 %v548_v40  ;;  %v566_v52 = vpack.c.bf16 %v530_v48, %v530_v48  ;;  %1671 = vmatpush.bf16.msrb.mxu1 %v5870_v47  ;;  %v5867_v47 = vld [vmem:[%s8715_s1 + $0xe0] sm:$0xff] }
  0xc7   : > { %v648_v63 = vunpack.c.l.b16 %v565_v51 }
  0xc8   : > { %v6726_v45 = vpack.c.b16 %v631_v44, %v630_v43  ;;  %v513_v60 = vld [vmem:[#allocation2 + $0xc0] sm:$0xff]  ;;  %v649_v3 = vunpack.c.l.b16 %v566_v52  ;;  %v1111_v44 = vld [vmem:[#allocation2 + $0x9] sm:$0xff] }
  0xc9   : > { %v514_v61 = vld [vmem:[#allocation2 + $0xc8] sm:$0xff]  ;;  %v549_v5 = vpack.c.bf16 %v513_v60, %v513_v60  ;;  %v1147_v51 = vpack.c.bf16 %v1111_v44, %v1111_v44  ;;  %v5874_v60 = vld [vmem:[%s8715_s1 + $0x58] sm:$0xff] }
  0xca   : > { %5171 = vmatmul.msk.bf16.gmra.mxu2 %vm408_vm0, %v6656_v11  ;;  %v550_v10 = vpack.c.bf16 %v514_v61, %v514_v61  ;;  %v6734_v13 = vpack.c.b16 %v649_v3, %v648_v63  ;;  %v1110_v43 = vld [vmem:[#allocation2 + $0x1] sm:$0xff]  ;;  %v6751_v52 = vpop.f32.mrf.mxu1  ;;  %v5869_v61 = vld [vmem:[%s8715_s1 + $0xf0] sm:$0xff]  ;;  %v5878_v63 = vld [vmem:[%s8715_s1 + $0xb8] sm:$0xff] }
  0xcb   : > { %v632_v16 = vunpack.c.l.b16 %v549_v5  ;;  %v1146_v48 = vpack.c.bf16 %v1110_v43, %v1110_v43  ;;  %2025 = vmatpush.bf16.msra.mxu2 %v5874_v60  ;;  %2187 = vmatpush.bf16.msra.mxu3 %v5878_v63  ;;  %v1224_v5 = vunpack.c.l.b16 %v1147_v51  ;;  %v5882_v51 = vld [vmem:[%s8715_s1 + $0x118] sm:$0xff]  ;;  %v1127_v29 = vld [vmem:[#allocation2 + $0xc9] sm:$0xff] }
  0xcc   : > { %v633_v18 = vunpack.c.l.b16 %v550_v10  ;;  %1672 = vmatpush.bf16.msrb.mxu1 %v5869_v61  ;;  %v5868_v10 = vld [vmem:[%s8715_s1 + $0xe8] sm:$0xff]  ;;  %v1112_v61 = vld [vmem:[#allocation2 + $0x19] sm:$0xff]  ;;  %2349 = vmatpush.bf16.msra.mxu0 %v5882_v51  ;;  %v1163_v9 = vpack.c.bf16 %v1127_v29, %v1127_v29 }
  0xcd   : > { %v1223_v3 = vunpack.c.l.b16 %v1146_v48 }
  0xce   : > { %5203 = vmatmul.msk.bf16.gmra.mxu3 %vm408_vm0, %v6618_v46  ;;  %v6740_v40 = vpack.c.b16 %v633_v18, %v632_v16  ;;  %v1115_v16 = vld [vmem:[#allocation2 + $0x39] sm:$0xff]  ;;  %v1150_v18 = vpack.c.bf16 %v1114_v12, %v1114_v12  ;;  %v6777_v12 = vpop.f32.mrf.mxu0 }
  0xcf   : > { %v1151_v19 = vpack.c.bf16 %v1115_v16, %v1115_v16  ;;  %v1255_v43 = vpack.c.b16 %v1224_v5, %v1223_v3  ;;  %v1113_v3 = vld [vmem:[#allocation2 + $0x21] sm:$0xff]  ;;  %v1148_v5 = vpack.c.bf16 %v1112_v61, %v1112_v61 }
  0xd0   : > { %1673 = vmatpush.bf16.msrb.mxu1 %v5868_v10  ;;  %v1227_v60 = vunpack.c.l.b16 %v1150_v18  ;;  %v1149_v10 = vpack.c.bf16 %v1113_v3, %v1113_v3 }
  0xd1   : > { %v1228_v63 = vunpack.c.l.b16 %v1151_v19  ;;  %v1225_v16 = vunpack.c.l.b16 %v1148_v5  ;;  %v1116_v19 = vld [vmem:[#allocation2 + $0x49] sm:$0xff] }
  0xd2   : > { %5163 = vmatmul.msk.bf16.gmra.mxu0 %vm408_vm0, %v6660_v15  ;;  %5196 = vmatmul.msk.bf16.gmra.mxu1 %vm408_vm0, %v6660_v15  ;;  %v873_v44 = vpop.f32.mrf.mxu1  ;;  %v1226_v18 = vunpack.c.l.b16 %v1149_v10 }
  0xd3   : > { %v1257_v48 = vpack.c.b16 %v1228_v63, %v1227_v60 }
  0xd4   : > { %1674 = vmatpush.bf16.msrb.mxu1 %v5867_v47  ;;  %v1152_v47 = vpack.c.bf16 %v1116_v19, %v1116_v19  ;;  %v1256_v63 = vpack.c.b16 %v1226_v18, %v1225_v16 }
  0xd6   : > { %v1229_v32 = vunpack.c.l.b16 %v1152_v47  ;;  %v1119_v47 = vld [vmem:[#allocation2 + $0x69] sm:$0xff] }
  0xd7   : > { %v1155_v25 = vpack.c.bf16 %v1119_v47, %v1119_v47 }
  0xda   : > { %5172 = vmatmul.msk.bf16.gmra.mxu2 %vm408_vm0, %v6691_v50 }
  0xde   : > { %5204 = vmatmul.msk.bf16.gmra.mxu3 %vm408_vm0, %v6656_v11 }
  0xe2   : > { %5164 = vmatmul.msk.bf16.gmra.mxu0 %vm408_vm0, %v6695_v53  ;;  %5197 = vmatmul.msk.bf16.gmra.mxu1 %vm408_vm0, %v6695_v53 }
  0xea   : > { %5173 = vmatmul.msk.bf16.gmra.mxu2 %vm408_vm0, %v6722_v41 }
  0xee   : > { %5205 = vmatmul.msk.bf16.gmra.mxu3 %vm408_vm0, %v6691_v50 }
  0xf2   : > { %5165 = vmatmul.msk.bf16.gmra.mxu0 %vm408_vm0, %v6726_v45  ;;  %5198 = vmatmul.msk.bf16.gmra.mxu1 %vm408_vm0, %v6726_v45 }
  0xfa   : > { %5174 = vmatmul.msk.bf16.gmra.mxu2 %vm408_vm0, %v6734_v13 }
  0xfe   : > { %5206 = vmatmul.msk.bf16.gmra.mxu3 %vm408_vm0, %v6722_v41 }
 0x102   : > { %5166 = vmatmul.msk.bf16.gmra.mxu0 %vm408_vm0, %v6740_v40  ;;  %5199 = vmatmul.msk.bf16.gmra.mxu1 %vm408_vm0, %v6740_v40 }
 0x10a   : > { %5231 = vmatmul.msk.bf16.vlgmr.msrb.gmra.mxu2 %vm408_vm0, %v6551_v62  ;;  %v875_v62 = vpop.f32.mrf.mxu1 }
 0x10e   : > { %5271 = vmatmul.msk.bf16.vlgmr.msrb.gmra.mxu3 %vm408_vm0, %v1255_v43  ;;  %v1117_v43 = vld [vmem:[#allocation2 + $0x51] sm:$0xff] }
 0x10f   : > { %v1153_v60 = vpack.c.bf16 %v1117_v43, %v1117_v43  ;;  %v1118_v43 = vld [vmem:[#allocation2 + $0x61] sm:$0xff] }
 0x111   : > { %v1230_v31 = vunpack.c.l.b16 %v1153_v60  ;;  %v1154_v60 = vpack.c.bf16 %v1118_v43, %v1118_v43 }
 0x112   : > { %5167 = vmatmul.msk.bf16.gmra.mxu0 %vm408_vm0, %v6547_v58  ;;  %5351 = vmatmul.msk.bf16.vlgmr.msrb.gmra.mxu1 %vm408_vm0, %v1257_v48 }
 0x113   : > { %v1258_v61 = vpack.c.b16 %v1230_v31, %v1229_v32  ;;  %v1231_v31 = vunpack.c.l.b16 %v1154_v60  ;;  %v1232_v32 = vunpack.c.l.b16 %v1155_v25 }
 0x11a   : > { %5232 = vmatmul.msk.bf16.gmra.mxu2 %vm408_vm0, %v6584_v17 }
 0x11d   : > { %v792_v3 = vpop.f32.mrf.mxu2 }
 0x11e   : > { %5272 = vmatmul.msk.bf16.gmra.mxu3 %vm408_vm0, %v1256_v63 }
 0x11f   : > { %v752_v59 = vpop.f32.mrf.mxu0  ;;  %v878_v57 = vpop.f32.mrf.mxu1 }
 0x120   : > { %v6782_v51 = vadd.f32 %v873_v44, %v752_v59 }
 0x121   : > { %v913_v5 = vpop.f32.mrf.mxu3 }
 0x122   : > { %5311 = vmatmul.msk.bf16.vlgmr.msrb.gmra.mxu0 %vm408_vm0, %v1256_v63  ;;  %5352 = vmatmul.msk.bf16.gmra.mxu1 %vm408_vm0, %v1258_v61  ;;  %v6786_v10 = vadd.f32 %v913_v5, %v792_v3 }
 0x125   : > { %v794_v17 = vpop.f32.mrf.mxu2 }
 0x127   : > { %v754_v16 = vpop.f32.mrf.mxu0  ;;  %v880_v18 = vpop.f32.mrf.mxu1 }
 0x128   : > { %v6788_v19 = vadd.f32 %v875_v62, %v754_v16  ;;  %v1259_v62 = vpack.c.b16 %v1232_v32, %v1231_v31  ;;  %v1234_v32 = vunpack.c.l.b16 %v1157_v2  ;;  %v5873_v2 = vld [vmem:[%s8715_s1 + $0x50] sm:$0xff] }
 0x129   : > { %v915_v59 = vpop.f32.mrf.mxu3  ;;  %2026 = vmatpush.bf16.msra.mxu2 %v5873_v2 }
 0x12a   : > { %v6790_v44 = vadd.f32 %v915_v59, %v794_v17  ;;  %5233 = vmatmul.msk.bf16.gmra.mxu2 %vm408_vm0, %v6622_v49  ;;  %v1120_v59 = vld [vmem:[#allocation2 + $0x79] sm:$0xff] }
 0x12b   : > { %v1156_v7 = vpack.c.bf16 %v1120_v59, %v1120_v59 }
 0x12d   : > { %v797_v16 = vpop.f32.mrf.mxu2  ;;  %v1233_v31 = vunpack.c.l.b16 %v1156_v7  ;;  %v5877_v7 = vld [vmem:[%s8715_s1 + $0xb0] sm:$0xff] }
 0x12e   : > { %5273 = vmatmul.msk.bf16.gmra.mxu3 %vm408_vm0, %v1257_v48 }
 0x12f   : > { %v757_v63 = vpop.f32.mrf.mxu0  ;;  %v883_v3 = vpop.f32.mrf.mxu1  ;;  %2188 = vmatpush.bf16.msra.mxu3 %v5877_v7 }
 0x130   : > { %v6795_v5 = vadd.f32 %v878_v57, %v757_v63 }
 0x131   : > { %v918_v43 = vpop.f32.mrf.mxu3 }
 0x132   : > { %5312 = vmatmul.msk.bf16.gmra.mxu0 %vm408_vm0, %v1257_v48  ;;  %5353 = vmatmul.msk.bf16.gmra.mxu1 %vm408_vm0, %v1259_v62  ;;  %v6799_v17 = vadd.f32 %v918_v43, %v797_v16 }
 0x135   : > { %v799_v49 = vpop.f32.mrf.mxu2 }
 0x137   : > { %v759_v47 = vpop.f32.mrf.mxu0  ;;  %v885_v25 = vpop.f32.mrf.mxu1 }
 0x138   : > { %v6801_v60 = vadd.f32 %v880_v18, %v759_v47  ;;  %v1260_v18 = vpack.c.b16 %v1234_v32, %v1233_v31  ;;  %v1123_v31 = vld [vmem:[#allocation2 + $0x99] sm:$0xff] }
 0x139   : > { %v920_v57 = vpop.f32.mrf.mxu3 }
 0x13a   : > { %v6803_v63 = vadd.f32 %v920_v57, %v799_v49  ;;  %5234 = vmatmul.msk.bf16.gmra.mxu2 %vm408_vm0, %v6660_v15  ;;  %v1122_v57 = vld [vmem:[#allocation2 + $0x91] sm:$0xff] }
 0x13b   : > { %v1158_v32 = vpack.c.bf16 %v1122_v57, %v1122_v57 }
 0x13d   : > { %v802_v47 = vpop.f32.mrf.mxu2  ;;  %v1235_v42 = vunpack.c.l.b16 %v1158_v32 }
 0x13e   : > { %5274 = vmatmul.msk.bf16.gmra.mxu3 %vm408_vm0, %v1258_v61 }
 0x13f   : > { %v762_v48 = vpop.f32.mrf.mxu0  ;;  %v888_v16 = vpop.f32.mrf.mxu1 }
 0x140   : > { %v6808_v43 = vadd.f32 %v883_v3, %v762_v48  ;;  %v1159_v48 = vpack.c.bf16 %v1123_v31, %v1123_v31 }
 0x141   : > { %v923_v24 = vpop.f32.mrf.mxu3 }
 0x142   : > { %5313 = vmatmul.msk.bf16.gmra.mxu0 %vm408_vm0, %v1258_v61  ;;  %5354 = vmatmul.msk.bf16.gmra.mxu1 %vm408_vm0, %v1260_v18  ;;  %v6812_v49 = vadd.f32 %v923_v24, %v802_v47  ;;  %v1236_v39 = vunpack.c.l.b16 %v1159_v48 }
 0x145   : > { %v804_v61 = vpop.f32.mrf.mxu2 }
 0x147   : > { %v764_v15 = vpop.f32.mrf.mxu0  ;;  %v890_v3 = vpop.f32.mrf.mxu1 }
 0x148   : > { %v6820_v59 = vadd.f32 %v885_v25, %v764_v15  ;;  %v1261_v25 = vpack.c.b16 %v1236_v39, %v1235_v42  ;;  %v5881_v15 = vld [vmem:[%s8715_s1 + $0x110] sm:$0xff] }
 0x149   : > { %v925_v47 = vpop.f32.mrf.mxu3  ;;  %2350 = vmatpush.bf16.msra.mxu0 %v5881_v15  ;;  %v1125_v39 = vld [vmem:[#allocation2 + $0xb1] sm:$0xff] }
 0x14a   : > { %v6822_v24 = vadd.f32 %v925_v47, %v804_v61  ;;  %5235 = vmatmul.msk.bf16.gmra.mxu2 %vm408_vm0, %v6695_v53  ;;  %v1161_v47 = vpack.c.bf16 %v1125_v39, %v1125_v39 }
 0x14d   : > { %v807_v57 = vpop.f32.mrf.mxu2 }
 0x14e   : > { %5275 = vmatmul.msk.bf16.gmra.mxu3 %vm408_vm0, %v1259_v62 }
 0x14f   : > { %v767_v35 = vpop.f32.mrf.mxu0  ;;  %v893_v2 = vpop.f32.mrf.mxu1 }
 0x150   : > { %v6827_v7 = vadd.f32 %v888_v16, %v767_v35  ;;  %v1124_v16 = vld [vmem:[#allocation2 + $0xa9] sm:$0xff] }
 0x151   : > { %v928_v61 = vpop.f32.mrf.mxu3  ;;  %v1160_v42 = vpack.c.bf16 %v1124_v16, %v1124_v16 }
 0x152   : > { %5314 = vmatmul.msk.bf16.gmra.mxu0 %vm408_vm0, %v1259_v62  ;;  %5355 = vmatmul.msk.bf16.gmra.mxu1 %vm408_vm0, %v1261_v25  ;;  %v6834_v31 = vadd.f32 %v928_v61, %v807_v57  ;;  %v1238_v62 = vunpack.c.l.b16 %v1161_v47  ;;  %v1126_v47 = vld [vmem:[#allocation2 + $0xc1] sm:$0xff] }
 0x153   : > { %v1237_v26 = vunpack.c.l.b16 %v1160_v42  ;;  %v1162_v28 = vpack.c.bf16 %v1126_v47, %v1126_v47 }
 0x155   : > { %v809_v35 = vpop.f32.mrf.mxu2 }
 0x157   : > { %v769_v53 = vpop.f32.mrf.mxu0  ;;  %v895_v32 = vpop.f32.mrf.mxu1 }
 0x158   : > { %v6836_v48 = vadd.f32 %v890_v3, %v769_v53  ;;  %v1262_v3 = vpack.c.b16 %v1238_v62, %v1237_v26  ;;  %v1239_v26 = vunpack.c.l.b16 %v1162_v28  ;;  %v1240_v62 = vunpack.c.l.b16 %v1163_v9 }
 0x159   : > { %v930_v34 = vpop.f32.mrf.mxu3 }
 0x15a   : > { %v6838_v27 = vadd.f32 %v930_v34, %v809_v35  ;;  %5236 = vmatmul.msk.bf16.gmra.mxu2 %vm408_vm0, %v6726_v45 }
 0x15d   : > { %v812_v53 = vpop.f32.mrf.mxu2 }
 0x15e   : > { %5276 = vmatmul.msk.bf16.gmra.mxu3 %vm408_vm0, %v1260_v18 }
 0x15f   : > { %v772_v15 = vpop.f32.mrf.mxu0  ;;  %v898_v57 = vpop.f32.mrf.mxu1 }
 0x160   : > { %v6843_v61 = vadd.f32 %v893_v2, %v772_v15 }
 0x161   : > { %v933_v16 = vpop.f32.mrf.mxu3 }
 0x162   : > { %5315 = vmatmul.msk.bf16.gmra.mxu0 %vm408_vm0, %v1260_v18  ;;  %5356 = vmatmul.msk.bf16.gmra.mxu1 %vm408_vm0, %v1262_v3  ;;  %v6847_v34 = vadd.f32 %v933_v16, %v812_v53 }
 0x165   : > { %v814_v45 = vpop.f32.mrf.mxu2 }
 0x167   : > { %v774_v35 = vpop.f32.mrf.mxu0  ;;  %v900_v39 = vpop.f32.mrf.mxu1 }
 0x168   : > { %v6849_v42 = vadd.f32 %v895_v32, %v774_v35  ;;  %v1263_v32 = vpack.c.b16 %v1240_v62, %v1239_v26  ;;  %v1242_v62 = vunpack.c.l.b16 %v1165_v20  ;;  %v5872_v20 = vld [vmem:[%s8715_s1 + $0x48] sm:$0xff] }
 0x169   : > { %v935_v2 = vpop.f32.mrf.mxu3  ;;  %2027 = vmatpush.bf16.msra.mxu2 %v5872_v20 }
 0x16a   : > { %v6851_v15 = vadd.f32 %v935_v2, %v814_v45  ;;  %5237 = vmatmul.msk.bf16.gmra.mxu2 %vm408_vm0, %v6740_v40  ;;  %v1128_v2 = vld [vmem:[#allocation2 + $0xd9] sm:$0xff] }
 0x16b   : > { %v1164_v21 = vpack.c.bf16 %v1128_v2, %v1128_v2 }
 0x16d   : > { %v817_v35 = vpop.f32.mrf.mxu2  ;;  %v1241_v26 = vunpack.c.l.b16 %v1164_v21 }
 0x16e   : > { %5277 = vmatmul.msk.bf16.gmra.mxu3 %vm408_vm0, %v1261_v25 }
 0x16f   : > { %v777_v18 = vpop.f32.mrf.mxu0  ;;  %v903_v53 = vpop.f32.mrf.mxu1 }
 0x170   : > { %v6856_v16 = vadd.f32 %v898_v57, %v777_v18 }
 0x171   : > { %v938_v29 = vpop.f32.mrf.mxu3 }
 0x172   : > { %5316 = vmatmul.msk.bf16.gmra.mxu0 %vm408_vm0, %v1261_v25  ;;  %5357 = vmatmul.msk.bf16.gmra.mxu1 %vm408_vm0, %v1263_v32  ;;  %v6860_v45 = vadd.f32 %v938_v29, %v817_v35 }
 0x175   : > { %v819_v40 = vpop.f32.mrf.mxu2 }
 0x177   : > { %v779_v28 = vpop.f32.mrf.mxu0  ;;  %v905_v9 = vpop.f32.mrf.mxu1 }
 0x178   : > { %v6862_v47 = vadd.f32 %v900_v39, %v779_v28  ;;  %v1264_v39 = vpack.c.b16 %v1242_v62, %v1241_v26  ;;  %v1131_v26 = vld [vmem:[#allocation2 + $0xf9] sm:$0xff] }
 0x179   : > { %v940_v57 = vpop.f32.mrf.mxu3 }
 0x17a   : > { %v6864_v18 = vadd.f32 %v940_v57, %v819_v40  ;;  %5238 = vmatmul.msk.bf16.gmra.mxu2 %vm408_vm0, %v6547_v58  ;;  %v5876_v58 = vld [vmem:[%s8715_s1 + $0xa8] sm:$0xff]  ;;  %v1130_v57 = vld [vmem:[#allocation2 + $0xf1] sm:$0xff] }
 0x17b   : > { %2189 = vmatpush.bf16.msra.mxu3 %v5876_v58  ;;  %v1166_v62 = vpack.c.bf16 %v1130_v57, %v1130_v57 }
 0x17d   : > { %v822_v28 = vpop.f32.mrf.mxu2  ;;  %v1243_v56 = vunpack.c.l.b16 %v1166_v62 }
 0x17e   : > { %5278 = vmatmul.msk.bf16.gmra.mxu3 %vm408_vm0, %v1262_v3 }
 0x17f   : > { %v782_v25 = vpop.f32.mrf.mxu0  ;;  %v908_v35 = vpop.f32.mrf.mxu1 }
 0x180   : > { %v6869_v29 = vadd.f32 %v903_v53, %v782_v25  ;;  %v1167_v25 = vpack.c.bf16 %v1131_v26, %v1131_v26 }
 0x181   : > { %v943_v8 = vpop.f32.mrf.mxu3 }
 0x182   : > { %5317 = vmatmul.msk.bf16.gmra.mxu0 %vm408_vm0, %v1262_v3  ;;  %5358 = vmatmul.msk.bf16.gmra.mxu1 %vm408_vm0, %v1264_v39  ;;  %v6873_v40 = vadd.f32 %v943_v8, %v822_v28  ;;  %v1244_v55 = vunpack.c.l.b16 %v1167_v25 }
 0x185   : > { %v824_v3 = vpop.f32.mrf.mxu2 }
 0x187   : > { %v784_v21 = vpop.f32.mrf.mxu0  ;;  %v910_v53 = vpop.f32.mrf.mxu1 }
 0x188   : > { %v6881_v2 = vadd.f32 %v905_v9, %v784_v21  ;;  %v1265_v9 = vpack.c.b16 %v1244_v55, %v1243_v56  ;;  %v5880_v21 = vld [vmem:[%s8715_s1 + $0x108] sm:$0xff] }
 0x189   : > { %v945_v28 = vpop.f32.mrf.mxu3  ;;  %2351 = vmatpush.bf16.msra.mxu0 %v5880_v21 }
 0x18a   : > { %v6883_v8 = vadd.f32 %v945_v28, %v824_v3  ;;  %5239 = vmatmul.msk.bf16.gmra.mxu2 %vm408_vm0, %v6543_v54  ;;  %v1133_v28 = vld [vmem:[#allocation2 + $0x111] sm:$0xff] }
 0x18d   : > { %v998_v57 = vpop.f32.mrf.mxu2 }
 0x18e   : > { %5279 = vmatmul.msk.bf16.gmra.mxu3 %vm408_vm0, %v1263_v32  ;;  %v1078_v3 = vadd.f32 %v998_v57, %v6736_v38  ;;  %v1169_v38 = vpack.c.bf16 %v1133_v28, %v1133_v28  ;;  %v1134_v28 = vld [vmem:[#allocation2 + $0x121] sm:$0xff] }
 0x18f   : > { %v787_v23 = vpop.f32.mrf.mxu0  ;;  %v1676_v20 = vpop.f32.mrf.mxu1 }
 0x190   : > { %v6888_v58 = vadd.f32 %v908_v35, %v787_v23  ;;  %v871_v23 = vadd.f32 %v6751_v52, %v6777_v12  ;;  %v1132_v35 = vld [vmem:[#allocation2 + $0x109] sm:$0xff]  ;;  %v1246_v37 = vunpack.c.l.b16 %v1169_v38 }
 0x191   : > { %v1352_v26 = vpop.f32.mrf.mxu3  ;;  %v1168_v1 = vpack.c.bf16 %v1132_v35, %v1132_v35  ;;  %v1135_v38 = vld [vmem:[#allocation2 + $0x129] sm:$0xff] }
 0x192   : > { %5318 = vmatmul.msk.bf16.gmra.mxu0 %vm408_vm0, %v1263_v32  ;;  %5359 = vmatmul.msk.bf16.gmra.mxu1 %vm408_vm0, %v1265_v9  ;;  %v1432_v54 = vadd.f32 %v1352_v26, %v1078_v3 }
 0x193   : > { %v1245_v0 = vunpack.c.l.b16 %v1168_v1 }
 0x195   : > { %v1000_v56 = vpop.f32.mrf.mxu2  ;;  %v1266_v12 = vpack.c.b16 %v1246_v37, %v1245_v0  ;;  %v1170_v0 = vpack.c.bf16 %v1134_v28, %v1134_v28 }
 0x196   : > { %v1079_v22 = vadd.f32 %v1000_v56, %v871_v23 }
 0x197   : > { %v789_v62 = vpop.f32.mrf.mxu0  ;;  %v1678_v25 = vpop.f32.mrf.mxu1 }
 0x198   : > { %v6898_v55 = vadd.f32 %v910_v53, %v789_v62 }
 0x199   : > { %v1354_v57 = vpop.f32.mrf.mxu3 }
 0x19a   : > { %v1433_v32 = vadd.f32 %v1354_v57, %v1079_v22  ;;  %5240 = vmatmul.msk.bf16.gmra.mxu2 %vm408_vm0, %v6580_v14 }
 0x19d   : > { %v1003_v53 = vpop.f32.mrf.mxu2 }
 0x19e   : > { %5280 = vmatmul.msk.bf16.gmra.mxu3 %vm408_vm0, %v1264_v39  ;;  %v1080_v26 = vadd.f32 %v1003_v53, %v6782_v51  ;;  %v1171_v51 = vpack.c.bf16 %v1135_v38, %v1135_v38 }
 0x19f   : > { %v1514_v21 = vpop.f32.mrf.mxu0  ;;  %v1681_v3 = vpop.f32.mrf.mxu1 }
 0x1a0   : > { %v1594_v52 = vadd.f32 %v1514_v21, %v1432_v54  ;;  %v1247_v21 = vunpack.c.l.b16 %v1170_v0  ;;  %v1136_v0 = vld [vmem:[#allocation2 + $0x139] sm:$0xff] }
 0x1a1   : > { %v1357_v1 = vpop.f32.mrf.mxu3 }
 0x1a2   : > { %v6904_v62 = vadd.f32 %v1676_v20, %v1594_v52  ;;  %5319 = vmatmul.msk.bf16.gmra.mxu0 %vm408_vm0, %v1264_v39  ;;  %5360 = vmatmul.msk.bf16.gmra.mxu1 %vm408_vm0, %v1266_v12  ;;  %v1434_v22 = vadd.f32 %v1357_v1, %v1080_v26  ;;  %v5890_v39 = vld [vmem:[%s8718_s4 + $0x78] sm:$0xff]  ;;  %v1248_v52 = vunpack.c.l.b16 %v1171_v51 }
 0x1a3   : > { %2902 = vmatpush.bf16.msra.mxu1 %v5890_v39 }
 0x1a5   : > { %v1005_v35 = vpop.f32.mrf.mxu2 }
 0x1a6   : > { %v1081_v54 = vadd.f32 %v1005_v35, %v6788_v19 }
 0x1a7   : > { %v1516_v23 = vpop.f32.mrf.mxu0  ;;  %v1683_v56 = vpop.f32.mrf.mxu1 }
 0x1a8   : > { %v1595_v14 = vadd.f32 %v1516_v23, %v1433_v32 }
 0x1a9   : > { %v1359_v20 = vpop.f32.mrf.mxu3 }
 0x1aa   : > { %v6909_v37 = vadd.f32 %v1678_v25, %v1595_v14  ;;  %v1435_v57 = vadd.f32 %v1359_v20, %v1081_v54  ;;  %5241 = vmatmul.msk.bf16.gmra.mxu2 %vm408_vm0, %v6618_v46  ;;  %v6917_v25 = vpack.c.b16 %v1248_v52, %v1247_v21 }
 0x1ad   : > { %v1008_v26 = vpop.f32.mrf.mxu2 }
 0x1ae   : > { %5281 = vmatmul.msk.bf16.gmra.mxu3 %vm408_vm0, %v1265_v9  ;;  %v1082_v1 = vadd.f32 %v1008_v26, %v6795_v5  ;;  %v1172_v5 = vpack.c.bf16 %v1136_v0, %v1136_v0  ;;  %v1139_v0 = vld [vmem:[#allocation2 + $0x159] sm:$0xff] }
 0x1af   : > { %v1519_v32 = vpop.f32.mrf.mxu0  ;;  %v1686_v53 = vpop.f32.mrf.mxu1 }
 0x1b0   : > { %v1596_v19 = vadd.f32 %v1519_v32, %v1434_v22  ;;  %v1137_v22 = vld [vmem:[#allocation2 + $0x141] sm:$0xff] }
 0x1b1   : > { %v1362_v14 = vpop.f32.mrf.mxu3 }
 0x1b2   : > { %v6920_v23 = vadd.f32 %v1681_v3, %v1596_v19  ;;  %5320 = vmatmul.msk.bf16.gmra.mxu0 %vm408_vm0, %v1265_v9  ;;  %5361 = vmatmul.msk.bf16.gmra.mxu1 %vm408_vm0, %v6917_v25  ;;  %v1436_v46 = vadd.f32 %v1362_v14, %v1082_v1  ;;  %v1173_v3 = vpack.c.bf16 %v1137_v22, %v1137_v22  ;;  %v1249_v9 = vunpack.c.l.b16 %v1172_v5 }
 0x1b4   : > { %v1250_v52 = vunpack.c.l.b16 %v1173_v3  ;;  %v1175_v3 = vpack.c.bf16 %v1139_v0, %v1139_v0 }
 0x1b5   : > { %v1010_v54 = vpop.f32.mrf.mxu2 }
 0x1b6   : > { %v1083_v51 = vadd.f32 %v1010_v54, %v6801_v60  ;;  %v6931_v26 = vpack.c.b16 %v1250_v52, %v1249_v9 }
 0x1b7   : > { %v1521_v35 = vpop.f32.mrf.mxu0  ;;  %v1688_v28 = vpop.f32.mrf.mxu1 }
 0x1b8   : > { %v1597_v38 = vadd.f32 %v1521_v35, %v1435_v57 }
 0x1b9   : > { %v1364_v39 = vpop.f32.mrf.mxu3 }
 0x1ba   : > { %v6926_v20 = vadd.f32 %v1683_v56, %v1597_v38  ;;  %v1437_v21 = vadd.f32 %v1364_v39, %v1083_v51  ;;  %5242 = vmatmul.msk.bf16.gmra.mxu2 %vm408_vm0, %v6656_v11  ;;  %v5871_v11 = vld [vmem:[%s8715_s1 + $0x40] sm:$0xff] }
 0x1bb   : > { %2028 = vmatpush.bf16.msra.mxu2 %v5871_v11 }
 0x1bd   : > { %v1013_v1 = vpop.f32.mrf.mxu2 }
 0x1be   : > { %5282 = vmatmul.msk.bf16.gmra.mxu3 %vm408_vm0, %v1266_v12  ;;  %v1084_v60 = vadd.f32 %v1013_v1, %v6808_v43 }
 0x1bf   : > { %v1524_v32 = vpop.f32.mrf.mxu0  ;;  %v1691_v19 = vpop.f32.mrf.mxu1 }
 0x1c0   : > { %v1598_v57 = vadd.f32 %v1524_v32, %v1436_v46  ;;  %v5875_v46 = vld [vmem:[%s8715_s1 + $0xa0] sm:$0xff]  ;;  %v1252_v32 = vunpack.c.l.b16 %v1175_v3 }
 0x1c1   : > { %v1367_v14 = vpop.f32.mrf.mxu3  ;;  %2190 = vmatpush.bf16.msra.mxu3 %v5875_v46 }
 0x1c2   : > { %v6934_v56 = vadd.f32 %v1686_v53, %v1598_v57  ;;  %5321 = vmatmul.msk.bf16.gmra.mxu0 %vm408_vm0, %v1266_v12  ;;  %5362 = vmatmul.msk.bf16.gmra.mxu1 %vm408_vm0, %v6931_v26  ;;  %v1438_v35 = vadd.f32 %v1367_v14, %v1084_v60  ;;  %v1138_v12 = vld [vmem:[#allocation2 + $0x151] sm:$0xff] }
 0x1c3   : > { %v1174_v5 = vpack.c.bf16 %v1138_v12, %v1138_v12  ;;  %v1140_v12 = vld [vmem:[#allocation2 + $0x169] sm:$0xff] }
 0x1c5   : > { %v1015_v54 = vpop.f32.mrf.mxu2  ;;  %v1251_v52 = vunpack.c.l.b16 %v1174_v5  ;;  %v1176_v5 = vpack.c.bf16 %v1140_v12, %v1140_v12 }
 0x1c6   : > { %v1085_v22 = vadd.f32 %v1015_v54, %v6820_v59  ;;  %v5879_v59 = vld [vmem:[%s8715_s1 + $0x100] sm:$0xff] }
 0x1c7   : > { %v1526_v43 = vpop.f32.mrf.mxu0  ;;  %v1693_v53 = vpop.f32.mrf.mxu1  ;;  %v6952_v60 = vpack.c.b16 %v1252_v32, %v1251_v52  ;;  %2352 = vmatpush.bf16.msra.mxu0 %v5879_v59 }
 0x1c8   : > { %v1599_v38 = vadd.f32 %v1526_v43, %v1437_v21 }
 0x1c9   : > { %v1369_v39 = vpop.f32.mrf.mxu3 }
 0x1ca   : > { %v6946_v51 = vadd.f32 %v1688_v28, %v1599_v38  ;;  %v1439_v9 = vadd.f32 %v1369_v39, %v1085_v22  ;;  %5243 = vmatmul.msk.bf16.gmra.mxu2 %vm408_vm0, %v6691_v50  ;;  %v1253_v39 = vunpack.c.l.b16 %v1176_v5 }
 0x1cd   : > { %v1018_v28 = vpop.f32.mrf.mxu2 }
 0x1ce   : > { %5283 = vmatmul.msk.bf16.gmra.mxu3 %vm408_vm0, %v6917_v25  ;;  %v1086_v14 = vadd.f32 %v1018_v28, %v6827_v7 }
 0x1cf   : > { %v1529_v57 = vpop.f32.mrf.mxu0  ;;  %v1696_v1 = vpop.f32.mrf.mxu1 }
 0x1d0   : > { %v1600_v21 = vadd.f32 %v1529_v57, %v1438_v35 }
 0x1d1   : > { %v1372_v50 = vpop.f32.mrf.mxu3 }
 0x1d2   : > { %v6958_v11 = vadd.f32 %v1691_v19, %v1600_v21  ;;  %5322 = vmatmul.msk.bf16.gmra.mxu0 %vm408_vm0, %v6917_v25  ;;  %5363 = vmatmul.msk.bf16.gmra.mxu1 %vm408_vm0, %v6952_v60  ;;  %v1440_v35 = vadd.f32 %v1372_v50, %v1086_v14  ;;  %v1141_v19 = vld [vmem:[#allocation2 + $0x171] sm:$0xff] }
 0x1d3   : > { %v1177_v25 = vpack.c.bf16 %v1141_v19, %v1141_v19 }
 0x1d5   : > { %v1020_v54 = vpop.f32.mrf.mxu2  ;;  %v1254_v52 = vunpack.c.l.b16 %v1177_v25  ;;  %v531_v25 = vld [vmem:[#allocation2 + $0x198] sm:$0xff] }
 0x1d6   : > { %v1087_v0 = vadd.f32 %v1020_v54, %v6836_v48 }
 0x1d7   : > { %v1531_v46 = vpop.f32.mrf.mxu0  ;;  %v6964_v43 = vpop.f32.mrf.mxu1  ;;  %v6973_v21 = vpack.c.b16 %v1254_v52, %v1253_v39 }
 0x1d8   : > { %v1601_v38 = vadd.f32 %v1531_v46, %v1439_v9 }
 0x1d9   : > { %v1374_v22 = vpop.f32.mrf.mxu3 }
 0x1da   : > { %v6967_v7 = vadd.f32 %v1693_v53, %v1601_v38  ;;  %v1441_v3 = vadd.f32 %v1374_v22, %v1087_v0  ;;  %5244 = vmatmul.msk.bf16.gmra.mxu2 %vm408_vm0, %v6722_v41 }
 0x1dd   : > { %v1023_v48 = vpop.f32.mrf.mxu2 }
 0x1de   : > { %5284 = vmatmul.msk.bf16.gmra.mxu3 %vm408_vm0, %v6931_v26  ;;  %v1088_v53 = vadd.f32 %v1023_v48, %v6843_v61  ;;  %v1142_v61 = vld [vmem:[#allocation2 + $0x181] sm:$0xff] }
 0x1df   : > { %v1534_v32 = vpop.f32.mrf.mxu0  ;;  %v1701_v57 = vpop.f32.mrf.mxu1  ;;  %v1178_v0 = vpack.c.bf16 %v1142_v61, %v1142_v61 }
 0x1e0   : > { %v1602_v9 = vadd.f32 %v1534_v32, %v1440_v35 }
 0x1e1   : > { %v1377_v41 = vpop.f32.mrf.mxu3  ;;  %v1475_v22 = vunpack.c.l.b16 %v1178_v0 }
 0x1e2   : > { %v6976_v59 = vadd.f32 %v1696_v1, %v1602_v9  ;;  %5323 = vmatmul.msk.bf16.gmra.mxu0 %vm408_vm0, %v6931_v26  ;;  %5364 = vmatmul.msk.bf16.gmra.mxu1 %vm408_vm0, %v6973_v21  ;;  %v1442_v28 = vadd.f32 %v1377_v41, %v1088_v53  ;;  %v1143_v1 = vld [vmem:[#allocation2 + $0x189] sm:$0xff]  ;;  %v567_v41 = vpack.c.bf16 %v531_v25, %v531_v25 }
 0x1e3   : > { %v5889_v26 = vld [vmem:[%s8718_s4 + $0x70] sm:$0xff]  ;;  %v1179_v19 = vpack.c.bf16 %v1143_v1, %v1143_v1 }
 0x1e4   : > { %2903 = vmatpush.bf16.msra.mxu1 %v5889_v26 }
 0x1e5   : > { %v1025_v35 = vpop.f32.mrf.mxu2 }
 0x1e6   : > { %v1089_v38 = vadd.f32 %v1025_v35, %v6849_v42  ;;  %v1476_v42 = vunpack.c.l.b16 %v1179_v19  ;;  %v1144_v19 = vld [vmem:[#allocation2 + $0x199] sm:$0xff] }
 0x1e7   : > { %v1536_v14 = vpop.f32.mrf.mxu0  ;;  %v6982_v50 = vpop.f32.mrf.mxu1 }
 0x1e8   : > { %v6984_v46 = vadd.f32 %v1536_v14, %v1441_v3  ;;  %v532_v3 = vld [vmem:[#allocation2 + $0x1a0] sm:$0xff]  ;;  %v6994_v9 = vpack.c.b16 %v1476_v42, %v1475_v22 }
 0x1e9   : > { %v1379_v54 = vpop.f32.mrf.mxu3  ;;  %v1145_v22 = vld [vmem:[#allocation2 + $0x1a1] sm:$0xff] }
 0x1ea   : > { %v1443_v12 = vadd.f32 %v1379_v54, %v1089_v38  ;;  %5245 = vmatmul.msk.bf16.gmra.mxu2 %vm408_vm0, %v6734_v13  ;;  %v568_v13 = vpack.c.bf16 %v532_v3, %v532_v3  ;;  %v959_v38 = vunpack.c.l.b16 %v567_v41  ;;  %v1181_v25 = vpack.c.bf16 %v1145_v22, %v1145_v22 }
 0x1ec   : > { %v960_v54 = vunpack.c.l.b16 %v568_v13  ;;  %v1638_v41 = vunpack.c.l.b16 %v1181_v25  ;;  %v1790_v13 = vld [vmem:[#allocation2 + $0x1a] sm:$0xff] }
 0x1ed   : > { %v1028_v32 = vpop.f32.mrf.mxu2 }
 0x1ee   : > { %5285 = vmatmul.msk.bf16.gmra.mxu3 %vm408_vm0, %v6952_v60  ;;  %v1090_v48 = vadd.f32 %v1028_v32, %v6856_v16  ;;  %v961_v26 = vpack.c.b16 %v960_v54, %v959_v38  ;;  %v1789_v32 = vld [vmem:[#allocation2 + $0xa] sm:$0xff] }
 0x1ef   : > { %v1539_v5 = vpop.f32.mrf.mxu0  ;;  %v1706_v39 = vpop.f32.mrf.mxu1 }
 0x1f0   : > { %v1604_v52 = vadd.f32 %v1539_v5, %v1442_v28  ;;  %v1180_v5 = vpack.c.bf16 %v1144_v19, %v1144_v19  ;;  %v1826_v19 = vpack.c.bf16 %v1790_v13, %v1790_v13 }
 0x1f1   : > { %v1382_v14 = vpop.f32.mrf.mxu3 }
 0x1f2   : > { %v6997_v53 = vadd.f32 %v1701_v57, %v1604_v52  ;;  %5324 = vmatmul.msk.bf16.gmra.mxu0 %vm408_vm0, %v6952_v60  ;;  %5365 = vmatmul.msk.bf16.gmra.mxu1 %vm408_vm0, %v6994_v9  ;;  %v1444_v35 = vadd.f32 %v1382_v14, %v1090_v48  ;;  %v1637_v3 = vunpack.c.l.b16 %v1180_v5  ;;  %v1788_v52 = vld [vmem:[#allocation2 + $0x2] sm:$0xff] }
 0x1f3   : > { %v1791_v14 = vld [vmem:[#allocation2 + $0x22] sm:$0xff] }
 0x1f4   : > { %v1639_v38 = vpack.c.b16 %v1638_v41, %v1637_v3  ;;  %v1827_v22 = vpack.c.bf16 %v1791_v14, %v1791_v14  ;;  %v1903_v3 = vunpack.c.l.b16 %v1826_v19 }
 0x1f5   : > { %v1030_v16 = vpop.f32.mrf.mxu2 }
 0x1f6   : > { %v1091_v57 = vadd.f32 %v1030_v16, %v6862_v47  ;;  %v1824_v16 = vpack.c.bf16 %v1788_v52, %v1788_v52 }
 0x1f7   : > { %v1541_v28 = vpop.f32.mrf.mxu0  ;;  %v7003_v61 = vpop.f32.mrf.mxu1 }
 0x1f8   : > { %v7005_v1 = vadd.f32 %v1541_v28, %v1443_v12 }
 0x1f9   : > { %v1384_v0 = vpop.f32.mrf.mxu3 }
 0x1fa   : > { %v1445_v60 = vadd.f32 %v1384_v0, %v1091_v57  ;;  %5246 = vmatmul.msk.bf16.gmra.mxu2 %vm408_vm0, %v961_v26  ;;  %v1825_v57 = vpack.c.bf16 %v1789_v32, %v1789_v32 }
 0x1fc   : > { %v1902_v5 = vunpack.c.l.b16 %v1825_v57  ;;  %v1793_v57 = vld [vmem:[#allocation2 + $0x3a] sm:$0xff] }
 0x1fd   : > { %v1033_v47 = vpop.f32.mrf.mxu2 }
 0x1fe   : > { %5286 = vmatmul.msk.bf16.gmra.mxu3 %vm408_vm0, %v6973_v21  ;;  %v1092_v54 = vadd.f32 %v1033_v47, %v6869_v29  ;;  %v1904_v29 = vunpack.c.l.b16 %v1827_v22 }
 0x1ff   : > { %v1544_v42 = vpop.f32.mrf.mxu0  ;;  %v1711_v48 = vpop.f32.mrf.mxu1 }
 0x200   : > { %v1606_v12 = vadd.f32 %v1544_v42, %v1444_v35  ;;  %v1901_v35 = vunpack.c.l.b16 %v1824_v16  ;;  %v1934_v47 = vpack.c.b16 %v1904_v29, %v1903_v3  ;;  %v1792_v16 = vld [vmem:[#allocation2 + $0x32] sm:$0xff] }
 0x201   : > { %v1387_v26 = vpop.f32.mrf.mxu3  ;;  %v1828_v22 = vpack.c.bf16 %v1792_v16, %v1792_v16  ;;  %v1795_v16 = vld [vmem:[#allocation2 + $0x52] sm:$0xff] }
 0x202   : > { %v7012_v28 = vadd.f32 %v1706_v39, %v1606_v12  ;;  %5325 = vmatmul.msk.bf16.gmra.mxu0 %vm408_vm0, %v6973_v21  ;;  %5366 = vmatmul.msk.bf16.gmra.mxu1 %vm408_vm0, %v1639_v38  ;;  %v1446_v0 = vadd.f32 %v1387_v26, %v1092_v54  ;;  %v1933_v52 = vpack.c.b16 %v1902_v5, %v1901_v35 }
 0x203   : > { %v1829_v35 = vpack.c.bf16 %v1793_v57, %v1793_v57  ;;  %v1905_v3 = vunpack.c.l.b16 %v1828_v22  ;;  %v1831_v22 = vpack.c.bf16 %v1795_v16, %v1795_v16  ;;  %v1797_v16 = vld [vmem:[#allocation2 + $0x6a] sm:$0xff] }
 0x205   : > { %v1035_v41 = vpop.f32.mrf.mxu2  ;;  %v1906_v29 = vunpack.c.l.b16 %v1829_v35 }
 0x206   : > { %v1093_v21 = vadd.f32 %v1035_v41, %v6881_v2 }
 0x207   : > { %v1546_v25 = vpop.f32.mrf.mxu0  ;;  %v7017_v42 = vpop.f32.mrf.mxu1 }
 0x208   : > { %v7019_v39 = vadd.f32 %v1546_v25, %v1445_v60 }
 0x209   : > { %v1389_v32 = vpop.f32.mrf.mxu3 }
 0x20a   : > { %v1447_v12 = vadd.f32 %v1389_v32, %v1093_v21  ;;  %5391 = vmatmul.msk.bf16.vlgmr.msra.gmra.mxu2 %vm408_vm0, %v1933_v52  ;;  %v1935_v52 = vpack.c.b16 %v1906_v29, %v1905_v3  ;;  %v1908_v3 = vunpack.c.l.b16 %v1831_v22 }
 0x20d   : > { %v1038_v54 = vpop.f32.mrf.mxu2 }
 0x20e   : > { %5431 = vmatmul.msk.bf16.vlgmr.msra.gmra.mxu3 %vm408_vm0, %v1934_v47  ;;  %v1094_v60 = vadd.f32 %v1038_v54, %v6888_v58  ;;  %v1794_v54 = vld [vmem:[#allocation2 + $0x4a] sm:$0xff] }
 0x20f   : > { %v1549_v13 = vpop.f32.mrf.mxu0  ;;  %v1716_v14 = vpop.f32.mrf.mxu1 }
 0x210   : > { %v1608_v38 = vadd.f32 %v1549_v13, %v1446_v0 }
 0x211   : > { %v1392_v2 = vpop.f32.mrf.mxu3 }
 0x212   : > { %v7025_v26 = vadd.f32 %v1711_v48, %v1608_v38  ;;  %5326 = vmatmul.msk.bf16.gmra.mxu0 %vm408_vm0, %v6994_v9  ;;  %v1448_v19 = vadd.f32 %v1392_v2, %v1094_v60  ;;  %v1830_v2 = vpack.c.bf16 %v1794_v54, %v1794_v54  ;;  %v1796_v54 = vld [vmem:[#allocation2 + $0x62] sm:$0xff] }
 0x213   : > { %v1832_v22 = vpack.c.bf16 %v1796_v54, %v1796_v54 }
 0x215   : > { %v1040_v41 = vpop.f32.mrf.mxu2 }
 0x216   : > { %v1095_v21 = vadd.f32 %v1040_v41, %v6898_v55 }
 0x217   : > { %v1551_v5 = vpop.f32.mrf.mxu0  ;;  %v7029_v25 = vpop.f32.mrf.mxu1 }
 0x218   : > { %v7031_v0 = vadd.f32 %v1551_v5, %v1447_v12  ;;  %v1907_v5 = vunpack.c.l.b16 %v1830_v2 }
 0x219   : > { %v1394_v58 = vpop.f32.mrf.mxu3 }
 0x21a   : > { %v1449_v48 = vadd.f32 %v1394_v58, %v1095_v21  ;;  %5392 = vmatmul.msk.bf16.gmra.mxu2 %vm408_vm0, %v1934_v47  ;;  %v5888_v58 = vld [vmem:[%s8718_s4 + $0x68] sm:$0xff] }
 0x21b   : > { %2904 = vmatpush.bf16.msra.mxu1 %v5888_v58 }
 0x21d   : > { %v1043_v38 = vpop.f32.mrf.mxu2 }
 0x21e   : > { %5432 = vmatmul.msk.bf16.gmra.mxu3 %vm408_vm0, %v1935_v52  ;;  %v1096_v57 = vadd.f32 %v1043_v38, %v6786_v10 }
 0x21f   : > { %v1554_v9 = vpop.f32.mrf.mxu0  ;;  %v1721_v32 = vpop.f32.mrf.mxu1 }
 0x220   : > { %v1610_v13 = vadd.f32 %v1554_v9, %v1448_v19 }
 0x221   : > { %v1397_v55 = vpop.f32.mrf.mxu3 }
 0x222   : > { %v7037_v12 = vadd.f32 %v1716_v14, %v1610_v13  ;;  %5471 = vmatmul.msk.bf16.vlgmr.msra.gmra.mxu0 %vm408_vm0, %v1935_v52  ;;  %v1450_v60 = vadd.f32 %v1397_v55, %v1096_v57  ;;  %v1936_v14 = vpack.c.b16 %v1908_v3, %v1907_v5  ;;  %v1909_v3 = vunpack.c.l.b16 %v1832_v22 }
 0x225   : > { %v1045_v19 = vpop.f32.mrf.mxu2 }
 0x226   : > { %v1097_v41 = vadd.f32 %v1045_v19, %v6790_v44 }
 0x227   : > { %v1556_v35 = vpop.f32.mrf.mxu0  ;;  %v7040_v47 = vpop.f32.mrf.mxu1 }
 0x228   : > { %v7042_v29 = vadd.f32 %v1556_v35, %v1449_v48  ;;  %v1833_v35 = vpack.c.bf16 %v1797_v16, %v1797_v16  ;;  %v1798_v16 = vld [vmem:[#allocation2 + $0x7a] sm:$0xff] }
 0x229   : > { %v1399_v21 = vpop.f32.mrf.mxu3 }
 0x22a   : > { %v1451_v10 = vadd.f32 %v1399_v21, %v1097_v41  ;;  %5393 = vmatmul.msk.bf16.gmra.mxu2 %vm408_vm0, %v1935_v52  ;;  %v1910_v19 = vunpack.c.l.b16 %v1833_v35  ;;  %v1834_v35 = vpack.c.bf16 %v1798_v16, %v1798_v16 }
 0x22d   : > { %v1048_v48 = vpop.f32.mrf.mxu2 }
 0x22e   : > { %5433 = vmatmul.msk.bf16.gmra.mxu3 %vm408_vm0, %v1936_v14  ;;  %v1098_v44 = vadd.f32 %v1048_v48, %v6799_v17 }
 0x22f   : > { %v1559_v9 = vpop.f32.mrf.mxu0  ;;  %v1726_v13 = vpop.f32.mrf.mxu1 }
 0x230   : > { %v1612_v38 = vadd.f32 %v1559_v9, %v1450_v60 }
 0x231   : > { %v1402_v55 = vpop.f32.mrf.mxu3 }
 0x232   : > { %v7051_v57 = vadd.f32 %v1721_v32, %v1612_v38  ;;  %5472 = vmatmul.msk.bf16.gmra.mxu0 %vm408_vm0, %v1936_v14  ;;  %v1452_v2 = vadd.f32 %v1402_v55, %v1098_v44  ;;  %v1937_v32 = vpack.c.b16 %v1910_v19, %v1909_v3  ;;  %v1799_v44 = vld [vmem:[#allocation2 + $0x82] sm:$0xff] }
 0x235   : > { %v1050_v60 = vpop.f32.mrf.mxu2 }
 0x236   : > { %v1099_v21 = vadd.f32 %v1050_v60, %v6803_v63 }
 0x237   : > { %v1561_v52 = vpop.f32.mrf.mxu0  ;;  %v7054_v5 = vpop.f32.mrf.mxu1 }
 0x238   : > { %v7056_v41 = vadd.f32 %v1561_v52, %v1451_v10  ;;  %v1835_v52 = vpack.c.bf16 %v1799_v44, %v1799_v44  ;;  %v1800_v44 = vld [vmem:[#allocation2 + $0x92] sm:$0xff] }
 0x239   : > { %v1404_v58 = vpop.f32.mrf.mxu3 }
 0x23a   : > { %v1453_v17 = vadd.f32 %v1404_v58, %v1099_v21  ;;  %5394 = vmatmul.msk.bf16.gmra.mxu2 %vm408_vm0, %v1936_v14  ;;  %v1911_v14 = vunpack.c.l.b16 %v1834_v35  ;;  %v1912_v19 = vunpack.c.l.b16 %v1835_v52 }
 0x23d   : > { %v1053_v54 = vpop.f32.mrf.mxu2 }
 0x23e   : > { %5434 = vmatmul.msk.bf16.gmra.mxu3 %vm408_vm0, %v1937_v32  ;;  %v1100_v55 = vadd.f32 %v1053_v54, %v6812_v49 }
 0x23f   : > { %v1564_v9 = vpop.f32.mrf.mxu0  ;;  %v1731_v38 = vpop.f32.mrf.mxu1 }
 0x240   : > { %v1614_v48 = vadd.f32 %v1564_v9, %v1452_v2 }
 0x241   : > { %v1407_v63 = vpop.f32.mrf.mxu3 }
 0x242   : > { %v7062_v10 = vadd.f32 %v1726_v13, %v1614_v48  ;;  %5473 = vmatmul.msk.bf16.gmra.mxu0 %vm408_vm0, %v1937_v32  ;;  %v1454_v22 = vadd.f32 %v1407_v63, %v1100_v55  ;;  %v1938_v13 = vpack.c.b16 %v1912_v19, %v1911_v14  ;;  %v1801_v55 = vld [vmem:[#allocation2 + $0x9a] sm:$0xff] }
 0x243   : > { %v1837_v14 = vpack.c.bf16 %v1801_v55, %v1801_v55  ;;  %v1802_v55 = vld [vmem:[#allocation2 + $0xaa] sm:$0xff] }
 0x245   : > { %v1055_v21 = vpop.f32.mrf.mxu2 }
 0x246   : > { %v1101_v58 = vadd.f32 %v1055_v21, %v6822_v24  ;;  %v1914_v21 = vunpack.c.l.b16 %v1837_v14  ;;  %v1838_v14 = vpack.c.bf16 %v1802_v55, %v1802_v55 }
 0x247   : > { %v1566_v3 = vpop.f32.mrf.mxu0  ;;  %v7067_v2 = vpop.f32.mrf.mxu1 }
 0x248   : > { %v7065_v60 = vadd.f32 %v1566_v3, %v1453_v17  ;;  %v1836_v3 = vpack.c.bf16 %v1800_v44, %v1800_v44 }
 0x249   : > { %v1409_v9 = vpop.f32.mrf.mxu3 }
 0x24a   : > { %v1455_v49 = vadd.f32 %v1409_v9, %v1101_v58  ;;  %5395 = vmatmul.msk.bf16.gmra.mxu2 %vm408_vm0, %v1937_v32  ;;  %v1913_v32 = vunpack.c.l.b16 %v1836_v3 }
 0x24d   : > { %v1058_v16 = vpop.f32.mrf.mxu2 }
 0x24e   : > { %5435 = vmatmul.msk.bf16.gmra.mxu3 %vm408_vm0, %v1938_v13  ;;  %v1102_v17 = vadd.f32 %v1058_v16, %v6834_v31  ;;  %v1939_v31 = vpack.c.b16 %v1914_v21, %v1913_v32 }
 0x24f   : > { %v1569_v48 = vpop.f32.mrf.mxu0  ;;  %v1736_v24 = vpop.f32.mrf.mxu1 }
 0x250   : > { %v1616_v54 = vadd.f32 %v1569_v48, %v1454_v22 }
 0x251   : > { %v1412_v35 = vpop.f32.mrf.mxu3 }
 0x252   : > { %v7073_v63 = vadd.f32 %v1731_v38, %v1616_v54  ;;  %5474 = vmatmul.msk.bf16.gmra.mxu0 %vm408_vm0, %v1938_v13  ;;  %v1456_v52 = vadd.f32 %v1412_v35, %v1102_v17  ;;  %v1803_v17 = vld [vmem:[#allocation2 + $0xb2] sm:$0xff] }
 0x255   : > { %v1060_v22 = vpop.f32.mrf.mxu2 }
 0x256   : > { %v1103_v9 = vadd.f32 %v1060_v22, %v6838_v27 }
 0x257   : > { %v1571_v19 = vpop.f32.mrf.mxu0  ;;  %v7079_v38 = vpop.f32.mrf.mxu1 }
 0x258   : > { %v7076_v58 = vadd.f32 %v1571_v19, %v1455_v49  ;;  %v1839_v19 = vpack.c.bf16 %v1803_v17, %v1803_v17  ;;  %v1805_v17 = vld [vmem:[#allocation2 + $0xca] sm:$0xff] }
 0x259   : > { %v1414_v48 = vpop.f32.mrf.mxu3 }
 0x25a   : > { %v1457_v36 = vadd.f32 %v1414_v48, %v1103_v9  ;;  %5396 = vmatmul.msk.bf16.gmra.mxu2 %vm408_vm0, %v1938_v13  ;;  %v1915_v13 = vunpack.c.l.b16 %v1838_v14  ;;  %v1916_v22 = vunpack.c.l.b16 %v1839_v19 }
 0x25d   : > { %v1063_v44 = vpop.f32.mrf.mxu2 }
 0x25e   : > { %5436 = vmatmul.msk.bf16.gmra.mxu3 %vm408_vm0, %v1939_v31  ;;  %v1104_v49 = vadd.f32 %v1063_v44, %v6847_v34  ;;  %v1940_v34 = vpack.c.b16 %v1916_v22, %v1915_v13 }
 0x25f   : > { %v1574_v54 = vpop.f32.mrf.mxu0  ;;  %v1741_v21 = vpop.f32.mrf.mxu1 }
 0x260   : > { %v1618_v16 = vadd.f32 %v1574_v54, %v1456_v52 }
 0x261   : > { %v1417_v27 = vpop.f32.mrf.mxu3 }
 0x262   : > { %v7084_v35 = vadd.f32 %v1736_v24, %v1618_v16  ;;  %5475 = vmatmul.msk.bf16.gmra.mxu0 %vm408_vm0, %v1939_v31  ;;  %v1458_v3 = vadd.f32 %v1417_v27, %v1104_v49  ;;  %v5887_v24 = vld [vmem:[%s8718_s4 + $0x60] sm:$0xff] }
 0x263   : > { %2905 = vmatpush.bf16.msra.mxu1 %v5887_v24 }
 0x265   : > { %v1065_v52 = vpop.f32.mrf.mxu2 }
 0x266   : > { %v1105_v48 = vadd.f32 %v1065_v52, %v6851_v15 }
 0x267   : > { %v1576_v32 = vpop.f32.mrf.mxu0  ;;  %v7095_v49 = vpop.f32.mrf.mxu1 }
 0x268   : > { %v7087_v9 = vadd.f32 %v1576_v32, %v1457_v36  ;;  %v1804_v36 = vld [vmem:[#allocation2 + $0xc2] sm:$0xff] }
 0x269   : > { %v1419_v54 = vpop.f32.mrf.mxu3  ;;  %v1840_v32 = vpack.c.bf16 %v1804_v36, %v1804_v36  ;;  %v1806_v36 = vld [vmem:[#allocation2 + $0xda] sm:$0xff] }
 0x26a   : > { %v1459_v33 = vadd.f32 %v1419_v54, %v1105_v48  ;;  %5397 = vmatmul.msk.bf16.gmra.mxu2 %vm408_vm0, %v1939_v31  ;;  %v1841_v31 = vpack.c.bf16 %v1805_v17, %v1805_v17  ;;  %v1807_v17 = vld [vmem:[#allocation2 + $0xe2] sm:$0xff] }
 0x26b   : > { %v1917_v22 = vunpack.c.l.b16 %v1840_v32  ;;  %v1842_v32 = vpack.c.bf16 %v1806_v36, %v1806_v36 }
 0x26c   : > { %v1918_v52 = vunpack.c.l.b16 %v1841_v31  ;;  %v1843_v31 = vpack.c.bf16 %v1807_v17, %v1807_v17  ;;  %v1808_v17 = vld [vmem:[#allocation2 + $0xf2] sm:$0xff] }
 0x26d   : > { %v1068_v55 = vpop.f32.mrf.mxu2 }
 0x26e   : > { %5437 = vmatmul.msk.bf16.gmra.mxu3 %vm408_vm0, %v1940_v34  ;;  %v1106_v15 = vadd.f32 %v1068_v55, %v6860_v45  ;;  %v1941_v45 = vpack.c.b16 %v1918_v52, %v1917_v22  ;;  %v1919_v22 = vunpack.c.l.b16 %v1842_v32  ;;  %v1920_v52 = vunpack.c.l.b16 %v1843_v31 }
 0x26f   : > { %v1579_v16 = vpop.f32.mrf.mxu0  ;;  %v1844_v32 = vpack.c.bf16 %v1808_v17, %v1808_v17  ;;  %v1810_v17 = vld [vmem:[#allocation2 + $0x10a] sm:$0xff] }
 0x270   : > { %v1620_v44 = vadd.f32 %v1579_v16, %v1458_v3  ;;  %v1746_v16 = vpop.f32.mrf.mxu1 }
 0x271   : > { %v1422_v14 = vpop.f32.mrf.mxu3 }
 0x272   : > { %v7098_v27 = vadd.f32 %v1741_v21, %v1620_v44  ;;  %5476 = vmatmul.msk.bf16.gmra.mxu0 %vm408_vm0, %v1940_v34  ;;  %v1460_v19 = vadd.f32 %v1422_v14, %v1106_v15 }
 0x275   : > { %v1070_v3 = vpop.f32.mrf.mxu2 }
 0x276   : > { %v1107_v54 = vadd.f32 %v1070_v3, %v6864_v18 }
 0x277   : > { %v1581_v13 = vpop.f32.mrf.mxu0 }
 0x278   : > { %v7101_v48 = vadd.f32 %v1581_v13, %v1459_v33  ;;  %v7110_v13 = vpop.f32.mrf.mxu1 }
 0x279   : > { %v1424_v24 = vpop.f32.mrf.mxu3 }
 0x27a   : > { %v1461_v30 = vadd.f32 %v1424_v24, %v1107_v54  ;;  %5398 = vmatmul.msk.bf16.gmra.mxu2 %vm408_vm0, %v1940_v34 }
 0x27d   : > { %v1073_v55 = vpop.f32.mrf.mxu2 }
 0x27e   : > { %5438 = vmatmul.msk.bf16.gmra.mxu3 %vm408_vm0, %v1941_v45  ;;  %v1108_v15 = vadd.f32 %v1073_v55, %v6873_v40 }
 0x27f   : > { %v1584_v21 = vpop.f32.mrf.mxu0 }
 0x280   : > { %v1622_v44 = vadd.f32 %v1584_v21, %v1460_v19 }
 0x281   : > { %v1427_v18 = vpop.f32.mrf.mxu3 }
 0x282   : > { %v7107_v33 = vadd.f32 %v1746_v16, %v1622_v44  ;;  %5477 = vmatmul.msk.bf16.gmra.mxu0 %vm408_vm0, %v1941_v45  ;;  %v1462_v14 = vadd.f32 %v1427_v18, %v1108_v15  ;;  %v1942_v16 = vpack.c.b16 %v1920_v52, %v1919_v22  ;;  %v1751_v44 = vpop.f32.mrf.mxu1  ;;  %v1809_v15 = vld [vmem:[#allocation2 + $0xfa] sm:$0xff] }
 0x285   : > { %v1075_v19 = vpop.f32.mrf.mxu2 }
 0x286   : > { %v1109_v54 = vadd.f32 %v1075_v19, %v6883_v8  ;;  %v1845_v8 = vpack.c.bf16 %v1809_v15, %v1809_v15  ;;  %v1811_v15 = vld [vmem:[#allocation2 + $0x112] sm:$0xff] }
 0x287   : > { %v1586_v34 = vpop.f32.mrf.mxu0 }
 0x288   : > { %v7112_v3 = vadd.f32 %v1586_v34, %v1461_v30  ;;  %v1921_v34 = vunpack.c.l.b16 %v1844_v32  ;;  %v1922_v22 = vunpack.c.l.b16 %v1845_v8 }
 0x289   : > { %v1429_v24 = vpop.f32.mrf.mxu3 }
 0x28a   : > { %v1463_v40 = vadd.f32 %v1429_v24, %v1109_v54  ;;  %5399 = vmatmul.msk.bf16.gmra.mxu2 %vm408_vm0, %v1941_v45 }
 0x28d   : > { %v2030_v36 = vpop.f32.mrf.mxu2 }
 0x28e   : > { %5439 = vmatmul.msk.bf16.gmra.mxu3 %vm408_vm0, %v1942_v16  ;;  %v2110_v19 = vadd.f32 %v2030_v36, %v6904_v62  ;;  %v5886_v62 = vld [vmem:[%s8718_s4 + $0x18] sm:$0xff] }
 0x28f   : > { %v1589_v21 = vpop.f32.mrf.mxu0  ;;  %3023 = vmatpush.bf16.msrb.mxu2 %v5886_v62 }
 0x290   : > { %v1624_v55 = vadd.f32 %v1589_v21, %v1462_v14  ;;  %v1943_v14 = vpack.c.b16 %v1922_v22, %v1921_v34  ;;  %v7127_v21 = vld [vmem:[%s8716_s2] ss:$0 sm:$0xff]  ;;  %v1846_v34 = vpack.c.bf16 %v1810_v17, %v1810_v17  ;;  %v1847_v22 = vpack.c.bf16 %v1811_v15, %v1811_v15 }
 0x291   : > { %v2192_v30 = vpop.f32.mrf.mxu3 }
 0x292   : > { %v7117_v18 = vadd.f32 %v1751_v44, %v1624_v55  ;;  %5478 = vmatmul.msk.bf16.gmra.mxu0 %vm408_vm0, %v1942_v16  ;;  %v2272_v24 = vadd.f32 %v2192_v30, %v2110_v19  ;;  %v5898_v19 = vld [vmem:[%s8718_s4 + $0x38] sm:$0xff] }
 0x293   : > { %3507 = vmatpush.bf16.msrb.mxu0 %v5898_v19 }
 0x294   : > { %8799 = vst [vmem:[#allocation42_spill] sm:$0xff] %v7117_v18 }
 0x295   : > { %v2032_v45 = vpop.f32.mrf.mxu2 }
 0x296   : > { %v2111_v30 = vadd.f32 %v2032_v45, %v6909_v37  ;;  %v1923_v37 = vunpack.c.l.b16 %v1846_v34  ;;  %v1924_v45 = vunpack.c.l.b16 %v1847_v22  ;;  %v1813_v22 = vld [vmem:[#allocation2 + $0x12a] sm:$0xff] }
 0x297   : > { %v1591_v31 = vpop.f32.mrf.mxu0 }
 0x298   : > { %v7120_v52 = vadd.f32 %v1591_v31, %v1463_v40  ;;  %v7133_v40 = vld [vmem:[%s8717_s3] ss:$0 sm:$0xff]  ;;  %v1944_v15 = vpack.c.b16 %v1924_v45, %v1923_v37  ;;  %v1849_v37 = vpack.c.bf16 %v1813_v22, %v1813_v22 }
 0x299   : > { %v2194_v54 = vpop.f32.mrf.mxu3 }
 0x29a   : > { %8800 = vst [vmem:[#allocation43_spill] sm:$0xff] %v7120_v52  ;;  %5400 = vmatmul.msk.bf16.gmra.mxu2 %vm408_vm0, %v1942_v16  ;;  %v5894_v16 = vld [vmem:[%s8718_s4 + $0xd8] sm:$0xff] }
 0x29b   : > { %3153 = vmatpush.bf16.msrb.mxu3 %v5894_v16 }
 0x29d   : > { %v2035_v36 = vpop.f32.mrf.mxu2 }
 0x29e   : > { %5440 = vmatmul.msk.bf16.gmra.mxu3 %vm408_vm0, %v1943_v14  ;;  %v2112_v16 = vadd.f32 %v2035_v36, %v6920_v23  ;;  %v1812_v36 = vld [vmem:[#allocation2 + $0x122] sm:$0xff] }
 0x29f   : > { %v2354_v44 = vpop.f32.mrf.mxu0 }
 0x2a0   : > { %v2434_v55 = vadd.f32 %v2354_v44, %v2272_v24  ;;  %v2273_v24 = vadd.f32 %v2194_v54, %v2111_v30  ;;  %v5902_v54 = vld [vmem:[%s8718_s4 + $0x98] sm:$0xff] }
 0x2a1   : > { %v2197_v8 = vpop.f32.mrf.mxu3  ;;  %3669 = vmatpush.bf16.msrb.mxu1 %v5902_v54 }
 0x2a2   : > { %v2470_v32 = vmul.f32 %v7127_v21, %v2434_v55  ;;  %5479 = vmatmul.msk.bf16.gmra.mxu0 %vm408_vm0, %v1943_v14  ;;  %v2274_v30 = vadd.f32 %v2197_v8, %v2112_v16 }
 0x2a4   : > { %v2506_v31 = vadd.f32 %v7133_v40, %v2470_v32 }
 0x2a5   : > { %v2037_v62 = vpop.f32.mrf.mxu2 }
 0x2a6   : > { %v2538_v44 = vmax.f32 %v2506_v31, 0.0  ;;  %v2113_v19 = vadd.f32 %v2037_v62, %v6926_v20 }
 0x2a7   : > { %v2356_v6 = vpop.f32.mrf.mxu0 }
 0x2a8   : > { %2625 = vst.msk [vmem:[#allocation3 + $0x19] sm:$0xff] %vm408_vm0, %v2538_v44  ;;  %v2435_v55 = vadd.f32 %v2356_v6, %v2273_v24 }
 0x2a9   : > { %v2199_v17 = vpop.f32.mrf.mxu3 }
 0x2aa   : > { %v2471_v32 = vmul.f32 %v7127_v21, %v2435_v55  ;;  %5401 = vmatmul.msk.bf16.gmra.mxu2 %vm408_vm0, %v1943_v14  ;;  %v1848_v14 = vpack.c.bf16 %v1812_v36, %v1812_v36  ;;  %v2275_v45 = vadd.f32 %v2199_v17, %v2113_v19 }
 0x2ac   : > { %v2507_v4 = vadd.f32 %v7133_v40, %v2471_v32 }
 0x2ad   : > { %v2040_v23 = vpop.f32.mrf.mxu2 }
 0x2ae   : > { %v2539_v31 = vmax.f32 %v2507_v4, 0.0  ;;  %5441 = vmatmul.msk.bf16.gmra.mxu3 %vm408_vm0, %v1944_v15 }
 0x2af   : > { %v2359_v34 = vpop.f32.mrf.mxu0  ;;  %v2659_v44 = vld [vmem:[#allocation3 + $0x18] sm:$0xff] }
 0x2b0   : > { %2626 = vst.msk [vmem:[#allocation3 + $0x21] sm:$0xff] %vm408_vm0, %v2539_v31  ;;  %v2436_v6 = vadd.f32 %v2359_v34, %v2274_v30  ;;  %v2695_v16 = vpack.c.bf16 %v2659_v44, %v2659_v44  ;;  %v1925_v30 = vunpack.c.l.b16 %v1848_v14  ;;  %v1926_v31 = vunpack.c.l.b16 %v1849_v37  ;;  %v1814_v37 = vld [vmem:[#allocation2 + $0x13a] sm:$0xff] }
 0x2b1   : > { %v2202_v8 = vpop.f32.mrf.mxu3 }
 0x2b2   : > { %v2472_v24 = vmul.f32 %v7127_v21, %v2436_v6  ;;  %5480 = vmatmul.msk.bf16.gmra.mxu0 %vm408_vm0, %v1944_v15  ;;  %v2114_v6 = vadd.f32 %v2040_v23, %v6934_v56  ;;  %v2778_v18 = vunpack.c.l.b16 %v2695_v16  ;;  %v1945_v22 = vpack.c.b16 %v1926_v31, %v1925_v30 }
 0x2b3   : > { %v1850_v16 = vpack.c.bf16 %v1814_v37, %v1814_v37 }
 0x2b4   : > { %v2508_v4 = vadd.f32 %v7133_v40, %v2472_v24  ;;  %v2276_v44 = vadd.f32 %v2202_v8, %v2114_v6 }
 0x2b5   : > { %v2042_v34 = vpop.f32.mrf.mxu2  ;;  %v1927_v6 = vunpack.c.l.b16 %v1850_v16  ;;  %v1816_v16 = vld [vmem:[#allocation2 + $0x152] sm:$0xff] }
 0x2b6   : > { %v2540_v55 = vmax.f32 %v2508_v4, 0.0 }
 0x2b7   : > { %v2361_v32 = vpop.f32.mrf.mxu0  ;;  %v2660_v54 = vld [vmem:[#allocation3 + $0x20] sm:$0xff] }
 0x2b8   : > { %2627 = vst.msk [vmem:[#allocation3 + $0x31] sm:$0xff] %vm408_vm0, %v2540_v55  ;;  %v2437_v20 = vadd.f32 %v2361_v32, %v2275_v45  ;;  %v2696_v62 = vpack.c.bf16 %v2660_v54, %v2660_v54  ;;  %v1815_v45 = vld [vmem:[#allocation2 + $0x142] sm:$0xff] }
 0x2b9   : > { %v2204_v36 = vpop.f32.mrf.mxu3  ;;  %v1851_v32 = vpack.c.bf16 %v1815_v45, %v1815_v45 }
 0x2ba   : > { %v2473_v52 = vmul.f32 %v7127_v21, %v2437_v20  ;;  %v2779_v24 = vunpack.c.l.b16 %v2696_v62  ;;  %5402 = vmatmul.msk.bf16.gmra.mxu2 %vm408_vm0, %v1944_v15 }
 0x2bc   : > { %v2509_v17 = vadd.f32 %v7133_v40, %v2473_v52  ;;  %v7166_v19 = vpack.c.b16 %v2779_v24, %v2778_v18  ;;  %v2115_v52 = vadd.f32 %v2042_v34, %v6946_v51  ;;  %v1928_v24 = vunpack.c.l.b16 %v1851_v32  ;;  %v1817_v32 = vld [vmem:[#allocation2 + $0x15a] sm:$0xff] }
 0x2bd   : > { %v2045_v23 = vpop.f32.mrf.mxu2 }
 0x2be   : > { %v2541_v4 = vmax.f32 %v2509_v17, 0.0  ;;  %5511 = vmatmul.msk.bf16.vlgmr.msra.gmra.mxu1 %vm408_vm0, %v7166_v19  ;;  %5442 = vmatmul.msk.bf16.gmra.mxu3 %vm408_vm0, %v1945_v22  ;;  %v2277_v54 = vadd.f32 %v2204_v36, %v2115_v52  ;;  %v1946_v45 = vpack.c.b16 %v1928_v24, %v1927_v6 }
 0x2bf   : > { %v2364_v14 = vpop.f32.mrf.mxu0  ;;  %v2661_v8 = vld [vmem:[#allocation3 + $0x30] sm:$0xff] }
 0x2c0   : > { %2628 = vst.msk [vmem:[#allocation3 + $0x39] sm:$0xff] %vm408_vm0, %v2541_v4  ;;  %v2438_v56 = vadd.f32 %v2364_v14, %v2276_v44  ;;  %v2697_v31 = vpack.c.bf16 %v2661_v8, %v2661_v8  ;;  %v2116_v44 = vadd.f32 %v2045_v23, %v6958_v11 }
 0x2c1   : > { %v2207_v15 = vpop.f32.mrf.mxu3 }
 0x2c2   : > { %v2474_v18 = vmul.f32 %v7127_v21, %v2438_v56  ;;  %5481 = vmatmul.msk.bf16.gmra.mxu0 %vm408_vm0, %v1945_v22  ;;  %v2780_v14 = vunpack.c.l.b16 %v2697_v31 }
 0x2c4   : > { %v2510_v55 = vadd.f32 %v7133_v40, %v2474_v18  ;;  %v2278_v18 = vadd.f32 %v2207_v15, %v2116_v44 }
 0x2c5   : > { %v2047_v17 = vpop.f32.mrf.mxu2 }
 0x2c6   : > { %v2542_v30 = vmax.f32 %v2510_v55, 0.0 }
 0x2c7   : > { %v2366_v20 = vpop.f32.mrf.mxu0  ;;  %v2662_v62 = vld [vmem:[#allocation3 + $0x38] sm:$0xff] }
 0x2c8   : > { %2629 = vst.msk [vmem:[#allocation3 + $0x49] sm:$0xff] %vm408_vm0, %v2542_v30  ;;  %v2439_v51 = vadd.f32 %v2366_v20, %v2277_v54  ;;  %v2698_v34 = vpack.c.bf16 %v2662_v62, %v2662_v62  ;;  %v2117_v54 = vadd.f32 %v2047_v17, %v6967_v7  ;;  %v1852_v20 = vpack.c.bf16 %v1816_v16, %v1816_v16 }
 0x2c9   : > { %v2209_v37 = vpop.f32.mrf.mxu3  ;;  %v1853_v62 = vpack.c.bf16 %v1817_v32, %v1817_v32 }
 0x2ca   : > { %v2475_v4 = vmul.f32 %v7127_v21, %v2439_v51  ;;  %v2781_v56 = vunpack.c.l.b16 %v2698_v34  ;;  %5403 = vmatmul.msk.bf16.gmra.mxu2 %vm408_vm0, %v1945_v22  ;;  %v2279_v6 = vadd.f32 %v2209_v37, %v2117_v54 }
 0x2cc   : > { %v2511_v36 = vadd.f32 %v7133_v40, %v2475_v4  ;;  %v7181_v52 = vpack.c.b16 %v2781_v56, %v2780_v14  ;;  %v1929_v4 = vunpack.c.l.b16 %v1852_v20  ;;  %v1930_v14 = vunpack.c.l.b16 %v1853_v62  ;;  %v1818_v20 = vld [vmem:[#allocation2 + $0x16a] sm:$0xff]  ;;  %v1819_v62 = vld [vmem:[#allocation2 + $0x172] sm:$0xff] }
 0x2cd   : > { %v2050_v23 = vpop.f32.mrf.mxu2 }
 0x2ce   : > { %v2543_v8 = vmax.f32 %v2511_v36, 0.0  ;;  %5512 = vmatmul.msk.bf16.gmra.mxu1 %vm408_vm0, %v7181_v52  ;;  %5443 = vmatmul.msk.bf16.gmra.mxu3 %vm408_vm0, %v1946_v45  ;;  %v2118_v36 = vadd.f32 %v2050_v23, %v6976_v59  ;;  %v1947_v16 = vpack.c.b16 %v1930_v14, %v1929_v4  ;;  %v1765_v59 = vadd.f32 %v6964_v43, %v6984_v46  ;;  %v5884_v4 = vld [vmem:[%s8718_s4 + $0x8] sm:$0xff] }
 0x2cf   : > { %v2369_v55 = vpop.f32.mrf.mxu0  ;;  %v2663_v15 = vld [vmem:[#allocation3 + $0x48] sm:$0xff]  ;;  %v5892_v14 = vld [vmem:[%s8718_s4 + $0xc8] sm:$0xff] }
 0x2d0   : > { %2630 = vst.msk [vmem:[#allocation3 + $0x51] sm:$0xff] %vm408_vm0, %v2543_v8  ;;  %v2440_v11 = vadd.f32 %v2369_v55, %v2278_v18  ;;  %v2699_v51 = vpack.c.bf16 %v2663_v15, %v2663_v15 }
 0x2d1   : > { %v2212_v22 = vpop.f32.mrf.mxu3 }
 0x2d2   : > { %v2476_v30 = vmul.f32 %v7127_v21, %v2440_v11  ;;  %5482 = vmatmul.msk.bf16.gmra.mxu0 %vm408_vm0, %v1946_v45  ;;  %v2782_v8 = vunpack.c.l.b16 %v2699_v51  ;;  %v2280_v54 = vadd.f32 %v2212_v22, %v2118_v36 }
 0x2d4   : > { %v2512_v31 = vadd.f32 %v7133_v40, %v2476_v30 }
 0x2d5   : > { %v2052_v56 = vpop.f32.mrf.mxu2 }
 0x2d6   : > { %v2544_v24 = vmax.f32 %v2512_v31, 0.0  ;;  %v5885_v31 = vld [vmem:[%s8718_s4 + $0x10] sm:$0xff] }
 0x2d7   : > { %v2371_v34 = vpop.f32.mrf.mxu0  ;;  %v2664_v44 = vld [vmem:[#allocation3 + $0x50] sm:$0xff]  ;;  %3024 = vmatpush.bf16.msrb.mxu2 %v5885_v31 }
 0x2d8   : > { %2631 = vst.msk [vmem:[#allocation3 + $0x61] sm:$0xff] %vm408_vm0, %v2544_v24  ;;  %v2441_v7 = vadd.f32 %v2371_v34, %v2279_v6  ;;  %v2700_v17 = vpack.c.bf16 %v2664_v44, %v2664_v44  ;;  %v2119_v6 = vadd.f32 %v2052_v56, %v1765_v59  ;;  %v1854_v34 = vpack.c.bf16 %v1818_v20, %v1818_v20  ;;  %v5883_v20 = vld [vmem:[%s8718_s4] sm:$0xff] }
 0x2d9   : > { %v2214_v11 = vpop.f32.mrf.mxu3  ;;  %v1855_v44 = vpack.c.bf16 %v1819_v62, %v1819_v62  ;;  %v5891_v62 = vld [vmem:[%s8718_s4 + $0xc0] sm:$0xff] }
 0x2da   : > { %v2477_v18 = vmul.f32 %v7127_v21, %v2441_v7  ;;  %v2783_v55 = vunpack.c.l.b16 %v2700_v17  ;;  %5404 = vmatmul.msk.bf16.gmra.mxu2 %vm408_vm0, %v1946_v45  ;;  %v5893_v45 = vld [vmem:[%s8718_s4 + $0xd0] sm:$0xff]  ;;  %v2281_v17 = vadd.f32 %v2214_v11, %v2119_v6 }
 0x2db   : > { %3154 = vmatpush.bf16.msrb.mxu3 %v5893_v45  ;;  %v5897_v7 = vld [vmem:[%s8718_s4 + $0x30] sm:$0xff]  ;;  %3025 = vmatpush.bf16.msrb.mxu2 %v5884_v4 }
 0x2dc   : > { %v2513_v37 = vadd.f32 %v7133_v40, %v2477_v18  ;;  %v7196_v32 = vpack.c.b16 %v2783_v55, %v2782_v8  ;;  %3508 = vmatpush.bf16.msrb.mxu0 %v5897_v7  ;;  %v1931_v55 = vunpack.c.l.b16 %v1854_v34  ;;  %v1820_v7 = vld [vmem:[#allocation2 + $0x182] sm:$0xff] }
 0x2dd   : > { %v2055_v22 = vpop.f32.mrf.mxu2 }
 0x2de   : > { %v2545_v30 = vmax.f32 %v2513_v37, 0.0  ;;  %5513 = vmatmul.msk.bf16.gmra.mxu1 %vm408_vm0, %v7196_v32  ;;  %5444 = vmatmul.msk.bf16.gmra.mxu3 %vm408_vm0, %v1947_v16  ;;  %v1932_v37 = vunpack.c.l.b16 %v1855_v44  ;;  %v2120_v59 = vadd.f32 %v2055_v22, %v6997_v53  ;;  %v5901_v53 = vld [vmem:[%s8718_s4 + $0x90] sm:$0xff]  ;;  %v1767_v44 = vadd.f32 %v6982_v50, %v7005_v1 }
 0x2df   : > { %v2374_v15 = vpop.f32.mrf.mxu0  ;;  %v2665_v46 = vld [vmem:[#allocation3 + $0x60] sm:$0xff]  ;;  %3155 = vmatpush.bf16.msrb.mxu3 %v5892_v14  ;;  %3026 = vmatpush.bf16.msrb.mxu2 %v5883_v20 }
 0x2e0   : > { %2632 = vst.msk [vmem:[#allocation3 + $0x69] sm:$0xff] %vm408_vm0, %v2545_v30  ;;  %v2442_v23 = vadd.f32 %v2374_v15, %v2280_v54  ;;  %v2701_v36 = vpack.c.bf16 %v2665_v46, %v2665_v46  ;;  %v1948_v6 = vpack.c.b16 %v1932_v37, %v1931_v55  ;;  %3670 = vmatpush.bf16.msrb.mxu1 %v5901_v53 }
 0x2e1   : > { %v2217_v43 = vpop.f32.mrf.mxu3 }
 0x2e2   : > { %v2478_v24 = vmul.f32 %v7127_v21, %v2442_v23  ;;  %5483 = vmatmul.msk.bf16.gmra.mxu0 %vm408_vm0, %v1947_v16  ;;  %v2784_v31 = vunpack.c.l.b16 %v2701_v36  ;;  %v2282_v22 = vadd.f32 %v2217_v43, %v2120_v59 }
 0x2e3   : > { %3156 = vmatpush.bf16.msrb.mxu3 %v5891_v62 }
 0x2e4   : > { %v2514_v51 = vadd.f32 %v7133_v40, %v2478_v24 }
 0x2e5   : > { %v2057_v15 = vpop.f32.mrf.mxu2 }
 0x2e6   : > { %v2546_v56 = vmax.f32 %v2514_v51, 0.0  ;;  %v2121_v43 = vadd.f32 %v2057_v15, %v1767_v44 }
 0x2e7   : > { %v2376_v18 = vpop.f32.mrf.mxu0  ;;  %v2666_v8 = vld [vmem:[#allocation3 + $0x68] sm:$0xff] }
 0x2e8   : > { %2633 = vst.msk [vmem:[#allocation3 + $0x79] sm:$0xff] %vm408_vm0, %v2546_v56  ;;  %v2443_v54 = vadd.f32 %v2376_v18, %v2281_v17  ;;  %v2702_v30 = vpack.c.bf16 %v2666_v8, %v2666_v8  ;;  %v1821_v17 = vld [vmem:[#allocation2 + $0x18a] sm:$0xff]  ;;  %v1856_v8 = vpack.c.bf16 %v1820_v7, %v1820_v7 }
 0x2e9   : > { %v2219_v45 = vpop.f32.mrf.mxu3  ;;  %v1857_v55 = vpack.c.bf16 %v1821_v17, %v1821_v17  ;;  %v2657_v7 = vld [vmem:[#allocation3] sm:$0xff]  ;;  %v2658_v17 = vld [vmem:[#allocation3 + $0x8] sm:$0xff] }
 0x2ea   : > { %v2479_v23 = vmul.f32 %v7127_v21, %v2443_v54  ;;  %v2785_v11 = vunpack.c.l.b16 %v2702_v30  ;;  %5405 = vmatmul.msk.bf16.gmra.mxu2 %vm408_vm0, %v1947_v16  ;;  %v2283_v50 = vadd.f32 %v2219_v45, %v2121_v43  ;;  %v2153_v59 = vunpack.c.l.b16 %v1856_v8  ;;  %v1822_v8 = vld [vmem:[#allocation2 + $0x19a] sm:$0xff] }
 0x2ec   : > { %v2515_v24 = vadd.f32 %v7133_v40, %v2479_v23  ;;  %v7233_v46 = vpack.c.b16 %v2785_v11, %v2784_v31  ;;  %v2154_v23 = vunpack.c.l.b16 %v1857_v55  ;;  %v1823_v55 = vld [vmem:[#allocation2 + $0x1a2] sm:$0xff] }
 0x2ed   : > { %v2060_v14 = vpop.f32.mrf.mxu2 }
 0x2ee   : > { %v2547_v51 = vmax.f32 %v2515_v24, 0.0  ;;  %5514 = vmatmul.msk.bf16.gmra.mxu1 %vm408_vm0, %v7233_v46  ;;  %5445 = vmatmul.msk.bf16.gmra.mxu3 %vm408_vm0, %v1948_v6  ;;  %v2122_v20 = vadd.f32 %v2060_v14, %v7012_v28  ;;  %v1769_v14 = vadd.f32 %v7003_v61, %v7019_v39  ;;  %v5896_v61 = vld [vmem:[%s8718_s4 + $0x28] sm:$0xff] }
 0x2ef   : > { %v2379_v34 = vpop.f32.mrf.mxu0  ;;  %v2667_v36 = vld [vmem:[#allocation3 + $0x78] sm:$0xff]  ;;  %3509 = vmatpush.bf16.msrb.mxu0 %v5896_v61  ;;  %v3271_v61 = vld [vmem:[#allocation3 + $0x9] sm:$0xff] }
 0x2f0   : > { %2634 = vst.msk [vmem:[#allocation3 + $0x81] sm:$0xff] %vm408_vm0, %v2547_v51  ;;  %v2444_v4 = vadd.f32 %v2379_v34, %v2282_v22  ;;  %v2703_v37 = vpack.c.bf16 %v2667_v36, %v2667_v36  ;;  %v2155_v51 = vpack.c.b16 %v2154_v23, %v2153_v59  ;;  %v2693_v36 = vpack.c.bf16 %v2657_v7, %v2657_v7 }
 0x2f1   : > { %v2222_v56 = vpop.f32.mrf.mxu3  ;;  %v1859_v59 = vpack.c.bf16 %v1823_v55, %v1823_v55 }
 0x2f2   : > { %v2480_v16 = vmul.f32 %v7127_v21, %v2444_v4  ;;  %5484 = vmatmul.msk.bf16.gmra.mxu0 %vm408_vm0, %v1948_v6  ;;  %v2786_v24 = vunpack.c.l.b16 %v2703_v37  ;;  %v2284_v44 = vadd.f32 %v2222_v56, %v2122_v20  ;;  %v2694_v56 = vpack.c.bf16 %v2658_v17, %v2658_v17 }
 0x2f3   : > { %v2989_v39 = vunpack.c.l.b16 %v2693_v36 }
 0x2f4   : > { %v2516_v18 = vadd.f32 %v7133_v40, %v2480_v16 }
 0x2f5   : > { %v2062_v11 = vpop.f32.mrf.mxu2 }
 0x2f6   : > { %v2548_v1 = vmax.f32 %v2516_v18, 0.0  ;;  %v2123_v18 = vadd.f32 %v2062_v11, %v1769_v14  ;;  %v5895_v14 = vld [vmem:[%s8718_s4 + $0x20] sm:$0xff] }
 0x2f7   : > { %v2381_v54 = vpop.f32.mrf.mxu0  ;;  %v2668_v30 = vld [vmem:[#allocation3 + $0x80] sm:$0xff]  ;;  %3510 = vmatpush.bf16.msrb.mxu0 %v5895_v14 }
 0x2f8   : > { %2635 = vst.msk [vmem:[#allocation3 + $0x91] sm:$0xff] %vm408_vm0, %v2548_v1  ;;  %v2445_v15 = vadd.f32 %v2381_v54, %v2283_v50  ;;  %v2704_v31 = vpack.c.bf16 %v2668_v30, %v2668_v30  ;;  %v2990_v54 = vunpack.c.l.b16 %v2694_v56  ;;  %v1858_v30 = vpack.c.bf16 %v1822_v8, %v1822_v8 }
 0x2f9   : > { %v2224_v22 = vpop.f32.mrf.mxu3 }
 0x2fa   : > { %v2481_v62 = vmul.f32 %v7127_v21, %v2445_v15  ;;  %v2787_v53 = vunpack.c.l.b16 %v2704_v31  ;;  %5406 = vmatmul.msk.bf16.gmra.mxu2 %vm408_vm0, %v1948_v6  ;;  %v2285_v23 = vadd.f32 %v2224_v22, %v2123_v18 }
 0x2fc   : > { %v2517_v45 = vadd.f32 %v7133_v40, %v2481_v62  ;;  %v7252_v34 = vpack.c.b16 %v2787_v53, %v2786_v24 }
 0x2fd   : > { %v2065_v16 = vpop.f32.mrf.mxu2 }
 0x2fe   : > { %v2549_v4 = vmax.f32 %v2517_v45, 0.0  ;;  %5515 = vmatmul.msk.bf16.gmra.mxu1 %vm408_vm0, %v7252_v34  ;;  %5446 = vmatmul.msk.bf16.gmra.mxu3 %vm408_vm0, %v2155_v51  ;;  %v2315_v45 = vunpack.c.l.b16 %v1858_v30 }
 0x2ff   : > { %v2384_v28 = vpop.f32.mrf.mxu0  ;;  %v2669_v1 = vld [vmem:[#allocation3 + $0x90] sm:$0xff] }
 0x300   : > { %2636 = vst.msk [vmem:[#allocation3 + $0x99] sm:$0xff] %vm408_vm0, %v2549_v4  ;;  %v2446_v43 = vadd.f32 %v2384_v28, %v2284_v44  ;;  %v2705_v31 = vpack.c.bf16 %v2669_v1, %v2669_v1  ;;  %v2316_v44 = vunpack.c.l.b16 %v1859_v59  ;;  %v2124_v4 = vadd.f32 %v2065_v16, %v7025_v26 }
 0x301   : > { %v2227_v50 = vpop.f32.mrf.mxu3 }
 0x302   : > { %v2482_v6 = vmul.f32 %v7127_v21, %v2446_v43  ;;  %5485 = vmatmul.msk.bf16.gmra.mxu0 %vm408_vm0, %v2155_v51  ;;  %v2991_v51 = vpack.c.b16 %v2990_v54, %v2989_v39  ;;  %v2788_v17 = vunpack.c.l.b16 %v2705_v31  ;;  %v2286_v56 = vadd.f32 %v2227_v50, %v2124_v4 }
 0x303   : > { %v2317_v26 = vpack.c.b16 %v2316_v44, %v2315_v45 }
 0x304   : > { %v2518_v37 = vadd.f32 %v7133_v40, %v2482_v6  ;;  %v1771_v6 = vadd.f32 %v7017_v42, %v7031_v0  ;;  %v3307_v42 = vpack.c.bf16 %v3271_v61, %v3271_v61 }
 0x305   : > { %v2067_v53 = vpop.f32.mrf.mxu2 }
 0x306   : > { %v2550_v15 = vmax.f32 %v2518_v37, 0.0  ;;  %v2125_v1 = vadd.f32 %v2067_v53, %v1771_v6  ;;  %v3270_v37 = vld [vmem:[#allocation3 + $0x1] sm:$0xff] }
 0x307   : > { %v2386_v11 = vpop.f32.mrf.mxu0  ;;  %v2670_v20 = vld [vmem:[#allocation3 + $0x98] sm:$0xff]  ;;  %v3306_v59 = vpack.c.bf16 %v3270_v37, %v3270_v37 }
 0x308   : > { %2637 = vst.msk [vmem:[#allocation3 + $0xa9] sm:$0xff] %vm408_vm0, %v2550_v15  ;;  %v2447_v62 = vadd.f32 %v2386_v11, %v2285_v23  ;;  %v2706_v24 = vpack.c.bf16 %v2670_v20, %v2670_v20 }
 0x309   : > { %v2229_v22 = vpop.f32.mrf.mxu3  ;;  %v3383_v53 = vunpack.c.l.b16 %v3306_v59 }
 0x30a   : > { %v2483_v7 = vmul.f32 %v7127_v21, %v2447_v62  ;;  %v2789_v28 = vunpack.c.l.b16 %v2706_v24  ;;  %5543 = vmatmul.msk.bf16.vlgmr.msrb.gmra.mxu2 %vm408_vm0, %v2991_v51  ;;  %v2287_v0 = vadd.f32 %v2229_v22, %v2125_v1  ;;  %v3384_v51 = vunpack.c.l.b16 %v3307_v42 }
 0x30c   : > { %v2519_v43 = vadd.f32 %v7133_v40, %v2483_v7  ;;  %v7274_v36 = vpack.c.b16 %v2789_v28, %v2788_v17 }
 0x30d   : > { %v2070_v55 = vpop.f32.mrf.mxu2 }
 0x30e   : > { %v2551_v18 = vmax.f32 %v2519_v43, 0.0  ;;  %5516 = vmatmul.msk.bf16.gmra.mxu1 %vm408_vm0, %v7274_v36  ;;  %5583 = vmatmul.msk.bf16.vlgmr.msrb.gmra.mxu3 %vm408_vm0, %v7181_v52  ;;  %v2126_v45 = vadd.f32 %v2070_v55, %v7037_v12  ;;  %v1773_v12 = vadd.f32 %v7029_v25, %v7042_v29  ;;  %v3272_v29 = vld [vmem:[#allocation3 + $0x19] sm:$0xff] }
 0x30f   : > { %v2389_v16 = vpop.f32.mrf.mxu0  ;;  %v2671_v54 = vld [vmem:[#allocation3 + $0xa8] sm:$0xff] }
 0x310   : > { %2638 = vst.msk [vmem:[#allocation3 + $0xb1] sm:$0xff] %vm408_vm0, %v2551_v18  ;;  %v2448_v8 = vadd.f32 %v2389_v16, %v2286_v56  ;;  %v2707_v15 = vpack.c.bf16 %v2671_v54, %v2671_v54  ;;  %v3415_v56 = vpack.c.b16 %v3384_v51, %v3383_v53 }
 0x311   : > { %v2232_v39 = vpop.f32.mrf.mxu3 }
 0x312   : > { %v2484_v50 = vmul.f32 %v7127_v21, %v2448_v8  ;;  %5486 = vmatmul.msk.bf16.gmra.mxu0 %vm408_vm0, %v2317_v26  ;;  %v2790_v4 = vunpack.c.l.b16 %v2707_v15  ;;  %v2288_v14 = vadd.f32 %v2232_v39, %v2126_v45  ;;  %v5900_v45 = vld [vmem:[%s8718_s4 + $0x88] sm:$0xff] }
 0x313   : > { %3671 = vmatpush.bf16.msrb.mxu1 %v5900_v45 }
 0x314   : > { %v2520_v30 = vadd.f32 %v7133_v40, %v2484_v50  ;;  %v3273_v50 = vld [vmem:[#allocation3 + $0x21] sm:$0xff] }
 0x315   : > { %v2072_v24 = vpop.f32.mrf.mxu2  ;;  %v3309_v42 = vpack.c.bf16 %v3273_v50, %v3273_v50 }
 0x316   : > { %v2552_v23 = vmax.f32 %v2520_v30, 0.0  ;;  %v2127_v6 = vadd.f32 %v2072_v24, %v1773_v12 }
 0x317   : > { %v2391_v31 = vpop.f32.mrf.mxu0  ;;  %v2672_v11 = vld [vmem:[#allocation3 + $0xb0] sm:$0xff]  ;;  %v3386_v51 = vunpack.c.l.b16 %v3309_v42 }
 0x318   : > { %2639 = vst.msk [vmem:[#allocation3 + $0xc1] sm:$0xff] %vm408_vm0, %v2552_v23  ;;  %v2449_v20 = vadd.f32 %v2391_v31, %v2287_v0  ;;  %v2708_v62 = vpack.c.bf16 %v2672_v11, %v2672_v11  ;;  %v3308_v23 = vpack.c.bf16 %v3272_v29, %v3272_v29 }
 0x319   : > { %v2234_v17 = vpop.f32.mrf.mxu3 }
 0x31a   : > { %v2485_v44 = vmul.f32 %v7127_v21, %v2449_v20  ;;  %v2791_v7 = vunpack.c.l.b16 %v2708_v62  ;;  %5544 = vmatmul.msk.bf16.gmra.mxu2 %vm408_vm0, %v7166_v19  ;;  %v2289_v37 = vadd.f32 %v2234_v17, %v2127_v6  ;;  %v1775_v17 = vadd.f32 %v7040_v47, %v7056_v41  ;;  %v3275_v41 = vld [vmem:[#allocation3 + $0x39] sm:$0xff] }
 0x31c   : > { %v2521_v28 = vadd.f32 %v7133_v40, %v2485_v44  ;;  %v7291_v22 = vpack.c.b16 %v2791_v7, %v2790_v4 }
 0x31d   : > { %v2075_v16 = vpop.f32.mrf.mxu2 }
 0x31e   : > { %v2553_v43 = vmax.f32 %v2521_v28, 0.0  ;;  %5517 = vmatmul.msk.bf16.gmra.mxu1 %vm408_vm0, %v7291_v22  ;;  %5584 = vmatmul.msk.bf16.gmra.mxu3 %vm408_vm0, %v7196_v32  ;;  %v2128_v15 = vadd.f32 %v2075_v16, %v7051_v57  ;;  %v3385_v57 = vunpack.c.l.b16 %v3308_v23 }
 0x31f   : > { %v2394_v18 = vpop.f32.mrf.mxu0  ;;  %v2673_v55 = vld [vmem:[#allocation3 + $0xc0] sm:$0xff] }
 0x320   : > { %2640 = vst.msk [vmem:[#allocation3 + $0xc9] sm:$0xff] %vm408_vm0, %v2553_v43  ;;  %v2450_v26 = vadd.f32 %v2394_v18, %v2288_v14  ;;  %v2709_v25 = vpack.c.bf16 %v2673_v55, %v2673_v55  ;;  %v7323_v14 = vpack.c.b16 %v3386_v51, %v3385_v57  ;;  %v7328_v18 = vpop.f32.mrf.mxu1 }
 0x321   : > { %v2237_v19 = vpop.f32.mrf.mxu3 }
 0x322   : > { %v2486_v8 = vmul.f32 %v7127_v21, %v2450_v26  ;;  %5623 = vmatmul.msk.bf16.vlgmr.msrb.gmra.mxu0 %vm408_vm0, %v3415_v56  ;;  %v2792_v11 = vunpack.c.l.b16 %v2709_v25  ;;  %v2290_v44 = vadd.f32 %v2237_v19, %v2128_v15  ;;  %v3274_v19 = vld [vmem:[#allocation3 + $0x31] sm:$0xff] }
 0x323   : > { %v3310_v29 = vpack.c.bf16 %v3274_v19, %v3274_v19 }
 0x324   : > { %v2522_v1 = vadd.f32 %v7133_v40, %v2486_v8 }
 0x325   : > { %v2077_v0 = vpop.f32.mrf.mxu2 }
 0x326   : > { %v2554_v61 = vmax.f32 %v2522_v1, 0.0 }
 0x327   : > { %v2396_v39 = vpop.f32.mrf.mxu0  ;;  %v2674_v54 = vld [vmem:[#allocation3 + $0xc8] sm:$0xff] }
 0x328   : > { %2641 = vst.msk [vmem:[#allocation3 + $0xd9] sm:$0xff] %vm408_vm0, %v2554_v61  ;;  %v2451_v30 = vadd.f32 %v2396_v39, %v2289_v37  ;;  %v2710_v59 = vpack.c.bf16 %v2674_v54, %v2674_v54  ;;  %v3311_v61 = vpack.c.bf16 %v3275_v41, %v3275_v41 }
 0x329   : > { %v2239_v62 = vpop.f32.mrf.mxu3 }
 0x32a   : > { %v2487_v31 = vmul.f32 %v7127_v21, %v2451_v30  ;;  %v2793_v20 = vunpack.c.l.b16 %v2710_v59  ;;  %5545 = vmatmul.msk.bf16.gmra.mxu2 %vm408_vm0, %v7181_v52  ;;  %v2129_v52 = vadd.f32 %v2077_v0, %v1775_v17 }
 0x32c   : > { %v2523_v24 = vadd.f32 %v7133_v40, %v2487_v31  ;;  %v7309_v53 = vpack.c.b16 %v2793_v20, %v2792_v11  ;;  %v2291_v16 = vadd.f32 %v2239_v62, %v2129_v52  ;;  %v3388_v31 = vunpack.c.l.b16 %v3311_v61 }
 0x32d   : > { %v2080_v43 = vpop.f32.mrf.mxu2 }
 0x32e   : > { %v2555_v4 = vmax.f32 %v2523_v24, 0.0  ;;  %5518 = vmatmul.msk.bf16.gmra.mxu1 %vm408_vm0, %v7309_v53  ;;  %5585 = vmatmul.msk.bf16.gmra.mxu3 %vm408_vm0, %v7233_v46  ;;  %v2130_v39 = vadd.f32 %v2080_v43, %v7062_v10  ;;  %v3387_v10 = vunpack.c.l.b16 %v3310_v29  ;;  %v1777_v24 = vadd.f32 %v7054_v5, %v7065_v60  ;;  %v3277_v60 = vld [vmem:[#allocation3 + $0x51] sm:$0xff] }
 0x32f   : > { %v2399_v7 = vpop.f32.mrf.mxu0  ;;  %v2675_v26 = vld [vmem:[#allocation3 + $0xd8] sm:$0xff] }
 0x330   : > { %2642 = vst.msk [vmem:[#allocation3 + $0xe1] sm:$0xff] %vm408_vm0, %v2555_v4  ;;  %v2452_v28 = vadd.f32 %v2399_v7, %v2290_v44  ;;  %v2711_v8 = vpack.c.bf16 %v2675_v26, %v2675_v26  ;;  %v7348_v45 = vpack.c.b16 %v3388_v31, %v3387_v10 }
 0x331   : > { %v2242_v12 = vpop.f32.mrf.mxu3 }
 0x332   : > { %v2488_v56 = vmul.f32 %v7127_v21, %v2452_v28  ;;  %5624 = vmatmul.msk.bf16.gmra.mxu0 %vm408_vm0, %v7323_v14  ;;  %v2794_v30 = vunpack.c.l.b16 %v2711_v8  ;;  %v2292_v11 = vadd.f32 %v2242_v12, %v2130_v39 }
 0x334   : > { %v2524_v47 = vadd.f32 %v7133_v40, %v2488_v56  ;;  %v3276_v56 = vld [vmem:[#allocation3 + $0x49] sm:$0xff] }
 0x335   : > { %v2082_v25 = vpop.f32.mrf.mxu2  ;;  %v3312_v8 = vpack.c.bf16 %v3276_v56, %v3276_v56 }
 0x336   : > { %v2556_v6 = vmax.f32 %v2524_v47, 0.0  ;;  %v2131_v4 = vadd.f32 %v2082_v25, %v1777_v24 }
 0x337   : > { %v2401_v55 = vpop.f32.mrf.mxu0  ;;  %v2676_v1 = vld [vmem:[#allocation3 + $0xe0] sm:$0xff] }
 0x338   : > { %2643 = vst.msk [vmem:[#allocation3 + $0xf1] sm:$0xff] %vm408_vm0, %v2556_v6  ;;  %v2453_v50 = vadd.f32 %v2401_v55, %v2291_v16  ;;  %v2712_v37 = vpack.c.bf16 %v2676_v1, %v2676_v1  ;;  %v3313_v16 = vpack.c.bf16 %v3277_v60, %v3277_v60 }
 0x339   : > { %v2244_v42 = vpop.f32.mrf.mxu3 }
 0x33a   : > { %v2489_v54 = vmul.f32 %v7127_v21, %v2453_v50  ;;  %v2795_v59 = vunpack.c.l.b16 %v2712_v37  ;;  %5546 = vmatmul.msk.bf16.gmra.mxu2 %vm408_vm0, %v7196_v32  ;;  %v2293_v28 = vadd.f32 %v2244_v42, %v2131_v4  ;;  %v3390_v39 = vunpack.c.l.b16 %v3313_v16 }
 0x33b   : > { %v7334_v0 = vpop.f32.mrf.mxu1  ;;  %v1779_v42 = vadd.f32 %v7067_v2, %v7076_v58  ;;  %v3279_v58 = vld [vmem:[#allocation3 + $0x69] sm:$0xff] }
 0x33c   : > { %v2525_v23 = vadd.f32 %v7133_v40, %v2489_v54  ;;  %v7337_v15 = vpack.c.b16 %v2795_v59, %v2794_v30 }
 0x33d   : > { %v2085_v44 = vpop.f32.mrf.mxu2 }
 0x33e   : > { %v2557_v20 = vmax.f32 %v2525_v23, 0.0  ;;  %5519 = vmatmul.msk.bf16.gmra.mxu1 %vm408_vm0, %v7337_v15  ;;  %5586 = vmatmul.msk.bf16.gmra.mxu3 %vm408_vm0, %v7252_v34  ;;  %v2132_v19 = vadd.f32 %v2085_v44, %v7073_v63  ;;  %v3389_v63 = vunpack.c.l.b16 %v3312_v8 }
 0x33f   : > { %v2404_v62 = vpop.f32.mrf.mxu0  ;;  %v2677_v17 = vld [vmem:[#allocation3 + $0xf0] sm:$0xff] }
 0x340   : > { %2644 = vst.msk [vmem:[#allocation3 + $0xf9] sm:$0xff] %vm408_vm0, %v2557_v20  ;;  %v2454_v51 = vadd.f32 %v2404_v62, %v2292_v11  ;;  %v2713_v52 = vpack.c.bf16 %v2677_v17, %v2677_v17  ;;  %v7373_v31 = vpack.c.b16 %v3390_v39, %v3389_v63 }
 0x341   : > { %v2247_v57 = vpop.f32.mrf.mxu3 }
 0x342   : > { %v2490_v32 = vmul.f32 %v7127_v21, %v2454_v51  ;;  %5625 = vmatmul.msk.bf16.gmra.mxu0 %vm408_vm0, %v7348_v45  ;;  %v2796_v1 = vunpack.c.l.b16 %v2713_v52  ;;  %v2294_v54 = vadd.f32 %v2247_v57, %v2132_v19 }
 0x343   : > { %v7353_v7 = vpop.f32.mrf.mxu1 }
 0x344   : > { %v2526_v5 = vadd.f32 %v7133_v40, %v2490_v32  ;;  %v3278_v32 = vld [vmem:[#allocation3 + $0x61] sm:$0xff] }
 0x345   : > { %v2087_v6 = vpop.f32.mrf.mxu2  ;;  %v3314_v52 = vpack.c.bf16 %v3278_v32, %v3278_v32 }
 0x346   : > { %v2558_v43 = vmax.f32 %v2526_v5, 0.0  ;;  %v2133_v20 = vadd.f32 %v2087_v6, %v1779_v42 }
 0x347   : > { %v2406_v12 = vpop.f32.mrf.mxu0  ;;  %v2678_v26 = vld [vmem:[#allocation3 + $0xf8] sm:$0xff] }
 0x348   : > { %2645 = vst.msk [vmem:[#allocation3 + $0x109] sm:$0xff] %vm408_vm0, %v2558_v43  ;;  %v2455_v47 = vadd.f32 %v2406_v12, %v2293_v28  ;;  %v2714_v41 = vpack.c.bf16 %v2678_v26, %v2678_v26  ;;  %v3315_v28 = vpack.c.bf16 %v3279_v58, %v3279_v58 }
 0x349   : > { %v2249_v37 = vpop.f32.mrf.mxu3 }
 0x34a   : > { %v2491_v55 = vmul.f32 %v7127_v21, %v2455_v47  ;;  %v2797_v50 = vunpack.c.l.b16 %v2714_v41  ;;  %5547 = vmatmul.msk.bf16.gmra.mxu2 %vm408_vm0, %v7233_v46  ;;  %v2295_v51 = vadd.f32 %v2249_v37, %v2133_v20  ;;  %v3392_v19 = vunpack.c.l.b16 %v3315_v28  ;;  %v7419_v28 = vld [vmem:[%s8717_s3] ss:$0 sm:$0xff] }
 0x34b   : > { %v7359_v61 = vpop.f32.mrf.mxu1  ;;  %v1781_v37 = vadd.f32 %v7079_v38, %v7087_v9  ;;  %v3281_v9 = vld [vmem:[#allocation3 + $0x81] sm:$0xff] }
 0x34c   : > { %v2527_v25 = vadd.f32 %v7133_v40, %v2491_v55  ;;  %v7362_v29 = vpack.c.b16 %v2797_v50, %v2796_v1  ;;  %v3317_v58 = vpack.c.bf16 %v3281_v9, %v3281_v9 }
 0x34d   : > { %v2090_v11 = vpop.f32.mrf.mxu2 }
 0x34e   : > { %v2559_v30 = vmax.f32 %v2527_v25, 0.0  ;;  %5520 = vmatmul.msk.bf16.gmra.mxu1 %vm408_vm0, %v7362_v29  ;;  %5587 = vmatmul.msk.bf16.gmra.mxu3 %vm408_vm0, %v7274_v36  ;;  %v2134_v56 = vadd.f32 %v2090_v11, %v7084_v35  ;;  %v3391_v35 = vunpack.c.l.b16 %v3314_v52  ;;  %v3394_v52 = vunpack.c.l.b16 %v3317_v58 }
 0x34f   : > { %v2409_v59 = vpop.f32.mrf.mxu0  ;;  %v2679_v24 = vld [vmem:[#allocation3 + $0x108] sm:$0xff] }
 0x350   : > { %2646 = vst.msk [vmem:[#allocation3 + $0x111] sm:$0xff] %vm408_vm0, %v2559_v30  ;;  %v2456_v23 = vadd.f32 %v2409_v59, %v2294_v54  ;;  %v2715_v4 = vpack.c.bf16 %v2679_v24, %v2679_v24  ;;  %v7398_v39 = vpack.c.b16 %v3392_v19, %v3391_v35 }
 0x351   : > { %v2252_v10 = vpop.f32.mrf.mxu3 }
 0x352   : > { %v2492_v46 = vmul.f32 %v7127_v21, %v2456_v23  ;;  %5626 = vmatmul.msk.bf16.gmra.mxu0 %vm408_vm0, %v7373_v31  ;;  %v2798_v26 = vunpack.c.l.b16 %v2715_v4  ;;  %v2296_v55 = vadd.f32 %v2252_v10, %v2134_v56  ;;  %v5899_v56 = vld [vmem:[%s8718_s4 + $0x80] sm:$0xff] }
 0x353   : > { %v7378_v62 = vpop.f32.mrf.mxu1  ;;  %3672 = vmatpush.bf16.msrb.mxu1 %v5899_v56 }
 0x354   : > { %v2528_v2 = vadd.f32 %v7133_v40, %v2492_v46  ;;  %v3280_v46 = vld [vmem:[#allocation3 + $0x79] sm:$0xff] }
 0x355   : > { %v2092_v43 = vpop.f32.mrf.mxu2 }
 0x356   : > { %v2560_v44 = vmax.f32 %v2528_v2, 0.0  ;;  %v2135_v30 = vadd.f32 %v2092_v43, %v1781_v37 }
 0x357   : > { %v2411_v57 = vpop.f32.mrf.mxu0  ;;  %v2680_v17 = vld [vmem:[#allocation3 + $0x110] sm:$0xff] }
 0x358   : > { %2647 = vst.msk [vmem:[#allocation3 + $0x121] sm:$0xff] %vm408_vm0, %v2560_v44  ;;  %v2457_v5 = vadd.f32 %v2411_v57, %v2295_v51  ;;  %v2716_v60 = vpack.c.bf16 %v2680_v17, %v2680_v17  ;;  %v3316_v44 = vpack.c.bf16 %v3280_v46, %v3280_v46 }
 0x359   : > { %v2254_v41 = vpop.f32.mrf.mxu3 }
 0x35a   : > { %v2493_v12 = vmul.f32 %v7127_v21, %v2457_v5  ;;  %v2799_v47 = vunpack.c.l.b16 %v2716_v60  ;;  %5548 = vmatmul.msk.bf16.gmra.mxu2 %vm408_vm0, %v7252_v34  ;;  %v2297_v23 = vadd.f32 %v2254_v41, %v2135_v30 }
 0x35b   : > { %v7384_v16 = vpop.f32.mrf.mxu1 }
 0x35c   : > { %v2529_v6 = vadd.f32 %v7133_v40, %v2493_v12  ;;  %v7387_v8 = vpack.c.b16 %v2799_v47, %v2798_v26  ;;  %v3393_v47 = vunpack.c.l.b16 %v3316_v44 }
 0x35d   : > { %v2095_v54 = vpop.f32.mrf.mxu2 }
 0x35e   : > { %v2561_v1 = vmax.f32 %v2529_v6, 0.0  ;;  %5521 = vmatmul.msk.bf16.gmra.mxu1 %vm408_vm0, %v7387_v8  ;;  %5588 = vmatmul.msk.bf16.gmra.mxu3 %vm408_vm0, %v7291_v22  ;;  %v2136_v4 = vadd.f32 %v2095_v54, %v7098_v27  ;;  %v1783_v6 = vadd.f32 %v7095_v49, %v7101_v48  ;;  %v3283_v48 = vld [vmem:[#allocation3 + $0x99] sm:$0xff] }
 0x35f   : > { %v2414_v50 = vpop.f32.mrf.mxu0  ;;  %v2681_v42 = vld [vmem:[#allocation3 + $0x120] sm:$0xff] }
 0x360   : > { %2648 = vst.msk [vmem:[#allocation3 + $0x129] sm:$0xff] %vm408_vm0, %v2561_v1  ;;  %v2458_v25 = vadd.f32 %v2414_v50, %v2296_v55  ;;  %v2717_v20 = vpack.c.bf16 %v2681_v42, %v2681_v42  ;;  %v7436_v55 = vpack.c.b16 %v3394_v52, %v3393_v47 }
 0x361   : > { %v2257_v63 = vpop.f32.mrf.mxu3 }
 0x362   : > { %v2494_v34 = vmul.f32 %v7127_v21, %v2458_v25  ;;  %5627 = vmatmul.msk.bf16.gmra.mxu0 %vm408_vm0, %v7398_v39  ;;  %v2800_v57 = vunpack.c.l.b16 %v2717_v20  ;;  %v2298_v12 = vadd.f32 %v2257_v63, %v2136_v4  ;;  %v3282_v63 = vld [vmem:[#allocation3 + $0x91] sm:$0xff] }
 0x363   : > { %v7403_v59 = vpop.f32.mrf.mxu1  ;;  %v3318_v46 = vpack.c.bf16 %v3282_v63, %v3282_v63  ;;  %v8801_v63 = vld [vmem:[#allocation42_spill] sm:$0xff] }
 0x364   : > { %v2530_v38 = vadd.f32 %v7133_v40, %v2494_v34  ;;  %v7411_v40 = vld [vmem:[%s8716_s2] ss:$0 sm:$0xff] }
 0x365   : > { %v2097_v51 = vpop.f32.mrf.mxu2 }
 0x366   : > { %v2562_v11 = vmax.f32 %v2530_v38, 0.0 }
 0x367   : > { %v2416_v10 = vpop.f32.mrf.mxu0  ;;  %v2682_v24 = vld [vmem:[#allocation3 + $0x128] sm:$0xff] }
 0x368   : > { %2649 = vst.msk [vmem:[#allocation3 + $0x139] sm:$0xff] %vm408_vm0, %v2562_v11  ;;  %v2459_v2 = vadd.f32 %v2416_v10, %v2297_v23  ;;  %v2718_v21 = vpack.c.bf16 %v2682_v24, %v2682_v24  ;;  %v3319_v11 = vpack.c.bf16 %v3283_v48, %v3283_v48 }
 0x369   : > { %v2259_v5 = vpop.f32.mrf.mxu3 }
 0x36a   : > { %v2495_v32 = vmul.f32 %v7411_v40, %v2459_v2  ;;  %v2801_v17 = vunpack.c.l.b16 %v2718_v21  ;;  %5549 = vmatmul.msk.bf16.gmra.mxu2 %vm408_vm0, %v7274_v36  ;;  %v2137_v36 = vadd.f32 %v2097_v51, %v1783_v6 }
 0x36b   : > { %v7414_v60 = vpop.f32.mrf.mxu1 }
 0x36c   : > { %v2531_v43 = vadd.f32 %v7419_v28, %v2495_v32  ;;  %v7422_v27 = vpack.c.b16 %v2801_v17, %v2800_v57  ;;  %v2299_v54 = vadd.f32 %v2259_v5, %v2137_v36  ;;  %v3396_v32 = vunpack.c.l.b16 %v3319_v11 }
 0x36d   : > { %v2100_v1 = vpop.f32.mrf.mxu2 }
 0x36e   : > { %v2563_v26 = vmax.f32 %v2531_v43, 0.0  ;;  %5522 = vmatmul.msk.bf16.gmra.mxu1 %vm408_vm0, %v7422_v27  ;;  %5589 = vmatmul.msk.bf16.gmra.mxu3 %vm408_vm0, %v7309_v53  ;;  %v2138_v10 = vadd.f32 %v2100_v1, %v7107_v33  ;;  %v3395_v33 = vunpack.c.l.b16 %v3318_v46  ;;  %v1785_v43 = vadd.f32 %v7110_v13, %v7112_v3  ;;  %v3285_v3 = vld [vmem:[#allocation3 + $0xb1] sm:$0xff] }
 0x36f   : > { %v2419_v41 = vpop.f32.mrf.mxu0  ;;  %v2683_v25 = vld [vmem:[#allocation3 + $0x138] sm:$0xff] }
 0x370   : > { %2650 = vst.msk [vmem:[#allocation3 + $0x141] sm:$0xff] %vm408_vm0, %v2563_v26  ;;  %v2460_v19 = vadd.f32 %v2419_v41, %v2298_v12  ;;  %v2719_v34 = vpack.c.bf16 %v2683_v25, %v2683_v25  ;;  %v7461_v56 = vpack.c.b16 %v3396_v32, %v3395_v33  ;;  %v8802_v32 = vld [vmem:[#allocation43_spill] sm:$0xff] }
 0x371   : > { %v2262_v50 = vpop.f32.mrf.mxu3 }
 0x372   : > { %v2496_v35 = vmul.f32 %v7411_v40, %v2460_v19  ;;  %5628 = vmatmul.msk.bf16.gmra.mxu0 %vm408_vm0, %v7436_v55  ;;  %v2802_v2 = vunpack.c.l.b16 %v2719_v34  ;;  %v2300_v57 = vadd.f32 %v2262_v50, %v2138_v10 }
 0x373   : > { %v7441_v37 = vpop.f32.mrf.mxu1 }
 0x374   : > { %v2532_v49 = vadd.f32 %v7419_v28, %v2496_v35  ;;  %v3284_v35 = vld [vmem:[#allocation3 + $0xa9] sm:$0xff] }
 0x375   : > { %v2102_v20 = vpop.f32.mrf.mxu2  ;;  %v3320_v34 = vpack.c.bf16 %v3284_v35, %v3284_v35 }
 0x376   : > { %v2564_v30 = vmax.f32 %v2532_v49, 0.0  ;;  %v2139_v26 = vadd.f32 %v2102_v20, %v1785_v43 }
 0x377   : > { %v2421_v42 = vpop.f32.mrf.mxu0  ;;  %v2684_v38 = vld [vmem:[#allocation3 + $0x140] sm:$0xff] }
 0x378   : > { %2651 = vst.msk [vmem:[#allocation3 + $0x151] sm:$0xff] %vm408_vm0, %v2564_v30  ;;  %v2461_v9 = vadd.f32 %v2421_v42, %v2299_v54  ;;  %v2720_v23 = vpack.c.bf16 %v2684_v38, %v2684_v38  ;;  %v3321_v54 = vpack.c.bf16 %v3285_v3, %v3285_v3 }
 0x379   : > { %v2264_v58 = vpop.f32.mrf.mxu3 }
 0x37a   : > { %v2497_v24 = vmul.f32 %v7411_v40, %v2461_v9  ;;  %v2803_v21 = vunpack.c.l.b16 %v2720_v23  ;;  %5550 = vmatmul.msk.bf16.gmra.mxu2 %vm408_vm0, %v7291_v22  ;;  %v2301_v19 = vadd.f32 %v2264_v58, %v2139_v26  ;;  %v3397_v58 = vunpack.c.l.b16 %v3320_v34 }
 0x37b   : > { %v7447_v51 = vpop.f32.mrf.mxu1 }
 0x37c   : > { %v2533_v44 = vadd.f32 %v7419_v28, %v2497_v24  ;;  %v7450_v4 = vpack.c.b16 %v2803_v21, %v2802_v2  ;;  %v3398_v24 = vunpack.c.l.b16 %v3321_v54 }
 0x37d   : > { %v2105_v12 = vpop.f32.mrf.mxu2 }
 0x37e   : > { %v2565_v17 = vmax.f32 %v2533_v44, 0.0  ;;  %5523 = vmatmul.msk.bf16.gmra.mxu1 %vm408_vm0, %v7450_v4  ;;  %5590 = vmatmul.msk.bf16.gmra.mxu3 %vm408_vm0, %v7337_v15  ;;  %v2140_v42 = vadd.f32 %v2105_v12, %v8801_v63  ;;  %v7486_v33 = vpack.c.b16 %v3398_v24, %v3397_v58 }
 0x37f   : > { %v2424_v5 = vpop.f32.mrf.mxu0  ;;  %v2685_v6 = vld [vmem:[#allocation3 + $0x150] sm:$0xff] }
 0x380   : > { %2652 = vst.msk [vmem:[#allocation3 + $0x159] sm:$0xff] %vm408_vm0, %v2565_v17  ;;  %v2462_v52 = vadd.f32 %v2424_v5, %v2300_v57  ;;  %v2721_v36 = vpack.c.bf16 %v2685_v6, %v2685_v6  ;;  %v1787_v57 = vadd.f32 %v7328_v18, %v8802_v32  ;;  %v3287_v6 = vld [vmem:[#allocation3 + $0xc9] sm:$0xff] }
 0x381   : > { %v2267_v47 = vpop.f32.mrf.mxu3 }
 0x382   : > { %v2498_v22 = vmul.f32 %v7411_v40, %v2462_v52  ;;  %5629 = vmatmul.msk.bf16.gmra.mxu0 %vm408_vm0, %v7461_v56  ;;  %v2804_v9 = vunpack.c.l.b16 %v2721_v36  ;;  %v2302_v2 = vadd.f32 %v2267_v47, %v2140_v42 }
 0x383   : > { %v7466_v41 = vpop.f32.mrf.mxu1 }
 0x384   : > { %v2534_v13 = vadd.f32 %v7419_v28, %v2498_v22 }
 0x385   : > { %v2107_v30 = vpop.f32.mrf.mxu2 }
 0x386   : > { %v2566_v1 = vmax.f32 %v2534_v13, 0.0  ;;  %v2141_v43 = vadd.f32 %v2107_v30, %v1787_v57 }
 0x387   : > { %v2426_v50 = vpop.f32.mrf.mxu0  ;;  %v2686_v25 = vld [vmem:[#allocation3 + $0x158] sm:$0xff] }
 0x388   : > { %2653 = vst.msk [vmem:[#allocation3 + $0x169] sm:$0xff] %vm408_vm0, %v2566_v1  ;;  %v2463_v49 = vadd.f32 %v2426_v50, %v2301_v19  ;;  %v2722_v48 = vpack.c.bf16 %v2686_v25, %v2686_v25  ;;  %v3286_v1 = vld [vmem:[#allocation3 + $0xc1] sm:$0xff]  ;;  %v3323_v25 = vpack.c.bf16 %v3287_v6, %v3287_v6 }
 0x389   : > { %v2269_v11 = vpop.f32.mrf.mxu3 }
 0x38a   : > { %v2499_v38 = vmul.f32 %v7411_v40, %v2463_v49  ;;  %v2805_v23 = vunpack.c.l.b16 %v2722_v48  ;;  %5551 = vmatmul.msk.bf16.gmra.mxu2 %vm408_vm0, %v7309_v53  ;;  %v2303_v13 = vadd.f32 %v2269_v11, %v2141_v43  ;;  %v3322_v48 = vpack.c.bf16 %v3286_v1, %v3286_v1  ;;  %v5914_v43 = vld [vmem:[%s8718_s4 + $0xb8] sm:$0xff] }
 0x38b   : > { %v7472_v20 = vpop.f32.mrf.mxu1  ;;  %4347 = vmatpush.bf16.msra.mxu0 %v5914_v43 }
 0x38c   : > { %v2535_v46 = vadd.f32 %v7419_v28, %v2499_v38  ;;  %v7475_v10 = vpack.c.b16 %v2805_v23, %v2804_v9 }
 0x38d   : > { %v3028_v5 = vpop.f32.mrf.mxu2 }
 0x38e   : > { %v2567_v21 = vmax.f32 %v2535_v46, 0.0  ;;  %5524 = vmatmul.msk.bf16.gmra.mxu1 %vm408_vm0, %v7475_v10  ;;  %5591 = vmatmul.msk.bf16.gmra.mxu3 %vm408_vm0, %v7362_v29  ;;  %v3029_v53 = vadd.f32 %v3028_v5, %v7334_v0  ;;  %v3400_v46 = vunpack.c.l.b16 %v3323_v25 }
 0x38f   : > { %v2429_v44 = vpop.f32.mrf.mxu0  ;;  %v2687_v18 = vld [vmem:[#allocation3 + $0x168] sm:$0xff] }
 0x390   : > { %2654 = vst.msk [vmem:[#allocation3 + $0x171] sm:$0xff] %vm408_vm0, %v2567_v21  ;;  %v2464_v17 = vadd.f32 %v2429_v44, %v2302_v2  ;;  %v2723_v19 = vpack.c.bf16 %v2687_v18, %v2687_v18  ;;  %v5906_v21 = vld [vmem:[%s8718_s4 + $0xf8] sm:$0xff] }
 0x391   : > { %v3158_v12 = vpop.f32.mrf.mxu3  ;;  %3831 = vmatpush.bf16.msra.mxu2 %v5906_v21 }
 0x392   : > { %v2500_v52 = vmul.f32 %v7411_v40, %v2464_v17  ;;  %5630 = vmatmul.msk.bf16.gmra.mxu0 %vm408_vm0, %v7486_v33  ;;  %v3238_v22 = vadd.f32 %v3158_v12, %v3029_v53  ;;  %v2806_v34 = vunpack.c.l.b16 %v2723_v19  ;;  %v3289_v53 = vld [vmem:[#allocation3 + $0xe1] sm:$0xff] }
 0x393   : > { %v7492_v26 = vpop.f32.mrf.mxu1  ;;  %v3325_v6 = vpack.c.bf16 %v3289_v53, %v3289_v53 }
 0x394   : > { %v2536_v47 = vadd.f32 %v7419_v28, %v2500_v52 }
 0x395   : > { %v3030_v49 = vpop.f32.mrf.mxu2 }
 0x396   : > { %v2568_v3 = vmax.f32 %v2536_v47, 0.0  ;;  %v3031_v54 = vadd.f32 %v3030_v49, %v7353_v7  ;;  %v3399_v7 = vunpack.c.l.b16 %v3322_v48  ;;  %v3402_v49 = vunpack.c.l.b16 %v3325_v6  ;;  %v5918_v48 = vld [vmem:[%s8718_s4 + $0x118] sm:$0xff] }
 0x397   : > { %v2431_v36 = vpop.f32.mrf.mxu0  ;;  %v2688_v35 = vld [vmem:[#allocation3 + $0x170] sm:$0xff]  ;;  %4509 = vmatpush.bf16.msra.mxu1 %v5918_v48 }
 0x398   : > { %2655 = vst.msk [vmem:[#allocation3 + $0x181] sm:$0xff] %vm408_vm0, %v2568_v3  ;;  %v2465_v0 = vadd.f32 %v2431_v36, %v2303_v13  ;;  %v2724_v50 = vpack.c.bf16 %v2688_v35, %v2688_v35 }
 0x399   : > { %v3160_v42 = vpop.f32.mrf.mxu3 }
 0x39a   : > { %v2501_v30 = vmul.f32 %v7411_v40, %v2465_v0  ;;  %v2807_v63 = vunpack.c.l.b16 %v2724_v50  ;;  %v3239_v9 = vadd.f32 %v3160_v42, %v3031_v54  ;;  %5552 = vmatmul.msk.bf16.gmra.mxu2 %vm408_vm0, %v7337_v15  ;;  %v5910_v15 = vld [vmem:[%s8718_s4 + $0x58] sm:$0xff] }
 0x39b   : > { %v7498_v38 = vpop.f32.mrf.mxu1  ;;  %4185 = vmatpush.bf16.msra.mxu3 %v5910_v15 }
 0x39c   : > { %v2537_v23 = vadd.f32 %v7419_v28, %v2501_v30  ;;  %v7501_v11 = vpack.c.b16 %v2807_v63, %v2806_v34  ;;  %v7512_v28 = vpack.c.b16 %v3400_v46, %v3399_v7  ;;  %v3291_v46 = vld [vmem:[#allocation3 + $0xf9] sm:$0xff]  ;;  %v3290_v7 = vld [vmem:[#allocation3 + $0xf1] sm:$0xff] }
 0x39d   : > { %v3033_v58 = vpop.f32.mrf.mxu2  ;;  %v3327_v21 = vpack.c.bf16 %v3291_v46, %v3291_v46 }
 0x39e   : > { %v2569_v24 = vmax.f32 %v2537_v23, 0.0  ;;  %5525 = vmatmul.msk.bf16.gmra.mxu1 %vm408_vm0, %v7501_v11  ;;  %5592 = vmatmul.msk.bf16.gmra.mxu3 %vm408_vm0, %v7387_v8  ;;  %v3034_v44 = vadd.f32 %v3033_v58, %v7359_v61  ;;  %v3288_v61 = vld [vmem:[#allocation3 + $0xd9] sm:$0xff] }
 0x39f   : > { %v3512_v40 = vpop.f32.mrf.mxu0  ;;  %v2689_v17 = vld [vmem:[#allocation3 + $0x180] sm:$0xff]  ;;  %v3324_v36 = vpack.c.bf16 %v3288_v61, %v3288_v61 }
 0x3a0   : > { %2656 = vst.msk [vmem:[#allocation3 + $0x189] sm:$0xff] %vm408_vm0, %v2569_v24  ;;  %v7510_v2 = vadd.f32 %v3512_v40, %v3238_v22  ;;  %v2725_v52 = vpack.c.bf16 %v2689_v17, %v2689_v17 }
 0x3a1   : > { %v3163_v32 = vpop.f32.mrf.mxu3 }
 0x3a2   : > { %5631 = vmatmul.msk.bf16.gmra.mxu0 %vm408_vm0, %v7512_v28  ;;  %v3240_v5 = vadd.f32 %v3163_v32, %v3034_v44  ;;  %v2808_v19 = vunpack.c.l.b16 %v2725_v52  ;;  %v3326_v44 = vpack.c.bf16 %v3290_v7, %v3290_v7 }
 0x3a3   : > { %v7523_v57 = vpop.f32.mrf.mxu1 }
 0x3a4   : > { %v3403_v43 = vunpack.c.l.b16 %v3326_v44 }
 0x3a5   : > { %v3035_v13 = vpop.f32.mrf.mxu2 }
 0x3a6   : > { %v3036_v3 = vadd.f32 %v3035_v13, %v7378_v62  ;;  %v3401_v62 = vunpack.c.l.b16 %v3324_v36  ;;  %v3292_v13 = vld [vmem:[#allocation3 + $0x109] sm:$0xff] }
 0x3a7   : > { %v3514_v12 = vpop.f32.mrf.mxu0  ;;  %v2690_v18 = vld [vmem:[#allocation3 + $0x188] sm:$0xff] }
 0x3a8   : > { %v7528_v22 = vadd.f32 %v3514_v12, %v3239_v9  ;;  %v2726_v47 = vpack.c.bf16 %v2690_v18, %v2690_v18  ;;  %v7546_v34 = vpack.c.b16 %v3402_v49, %v3401_v62 }
 0x3a9   : > { %v3165_v35 = vpop.f32.mrf.mxu3 }
 0x3aa   : > { %v2809_v1 = vunpack.c.l.b16 %v2726_v47  ;;  %v3241_v50 = vadd.f32 %v3165_v35, %v3036_v3  ;;  %5553 = vmatmul.msk.bf16.gmra.mxu2 %vm408_vm0, %v7362_v29  ;;  %v3328_v35 = vpack.c.bf16 %v3292_v13, %v3292_v13 }
 0x3ab   : > { %v7531_v0 = vpop.f32.mrf.mxu1 }
 0x3ac   : > { %v7533_v25 = vpack.c.b16 %v2809_v1, %v2808_v19  ;;  %v3405_v62 = vunpack.c.l.b16 %v3328_v35  ;;  %v5908_v35 = vld [vmem:[%s8718_s4 + $0x48] sm:$0xff] }
 0x3ad   : > { %v3038_v63 = vpop.f32.mrf.mxu2 }
 0x3ae   : > { %5526 = vmatmul.msk.bf16.gmra.mxu1 %vm408_vm0, %v7533_v25  ;;  %5593 = vmatmul.msk.bf16.gmra.mxu3 %vm408_vm0, %v7422_v27  ;;  %v3039_v42 = vadd.f32 %v3038_v63, %v7384_v16 }
 0x3af   : > { %v3517_v54 = vpop.f32.mrf.mxu0 }
 0x3b0   : > { %v7544_v30 = vadd.f32 %v3517_v54, %v3240_v5  ;;  %v3404_v5 = vunpack.c.l.b16 %v3327_v21  ;;  %v3294_v21 = vld [vmem:[#allocation3 + $0x121] sm:$0xff] }
 0x3b1   : > { %v3168_v29 = vpop.f32.mrf.mxu3 }
 0x3b2   : > { %5632 = vmatmul.msk.bf16.gmra.mxu0 %vm408_vm0, %v7546_v34  ;;  %v3242_v23 = vadd.f32 %v3168_v29, %v3039_v42 }
 0x3b3   : > { %v7551_v9 = vpop.f32.mrf.mxu1 }
 0x3b5   : > { %v3040_v15 = vpop.f32.mrf.mxu2 }
 0x3b6   : > { %v3041_v58 = vadd.f32 %v3040_v15, %v7403_v59  ;;  %v7566_v59 = vpack.c.b16 %v3404_v5, %v3403_v43 }
 0x3b7   : > { %v3519_v24 = vpop.f32.mrf.mxu0 }
 0x3b8   : > { %v7553_v40 = vadd.f32 %v3519_v24, %v3241_v50  ;;  %v3295_v24 = vld [vmem:[#allocation3 + $0x129] sm:$0xff] }
 0x3b9   : > { %v3170_v32 = vpop.f32.mrf.mxu3 }
 0x3ba   : > { %v3243_v16 = vadd.f32 %v3170_v32, %v3041_v58  ;;  %5554 = vmatmul.msk.bf16.gmra.mxu2 %vm408_vm0, %v7387_v8  ;;  %v3331_v58 = vpack.c.bf16 %v3295_v24, %v3295_v24 }
 0x3bb   : > { %v7556_v17 = vpop.f32.mrf.mxu1 }
 0x3bd   : > { %v3043_v12 = vpop.f32.mrf.mxu2 }
 0x3be   : > { %5663 = vmatmul.msk.bf16.vlgmr.msrb.gmra.mxu1 %vm408_vm0, %v7323_v14  ;;  %5594 = vmatmul.msk.bf16.gmra.mxu3 %vm408_vm0, %v7450_v4  ;;  %v3044_v18 = vadd.f32 %v3043_v12, %v7414_v60  ;;  %v3293_v14 = vld [vmem:[#allocation3 + $0x111] sm:$0xff] }
 0x3bf   : > { %v3522_v53 = vpop.f32.mrf.mxu0  ;;  %v3329_v19 = vpack.c.bf16 %v3293_v14, %v3293_v14 }
 0x3c0   : > { %v7564_v52 = vadd.f32 %v3522_v53, %v3242_v23  ;;  %v3408_v53 = vunpack.c.l.b16 %v3331_v58 }
 0x3c1   : > { %v3173_v61 = vpop.f32.mrf.mxu3  ;;  %v3406_v48 = vunpack.c.l.b16 %v3329_v19 }
 0x3c2   : > { %5633 = vmatmul.msk.bf16.gmra.mxu0 %vm408_vm0, %v7566_v59  ;;  %v3244_v47 = vadd.f32 %v3173_v61, %v3044_v18 }
 0x3c3   : > { %v7571_v8 = vpop.f32.mrf.mxu1 }
 0x3c5   : > { %v3045_v1 = vpop.f32.mrf.mxu2 }
 0x3c6   : > { %v3046_v36 = vadd.f32 %v3045_v1, %v7441_v37  ;;  %v7586_v37 = vpack.c.b16 %v3406_v48, %v3405_v62  ;;  %v3296_v48 = vld [vmem:[#allocation3 + $0x139] sm:$0xff] }
 0x3c7   : > { %v3524_v6 = vpop.f32.mrf.mxu0 }
 0x3c8   : > { %v7573_v3 = vadd.f32 %v3524_v6, %v3243_v16  ;;  %v3330_v16 = vpack.c.bf16 %v3294_v21, %v3294_v21  ;;  %v5907_v21 = vld [vmem:[%s8718_s4 + $0x40] sm:$0xff] }
 0x3c9   : > { %v3175_v50 = vpop.f32.mrf.mxu3 }
 0x3ca   : > { %v3245_v60 = vadd.f32 %v3175_v50, %v3046_v36  ;;  %5555 = vmatmul.msk.bf16.gmra.mxu2 %vm408_vm0, %v7422_v27  ;;  %v3407_v12 = vunpack.c.l.b16 %v3330_v16  ;;  %v5904_v36 = vld [vmem:[%s8718_s4 + $0xe8] sm:$0xff]  ;;  %v3297_v50 = vld [vmem:[#allocation3 + $0x141] sm:$0xff] }
 0x3cb   : > { %v7576_v49 = vpop.f32.mrf.mxu1 }
 0x3cd   : > { %v3048_v42 = vpop.f32.mrf.mxu2 }
 0x3ce   : > { %5664 = vmatmul.msk.bf16.gmra.mxu1 %vm408_vm0, %v7348_v45  ;;  %5595 = vmatmul.msk.bf16.gmra.mxu3 %vm408_vm0, %v7475_v10  ;;  %v3049_v29 = vadd.f32 %v3048_v42, %v7447_v51 }
 0x3cf   : > { %v3527_v54 = vpop.f32.mrf.mxu0 }
 0x3d0   : > { %v7584_v63 = vadd.f32 %v3527_v54, %v3244_v47  ;;  %v5905_v47 = vld [vmem:[%s8718_s4 + $0xf0] sm:$0xff]  ;;  %v3333_v54 = vpack.c.bf16 %v3297_v50, %v3297_v50 }
 0x3d1   : > { %v3178_v23 = vpop.f32.mrf.mxu3  ;;  %3832 = vmatpush.bf16.msra.mxu2 %v5905_v47 }
 0x3d2   : > { %5634 = vmatmul.msk.bf16.gmra.mxu0 %vm408_vm0, %v7586_v37  ;;  %v3246_v46 = vadd.f32 %v3178_v23, %v3049_v29  ;;  %v3332_v23 = vpack.c.bf16 %v3296_v48, %v3296_v48 }
 0x3d3   : > { %v7591_v27 = vpop.f32.mrf.mxu1 }
 0x3d5   : > { %v3050_v44 = vpop.f32.mrf.mxu2  ;;  %3833 = vmatpush.bf16.msra.mxu2 %v5904_v36  ;;  %v3299_v36 = vld [vmem:[#allocation3 + $0x159] sm:$0xff] }
 0x3d6   : > { %v3051_v32 = vadd.f32 %v3050_v44, %v7466_v41  ;;  %v7606_v41 = vpack.c.b16 %v3408_v53, %v3407_v12  ;;  %v3410_v44 = vunpack.c.l.b16 %v3333_v54  ;;  %v2691_v12 = vld [vmem:[#allocation3 + $0x198] sm:$0xff] }
 0x3d7   : > { %v3529_v7 = vpop.f32.mrf.mxu0 }
 0x3d8   : > { %v7593_v15 = vadd.f32 %v3529_v7, %v3245_v60  ;;  %v5903_v7 = vld [vmem:[%s8718_s4 + $0xe0] sm:$0xff] }
 0x3d9   : > { %v3180_v5 = vpop.f32.mrf.mxu3  ;;  %3834 = vmatpush.bf16.msra.mxu2 %v5903_v7 }
 0x3da   : > { %v3247_v51 = vadd.f32 %v3180_v5, %v3051_v32  ;;  %5556 = vmatmul.msk.bf16.gmra.mxu2 %vm408_vm0, %v7450_v4  ;;  %v5909_v4 = vld [vmem:[%s8718_s4 + $0x50] sm:$0xff] }
 0x3db   : > { %v7596_v43 = vpop.f32.mrf.mxu1  ;;  %4186 = vmatpush.bf16.msra.mxu3 %v5909_v4  ;;  %v5917_v32 = vld [vmem:[%s8718_s4 + $0x110] sm:$0xff] }
 0x3dc   : > { %4510 = vmatpush.bf16.msra.mxu1 %v5917_v32 }
 0x3dd   : > { %v3053_v14 = vpop.f32.mrf.mxu2 }
 0x3de   : > { %5665 = vmatmul.msk.bf16.gmra.mxu1 %vm408_vm0, %v7373_v31  ;;  %5596 = vmatmul.msk.bf16.gmra.mxu3 %vm408_vm0, %v7501_v11  ;;  %v3054_v6 = vadd.f32 %v3053_v14, %v7472_v20  ;;  %v5913_v20 = vld [vmem:[%s8718_s4 + $0xb0] sm:$0xff] }
 0x3df   : > { %v3532_v18 = vpop.f32.mrf.mxu0  ;;  %4348 = vmatpush.bf16.msra.mxu0 %v5913_v20  ;;  %4187 = vmatpush.bf16.msra.mxu3 %v5908_v35 }
 0x3e0   : > { %v7604_v61 = vadd.f32 %v3532_v18, %v3246_v46  ;;  %v2692_v18 = vld [vmem:[#allocation3 + $0x1a0] sm:$0xff] }
 0x3e1   : > { %v3183_v13 = vpop.f32.mrf.mxu3 }
 0x3e2   : > { %5635 = vmatmul.msk.bf16.gmra.mxu0 %vm408_vm0, %v7606_v41  ;;  %v3248_v1 = vadd.f32 %v3183_v13, %v3054_v6  ;;  %v2727_v6 = vpack.c.bf16 %v2691_v12, %v2691_v12  ;;  %v2728_v13 = vpack.c.bf16 %v2692_v18, %v2692_v18 }
 0x3e3   : > { %v7617_v19 = vpop.f32.mrf.mxu1  ;;  %4188 = vmatpush.bf16.msra.mxu3 %v5907_v21 }
 0x3e4   : > { %v3119_v35 = vunpack.c.l.b16 %v2727_v6  ;;  %v3120_v20 = vunpack.c.l.b16 %v2728_v13  ;;  %v3301_v6 = vld [vmem:[#allocation3 + $0x171] sm:$0xff] }
 0x3e5   : > { %v3055_v42 = vpop.f32.mrf.mxu2 }
 0x3e6   : > { %v3056_v29 = vadd.f32 %v3055_v42, %v7492_v26  ;;  %v3409_v26 = vunpack.c.l.b16 %v3332_v23 }
 0x3e7   : > { %v3534_v60 = vpop.f32.mrf.mxu0 }
 0x3e8   : > { %v7628_v62 = vadd.f32 %v3534_v60, %v3247_v51  ;;  %v7650_v51 = vpack.c.b16 %v3410_v44, %v3409_v26  ;;  %v3335_v60 = vpack.c.bf16 %v3299_v36, %v3299_v36  ;;  %v3948_v26 = vld [vmem:[#allocation3 + $0x2] sm:$0xff] }
 0x3e9   : > { %v3185_v46 = vpop.f32.mrf.mxu3  ;;  %v3300_v36 = vld [vmem:[#allocation3 + $0x169] sm:$0xff] }
 0x3ea   : > { %v3249_v58 = vadd.f32 %v3185_v46, %v3056_v29  ;;  %5557 = vmatmul.msk.bf16.gmra.mxu2 %vm408_vm0, %v7475_v10  ;;  %v3121_v46 = vpack.c.b16 %v3120_v20, %v3119_v35  ;;  %v3412_v7 = vunpack.c.l.b16 %v3335_v60  ;;  %v3337_v35 = vpack.c.bf16 %v3301_v6, %v3301_v6 }
 0x3eb   : > { %v7631_v24 = vpop.f32.mrf.mxu1 }
 0x3ed   : > { %v3058_v53 = vpop.f32.mrf.mxu2 }
 0x3ee   : > { %5666 = vmatmul.msk.bf16.gmra.mxu1 %vm408_vm0, %v7398_v39  ;;  %5597 = vmatmul.msk.bf16.gmra.mxu3 %vm408_vm0, %v7533_v25  ;;  %v3059_v47 = vadd.f32 %v3058_v53, %v7498_v38 }
 0x3ef   : > { %v3537_v16 = vpop.f32.mrf.mxu0 }
 0x3f0   : > { %v7648_v5 = vadd.f32 %v3537_v16, %v3248_v1  ;;  %v3298_v1 = vld [vmem:[#allocation3 + $0x151] sm:$0xff] }
 0x3f1   : > { %v3188_v10 = vpop.f32.mrf.mxu3  ;;  %v3334_v54 = vpack.c.bf16 %v3298_v1, %v3298_v1  ;;  %v3949_v16 = vld [vmem:[#allocation3 + $0xa] sm:$0xff] }
 0x3f2   : > { %5636 = vmatmul.msk.bf16.gmra.mxu0 %vm408_vm0, %v7650_v51  ;;  %v3250_v14 = vadd.f32 %v3188_v10, %v3059_v47  ;;  %v3984_v47 = vpack.c.bf16 %v3948_v26, %v3948_v26  ;;  %v3985_v10 = vpack.c.bf16 %v3949_v16, %v3949_v16 }
 0x3f3   : > { %v7655_v4 = vpop.f32.mrf.mxu1  ;;  %v3411_v21 = vunpack.c.l.b16 %v3334_v54 }
 0x3f4   : > { %v4062_v1 = vunpack.c.l.b16 %v3985_v10 }
 0x3f5   : > { %v3060_v48 = vpop.f32.mrf.mxu2 }
 0x3f6   : > { %v3061_v38 = vadd.f32 %v3060_v48, %v7523_v57  ;;  %v7669_v57 = vpack.c.b16 %v3412_v7, %v3411_v21  ;;  %v3336_v48 = vpack.c.bf16 %v3300_v36, %v3300_v36  ;;  %v3414_v21 = vunpack.c.l.b16 %v3337_v35 }
 0x3f7   : > { %v3539_v25 = vpop.f32.mrf.mxu0 }
 0x3f8   : > { %v7657_v50 = vadd.f32 %v3539_v25, %v3249_v58  ;;  %v4061_v25 = vunpack.c.l.b16 %v3984_v47 }
 0x3f9   : > { %v3190_v42 = vpop.f32.mrf.mxu3 }
 0x3fa   : > { %v3251_v23 = vadd.f32 %v3190_v42, %v3061_v38  ;;  %5558 = vmatmul.msk.bf16.gmra.mxu2 %vm408_vm0, %v7501_v11  ;;  %v5911_v42 = vld [vmem:[%s8718_s4 + $0xa0] sm:$0xff]  ;;  %v4093_v7 = vpack.c.b16 %v4062_v1, %v4061_v25 }
 0x3fb   : > { %v7660_v29 = vpop.f32.mrf.mxu1 }
 0x3fd   : > { %v3063_v32 = vpop.f32.mrf.mxu2 }
 0x3fe   : > { %5667 = vmatmul.msk.bf16.gmra.mxu1 %vm408_vm0, %v7436_v55  ;;  %5598 = vmatmul.msk.bf16.gmra.mxu3 %vm408_vm0, %v3121_v46  ;;  %v3064_v53 = vadd.f32 %v3063_v32, %v7531_v0 }
 0x3ff   : > { %v3542_v58 = vpop.f32.mrf.mxu0 }
 0x400   : > { %v7667_v44 = vadd.f32 %v3542_v58, %v3250_v14  ;;  %v5912_v14 = vld [vmem:[%s8718_s4 + $0xa8] sm:$0xff] }
 0x401   : > { %v3193_v11 = vpop.f32.mrf.mxu3  ;;  %4349 = vmatpush.bf16.msra.mxu0 %v5912_v14 }
 0x402   : > { %5637 = vmatmul.msk.bf16.gmra.mxu0 %vm408_vm0, %v7669_v57  ;;  %v3252_v18 = vadd.f32 %v3193_v11, %v3064_v53  ;;  %v3950_v11 = vld [vmem:[#allocation3 + $0x1a] sm:$0xff] }
 0x403   : > { %v7674_v12 = vpop.f32.mrf.mxu1  ;;  %v3986_v14 = vpack.c.bf16 %v3950_v11, %v3950_v11 }
 0x405   : > { %v3065_v20 = vpop.f32.mrf.mxu2  ;;  %4350 = vmatpush.bf16.msra.mxu0 %v5911_v42  ;;  %v4063_v1 = vunpack.c.l.b16 %v3986_v14 }
 0x406   : > { %v3066_v60 = vadd.f32 %v3065_v20, %v7551_v9 }
 0x407   : > { %v3544_v13 = vpop.f32.mrf.mxu0 }
 0x408   : > { %v7679_v0 = vadd.f32 %v3544_v13, %v3251_v23  ;;  %v3413_v23 = vunpack.c.l.b16 %v3336_v48 }
 0x409   : > { %v3195_v38 = vpop.f32.mrf.mxu3 }
 0x40a   : > { %v3253_v46 = vadd.f32 %v3195_v38, %v3066_v60  ;;  %5703 = vmatmul.msk.bf16.vlgmr.msra.gmra.mxu2 %vm408_vm0, %v7348_v45  ;;  %v7694_v32 = vpack.c.b16 %v3414_v21, %v3413_v23  ;;  %v3951_v45 = vld [vmem:[#allocation3 + $0x22] sm:$0xff]  ;;  %v3952_v21 = vld [vmem:[#allocation3 + $0x32] sm:$0xff]  ;;  %v3953_v23 = vld [vmem:[#allocation3 + $0x3a] sm:$0xff] }
 0x40b   : > { %v7682_v54 = vpop.f32.mrf.mxu1  ;;  %v3987_v6 = vpack.c.bf16 %v3951_v45, %v3951_v45 }
 0x40d   : > { %v3068_v26 = vpop.f32.mrf.mxu2  ;;  %v4064_v35 = vunpack.c.l.b16 %v3987_v6 }
 0x40e   : > { %5668 = vmatmul.msk.bf16.gmra.mxu1 %vm408_vm0, %v7461_v56  ;;  %5743 = vmatmul.msk.bf16.vlgmr.msra.gmra.mxu3 %vm408_vm0, %v4093_v7  ;;  %v3069_v16 = vadd.f32 %v3068_v26, %v7556_v17  ;;  %v3988_v26 = vpack.c.bf16 %v3952_v21, %v3952_v21 }
 0x40f   : > { %v3547_v9 = vpop.f32.mrf.mxu0  ;;  %v4094_v48 = vpack.c.b16 %v4064_v35, %v4063_v1 }
 0x410   : > { %v7692_v58 = vadd.f32 %v3547_v9, %v3252_v18  ;;  %v4065_v14 = vunpack.c.l.b16 %v3988_v26 }
 0x411   : > { %v3198_v53 = vpop.f32.mrf.mxu3 }
 0x412   : > { %5638 = vmatmul.msk.bf16.gmra.mxu0 %vm408_vm0, %v7694_v32  ;;  %v3254_v10 = vadd.f32 %v3198_v53, %v3069_v16  ;;  %v3989_v16 = vpack.c.bf16 %v3953_v23, %v3953_v23 }
 0x413   : > { %v7699_v47 = vpop.f32.mrf.mxu1 }
 0x414   : > { %v4066_v6 = vunpack.c.l.b16 %v3989_v16 }
 0x415   : > { %v3070_v18 = vpop.f32.mrf.mxu2 }
 0x416   : > { %v3071_v25 = vadd.f32 %v3070_v18, %v7571_v8  ;;  %v7727_v1 = vpack.c.b16 %v4066_v6, %v4065_v14 }
 0x417   : > { %v3549_v13 = vpop.f32.mrf.mxu0 }
 0x418   : > { %v7701_v36 = vadd.f32 %v3549_v13, %v3253_v46 }
 0x419   : > { %v3200_v17 = vpop.f32.mrf.mxu3 }
 0x41a   : > { %v3255_v60 = vadd.f32 %v3200_v17, %v3071_v25  ;;  %5704 = vmatmul.msk.bf16.gmra.mxu2 %vm408_vm0, %v7373_v31  ;;  %v5916_v25 = vld [vmem:[%s8718_s4 + $0x108] sm:$0xff] }
 0x41b   : > { %v7704_v20 = vpop.f32.mrf.mxu1  ;;  %4511 = vmatpush.bf16.msra.mxu1 %v5916_v25 }
 0x41d   : > { %v3073_v46 = vpop.f32.mrf.mxu2 }
 0x41e   : > { %5669 = vmatmul.msk.bf16.gmra.mxu1 %vm408_vm0, %v7486_v33  ;;  %5744 = vmatmul.msk.bf16.gmra.mxu3 %vm408_vm0, %v4094_v48  ;;  %v3074_v8 = vadd.f32 %v3073_v46, %v7576_v49 }
 0x41f   : > { %v3552_v38 = vpop.f32.mrf.mxu0 }
 0x420   : > { %v7711_v42 = vadd.f32 %v3552_v38, %v3254_v10  ;;  %v3955_v38 = vld [vmem:[#allocation3 + $0x52] sm:$0xff] }
 0x421   : > { %v3203_v7 = vpop.f32.mrf.mxu3  ;;  %v3991_v21 = vpack.c.bf16 %v3955_v38, %v3955_v38 }
 0x422   : > { %5783 = vmatmul.msk.bf16.vlgmr.msra.gmra.mxu0 %vm408_vm0, %v4094_v48  ;;  %v3256_v31 = vadd.f32 %v3203_v7, %v3074_v8 }
 0x423   : > { %v7715_v9 = vpop.f32.mrf.mxu1 }
 0x425   : > { %v3075_v45 = vpop.f32.mrf.mxu2 }
 0x426   : > { %v3076_v10 = vadd.f32 %v3075_v45, %v7591_v27  ;;  %v4068_v45 = vunpack.c.l.b16 %v3991_v21 }
 0x427   : > { %v3554_v53 = vpop.f32.mrf.mxu0 }
 0x428   : > { %v7717_v11 = vadd.f32 %v3554_v53, %v3255_v60 }
 0x429   : > { %v3205_v13 = vpop.f32.mrf.mxu3 }
 0x42a   : > { %v3257_v18 = vadd.f32 %v3205_v13, %v3076_v10  ;;  %5705 = vmatmul.msk.bf16.gmra.mxu2 %vm408_vm0, %v7398_v39  ;;  %v3954_v39 = vld [vmem:[#allocation3 + $0x4a] sm:$0xff] }
 0x42b   : > { %v7720_v49 = vpop.f32.mrf.mxu1  ;;  %v3990_v7 = vpack.c.bf16 %v3954_v39, %v3954_v39 }
 0x42d   : > { %v3078_v17 = vpop.f32.mrf.mxu2  ;;  %v4067_v53 = vunpack.c.l.b16 %v3990_v7 }
 0x42e   : > { %5670 = vmatmul.msk.bf16.gmra.mxu1 %vm408_vm0, %v7512_v28  ;;  %5745 = vmatmul.msk.bf16.gmra.mxu3 %vm408_vm0, %v7727_v1  ;;  %v3079_v60 = vadd.f32 %v3078_v17, %v7596_v43  ;;  %v3956_v17 = vld [vmem:[#allocation3 + $0x62] sm:$0xff] }
 0x42f   : > { %v3557_v35 = vpop.f32.mrf.mxu0  ;;  %v7748_v13 = vpack.c.b16 %v4068_v45, %v4067_v53  ;;  %v3992_v38 = vpack.c.bf16 %v3956_v17, %v3956_v17 }
 0x430   : > { %v7733_v27 = vadd.f32 %v3557_v35, %v3256_v31 }
 0x431   : > { %v3208_v48 = vpop.f32.mrf.mxu3 }
 0x432   : > { %5784 = vmatmul.msk.bf16.gmra.mxu0 %vm408_vm0, %v7727_v1  ;;  %v3258_v8 = vadd.f32 %v3208_v48, %v3079_v60 }
 0x433   : > { %v7738_v46 = vpop.f32.mrf.mxu1 }
 0x435   : > { %v3080_v16 = vpop.f32.mrf.mxu2 }
 0x436   : > { %v3081_v31 = vadd.f32 %v3080_v16, %v7617_v19 }
 0x437   : > { %v3559_v23 = vpop.f32.mrf.mxu0 }
 0x438   : > { %v7740_v26 = vadd.f32 %v3559_v23, %v3257_v18 }
 0x439   : > { %v3210_v43 = vpop.f32.mrf.mxu3 }
 0x43a   : > { %v3259_v14 = vadd.f32 %v3210_v43, %v3081_v31  ;;  %5706 = vmatmul.msk.bf16.gmra.mxu2 %vm408_vm0, %v7436_v55  ;;  %v3957_v55 = vld [vmem:[#allocation3 + $0x6a] sm:$0xff] }
 0x43b   : > { %v3674_v10 = vpop.f32.mrf.mxu1  ;;  %v3993_v7 = vpack.c.bf16 %v3957_v55, %v3957_v55 }
 0x43c   : > { %v7744_v6 = vadd.f32 %v3674_v10, %v7510_v2 }
 0x43d   : > { %v3083_v25 = vpop.f32.mrf.mxu2  ;;  %v4070_v31 = vunpack.c.l.b16 %v3993_v7 }
 0x43e   : > { %5671 = vmatmul.msk.bf16.gmra.mxu1 %vm408_vm0, %v7546_v34  ;;  %5746 = vmatmul.msk.bf16.gmra.mxu3 %vm408_vm0, %v7748_v13  ;;  %v3084_v35 = vadd.f32 %v3083_v25, %v7631_v24  ;;  %v4069_v24 = vunpack.c.l.b16 %v3992_v38 }
 0x43f   : > { %v3562_v18 = vpop.f32.mrf.mxu0 }
 0x440   : > { %v7754_v19 = vadd.f32 %v3562_v18, %v3258_v8 }
 0x441   : > { %v3213_v2 = vpop.f32.mrf.mxu3 }
 0x442   : > { %5785 = vmatmul.msk.bf16.gmra.mxu0 %vm408_vm0, %v7748_v13  ;;  %v3260_v48 = vadd.f32 %v3213_v2, %v3084_v35  ;;  %v3958_v35 = vld [vmem:[#allocation3 + $0x7a] sm:$0xff] }
 0x443   : > { %v3676_v60 = vpop.f32.mrf.mxu1 }
 0x444   : > { %v7760_v39 = vadd.f32 %v3676_v60, %v7528_v22  ;;  %v7770_v22 = vpack.c.b16 %v4070_v31, %v4069_v24  ;;  %v3994_v60 = vpack.c.bf16 %v3958_v35, %v3958_v35 }
 0x445   : > { %v3085_v8 = vpop.f32.mrf.mxu2 }
 0x446   : > { %v3086_v16 = vadd.f32 %v3085_v8, %v7655_v4 }
 0x447   : > { %v3564_v21 = vpop.f32.mrf.mxu0 }
 0x448   : > { %v7762_v23 = vadd.f32 %v3564_v21, %v3259_v14 }
 0x449   : > { %v3215_v53 = vpop.f32.mrf.mxu3 }
 0x44a   : > { %v3261_v43 = vadd.f32 %v3215_v53, %v3086_v16  ;;  %5707 = vmatmul.msk.bf16.gmra.mxu2 %vm408_vm0, %v7461_v56  ;;  %v3959_v56 = vld [vmem:[#allocation3 + $0x82] sm:$0xff] }
 0x44b   : > { %v3679_v45 = vpop.f32.mrf.mxu1  ;;  %v3995_v38 = vpack.c.bf16 %v3959_v56, %v3959_v56 }
 0x44c   : > { %v7766_v10 = vadd.f32 %v3679_v45, %v7544_v30 }
 0x44d   : > { %v3088_v18 = vpop.f32.mrf.mxu2  ;;  %v4072_v16 = vunpack.c.l.b16 %v3995_v38 }
 0x44e   : > { %5672 = vmatmul.msk.bf16.gmra.mxu1 %vm408_vm0, %v7566_v59  ;;  %5747 = vmatmul.msk.bf16.gmra.mxu3 %vm408_vm0, %v7770_v22  ;;  %v3089_v25 = vadd.f32 %v3088_v18, %v7660_v29  ;;  %v4071_v29 = vunpack.c.l.b16 %v3994_v60 }
 0x44f   : > { %v3567_v14 = vpop.f32.mrf.mxu0 }
 0x450   : > { %v7776_v4 = vadd.f32 %v3567_v14, %v3260_v48 }
 0x451   : > { %v3218_v30 = vpop.f32.mrf.mxu3 }
 0x452   : > { %5786 = vmatmul.msk.bf16.gmra.mxu0 %vm408_vm0, %v7770_v22  ;;  %v3262_v17 = vadd.f32 %v3218_v30, %v3089_v25  ;;  %v3960_v25 = vld [vmem:[#allocation3 + $0x92] sm:$0xff] }
 0x453   : > { %v3681_v2 = vpop.f32.mrf.mxu1 }
 0x454   : > { %v7782_v55 = vadd.f32 %v3681_v2, %v7553_v40  ;;  %v7792_v40 = vpack.c.b16 %v4072_v16, %v4071_v29  ;;  %v3996_v2 = vpack.c.bf16 %v3960_v25, %v3960_v25 }
 0x455   : > { %v3090_v48 = vpop.f32.mrf.mxu2 }
 0x456   : > { %v3091_v8 = vadd.f32 %v3090_v48, %v7674_v12 }
 0x457   : > { %v3569_v7 = vpop.f32.mrf.mxu0 }
 0x458   : > { %v7784_v21 = vadd.f32 %v3569_v7, %v3261_v43 }
 0x459   : > { %v3220_v24 = vpop.f32.mrf.mxu3 }
 0x45a   : > { %v3263_v53 = vadd.f32 %v3220_v24, %v3091_v8  ;;  %5708 = vmatmul.msk.bf16.gmra.mxu2 %vm408_vm0, %v7486_v33  ;;  %v3961_v33 = vld [vmem:[#allocation3 + $0x9a] sm:$0xff] }
 0x45b   : > { %v3684_v31 = vpop.f32.mrf.mxu1  ;;  %v3997_v60 = vpack.c.bf16 %v3961_v33, %v3961_v33 }
 0x45c   : > { %v7788_v45 = vadd.f32 %v3684_v31, %v7564_v52 }
 0x45d   : > { %v3093_v14 = vpop.f32.mrf.mxu2  ;;  %v4074_v8 = vunpack.c.l.b16 %v3997_v60 }
 0x45e   : > { %5673 = vmatmul.msk.bf16.gmra.mxu1 %vm408_vm0, %v7586_v37  ;;  %5748 = vmatmul.msk.bf16.gmra.mxu3 %vm408_vm0, %v7792_v40  ;;  %v3094_v18 = vadd.f32 %v3093_v14, %v7682_v54  ;;  %v4073_v54 = vunpack.c.l.b16 %v3996_v2 }
 0x45f   : > { %v3572_v43 = vpop.f32.mrf.mxu0 }
 0x460   : > { %v7798_v12 = vadd.f32 %v3572_v43, %v3262_v17 }
 0x461   : > { %v3223_v52 = vpop.f32.mrf.mxu3 }
 0x462   : > { %5787 = vmatmul.msk.bf16.gmra.mxu0 %vm408_vm0, %v7792_v40  ;;  %v3264_v35 = vadd.f32 %v3223_v52, %v3094_v18  ;;  %v3963_v52 = vld [vmem:[#allocation3 + $0xb2] sm:$0xff] }
 0x463   : > { %v3686_v30 = vpop.f32.mrf.mxu1  ;;  %v3999_v60 = vpack.c.bf16 %v3963_v52, %v3963_v52 }
 0x464   : > { %v7804_v56 = vadd.f32 %v3686_v30, %v7573_v3  ;;  %v5915_v3 = vld [vmem:[%s8718_s4 + $0x100] sm:$0xff] }
 0x465   : > { %v3095_v17 = vpop.f32.mrf.mxu2  ;;  %4512 = vmatpush.bf16.msra.mxu1 %v5915_v3 }
 0x466   : > { %v3096_v48 = vadd.f32 %v3095_v17, %v7699_v47 }
 0x467   : > { %v3574_v38 = vpop.f32.mrf.mxu0 }
 0x468   : > { %v7806_v7 = vadd.f32 %v3574_v38, %v3263_v53  ;;  %v7817_v53 = vpack.c.b16 %v4074_v8, %v4073_v54  ;;  %v4076_v54 = vunpack.c.l.b16 %v3999_v60 }
 0x469   : > { %v3225_v29 = vpop.f32.mrf.mxu3 }
 0x46a   : > { %v3265_v24 = vadd.f32 %v3225_v29, %v3096_v48  ;;  %5709 = vmatmul.msk.bf16.gmra.mxu2 %vm408_vm0, %v7512_v28  ;;  %v3962_v28 = vld [vmem:[#allocation3 + $0xaa] sm:$0xff] }
 0x46b   : > { %v3689_v16 = vpop.f32.mrf.mxu1  ;;  %v3998_v2 = vpack.c.bf16 %v3962_v28, %v3962_v28 }
 0x46c   : > { %v7810_v31 = vadd.f32 %v3689_v16, %v7584_v63 }
 0x46d   : > { %v3098_v63 = vpop.f32.mrf.mxu2 }
 0x46e   : > { %5674 = vmatmul.msk.bf16.gmra.mxu1 %vm408_vm0, %v7606_v41  ;;  %5749 = vmatmul.msk.bf16.gmra.mxu3 %vm408_vm0, %v7817_v53  ;;  %v3099_v14 = vadd.f32 %v3098_v63, %v7704_v20  ;;  %v4075_v20 = vunpack.c.l.b16 %v3998_v2 }
 0x46f   : > { %v3577_v47 = vpop.f32.mrf.mxu0 }
 0x470   : > { %v7823_v43 = vadd.f32 %v3577_v47, %v3264_v35 }
 0x471   : > { %v3228_v18 = vpop.f32.mrf.mxu3 }
 0x472   : > { %5788 = vmatmul.msk.bf16.gmra.mxu0 %vm408_vm0, %v7817_v53  ;;  %v3266_v33 = vadd.f32 %v3228_v18, %v3099_v14  ;;  %v3964_v14 = vld [vmem:[#allocation3 + $0xc2] sm:$0xff] }
 0x473   : > { %v3691_v25 = vpop.f32.mrf.mxu1 }
 0x474   : > { %v7829_v30 = vadd.f32 %v3691_v25, %v7593_v15  ;;  %v7839_v15 = vpack.c.b16 %v4076_v54, %v4075_v20  ;;  %v4000_v25 = vpack.c.bf16 %v3964_v14, %v3964_v14 }
 0x475   : > { %v3100_v35 = vpop.f32.mrf.mxu2 }
 0x476   : > { %v3101_v48 = vadd.f32 %v3100_v35, %v7715_v9 }
 0x477   : > { %v3579_v38 = vpop.f32.mrf.mxu0 }
 0x478   : > { %v7831_v17 = vadd.f32 %v3579_v38, %v3265_v24 }
 0x479   : > { %v3230_v8 = vpop.f32.mrf.mxu3 }
 0x47a   : > { %v3267_v16 = vadd.f32 %v3230_v8, %v3101_v48  ;;  %5710 = vmatmul.msk.bf16.gmra.mxu2 %vm408_vm0, %v7546_v34  ;;  %v3965_v34 = vld [vmem:[#allocation3 + $0xca] sm:$0xff] }
 0x47b   : > { %v3694_v29 = vpop.f32.mrf.mxu1  ;;  %v4001_v2 = vpack.c.bf16 %v3965_v34, %v3965_v34 }
 0x47c   : > { %v7835_v3 = vadd.f32 %v3694_v29, %v7604_v61 }
 0x47d   : > { %v3103_v47 = vpop.f32.mrf.mxu2  ;;  %v4078_v48 = vunpack.c.l.b16 %v4001_v2 }
 0x47e   : > { %5675 = vmatmul.msk.bf16.gmra.mxu1 %vm408_vm0, %v7650_v51  ;;  %5750 = vmatmul.msk.bf16.gmra.mxu3 %vm408_vm0, %v7839_v15  ;;  %v3104_v63 = vadd.f32 %v3103_v47, %v7720_v49  ;;  %v4077_v49 = vunpack.c.l.b16 %v4000_v25 }
 0x47f   : > { %v3582_v24 = vpop.f32.mrf.mxu0 }
 0x480   : > { %v7845_v9 = vadd.f32 %v3582_v24, %v3266_v33 }
 0x481   : > { %v3233_v61 = vpop.f32.mrf.mxu3 }
 0x482   : > { %5789 = vmatmul.msk.bf16.gmra.mxu0 %vm408_vm0, %v7839_v15  ;;  %v3268_v28 = vadd.f32 %v3233_v61, %v3104_v63  ;;  %v3966_v63 = vld [vmem:[#allocation3 + $0xda] sm:$0xff] }
 0x483   : > { %v3696_v18 = vpop.f32.mrf.mxu1 }
 0x484   : > { %v7851_v52 = vadd.f32 %v3696_v18, %v7628_v62  ;;  %v7861_v62 = vpack.c.b16 %v4078_v48, %v4077_v49  ;;  %v4002_v18 = vpack.c.bf16 %v3966_v63, %v3966_v63 }
 0x485   : > { %v3105_v33 = vpop.f32.mrf.mxu2 }
 0x486   : > { %v3106_v35 = vadd.f32 %v3105_v33, %v7738_v46 }
 0x487   : > { %v3584_v60 = vpop.f32.mrf.mxu0 }
 0x488   : > { %v7853_v38 = vadd.f32 %v3584_v60, %v3267_v16 }
 0x489   : > { %v3235_v20 = vpop.f32.mrf.mxu3 }
 0x48a   : > { %v3269_v8 = vadd.f32 %v3235_v20, %v3106_v35  ;;  %5711 = vmatmul.msk.bf16.gmra.mxu2 %vm408_vm0, %v7566_v59  ;;  %v3967_v59 = vld [vmem:[#allocation3 + $0xe2] sm:$0xff] }
 0x48b   : > { %v3699_v54 = vpop.f32.mrf.mxu1  ;;  %v4003_v25 = vpack.c.bf16 %v3967_v59, %v3967_v59  ;;  %v3302_v59 = vld [vmem:[#allocation3 + $0x181] sm:$0xff] }
 0x48c   : > { %v7857_v29 = vadd.f32 %v3699_v54, %v7648_v5 }
 0x48d   : > { %v3836_v24 = vpop.f32.mrf.mxu2  ;;  %v4080_v35 = vunpack.c.l.b16 %v4003_v25 }
 0x48e   : > { %5676 = vmatmul.msk.bf16.gmra.mxu1 %vm408_vm0, %v7669_v57  ;;  %5751 = vmatmul.msk.bf16.gmra.mxu3 %vm408_vm0, %v7861_v62  ;;  %v3916_v47 = vadd.f32 %v3836_v24, %v7744_v6  ;;  %v4079_v6 = vunpack.c.l.b16 %v4002_v18  ;;  %v3303_v24 = vld [vmem:[#allocation3 + $0x189] sm:$0xff] }
 0x48f   : > { %v3587_v16 = vpop.f32.mrf.mxu0  ;;  %v3339_v25 = vpack.c.bf16 %v3303_v24, %v3303_v24 }
 0x490   : > { %v7867_v46 = vadd.f32 %v3587_v16, %v3268_v28 }
 0x491   : > { %v4190_v5 = vpop.f32.mrf.mxu3 }
 0x492   : > { %5790 = vmatmul.msk.bf16.gmra.mxu0 %vm408_vm0, %v7861_v62  ;;  %v4270_v14 = vadd.f32 %v4190_v5, %v3916_v47  ;;  %v3969_v5 = vld [vmem:[#allocation3 + $0xfa] sm:$0xff] }
 0x493   : > { %v3701_v61 = vpop.f32.mrf.mxu1 }
 0x494   : > { %v7873_v34 = vadd.f32 %v3701_v61, %v7657_v50  ;;  %v7883_v50 = vpack.c.b16 %v4080_v35, %v4079_v6 }
 0x495   : > { %v3838_v28 = vpop.f32.mrf.mxu2 }
 0x496   : > { %v3917_v33 = vadd.f32 %v3838_v28, %v7760_v39  ;;  %v3338_v28 = vpack.c.bf16 %v3302_v59, %v3302_v59 }
 0x497   : > { %v3589_v2 = vpop.f32.mrf.mxu0 }
 0x498   : > { %v7875_v60 = vadd.f32 %v3589_v2, %v3269_v8 }
 0x499   : > { %v4192_v49 = vpop.f32.mrf.mxu3 }
 0x49a   : > { %8803 = vst [vmem:[#allocation42_spill] sm:$0xff] %v7875_v60  ;;  %v4271_v20 = vadd.f32 %v4192_v49, %v3917_v33  ;;  %5712 = vmatmul.msk.bf16.gmra.mxu2 %vm408_vm0, %v7586_v37  ;;  %v3968_v37 = vld [vmem:[#allocation3 + $0xf2] sm:$0xff] }
 0x49b   : > { %v3704_v48 = vpop.f32.mrf.mxu1  ;;  %v4004_v2 = vpack.c.bf16 %v3968_v37, %v3968_v37  ;;  %v3970_v37 = vld [vmem:[#allocation3 + $0x10a] sm:$0xff] }
 0x49c   : > { %v7879_v54 = vadd.f32 %v3704_v48, %v7667_v44 }
 0x49d   : > { %v3841_v16 = vpop.f32.mrf.mxu2  ;;  %v4081_v48 = vunpack.c.l.b16 %v4004_v2 }
 0x49e   : > { %5677 = vmatmul.msk.bf16.gmra.mxu1 %vm408_vm0, %v7694_v32  ;;  %5752 = vmatmul.msk.bf16.gmra.mxu3 %vm408_vm0, %v7883_v50  ;;  %v3918_v47 = vadd.f32 %v3841_v16, %v7766_v10  ;;  %v3636_v10 = vunpack.c.l.b16 %v3339_v25  ;;  %v3635_v16 = vunpack.c.l.b16 %v3338_v28  ;;  %v4006_v25 = vpack.c.bf16 %v3970_v37, %v3970_v37 }
 0x49f   : > { %v4352_v8 = vpop.f32.mrf.mxu0 }
 0x4a0   : > { %v7889_v39 = vadd.f32 %v4352_v8, %v4270_v14  ;;  %v4005_v14 = vpack.c.bf16 %v3969_v5, %v3969_v5  ;;  %v7903_v24 = vpack.c.b16 %v3636_v10, %v3635_v16 }
 0x4a1   : > { %v4195_v44 = vpop.f32.mrf.mxu3 }
 0x4a2   : > { %8804 = vst [vmem:[#allocation43_spill] sm:$0xff] %v7889_v39  ;;  %5791 = vmatmul.msk.bf16.gmra.mxu0 %vm408_vm0, %v7883_v50  ;;  %v4272_v61 = vadd.f32 %v4195_v44, %v3918_v47  ;;  %v4082_v8 = vunpack.c.l.b16 %v4005_v14 }
 0x4a3   : > { %v3706_v63 = vpop.f32.mrf.mxu1 }
 0x4a4   : > { %v7895_v18 = vadd.f32 %v3706_v63, %v7679_v0 }
 0x4a5   : > { %v3843_v35 = vpop.f32.mrf.mxu2 }
 0x4a6   : > { %v3919_v49 = vadd.f32 %v3843_v35, %v7782_v55 }
 0x4a7   : > { %v4354_v33 = vpop.f32.mrf.mxu0 }
 0x4a8   : > { %v7897_v6 = vadd.f32 %v4354_v33, %v4271_v20  ;;  %v7907_v20 = vpack.c.b16 %v4082_v8, %v4081_v48 }
 0x4a9   : > { %v4197_v39 = vpop.f32.mrf.mxu3 }
 0x4aa   : > { %v4273_v47 = vadd.f32 %v4197_v39, %v3919_v49  ;;  %5713 = vmatmul.msk.bf16.gmra.mxu2 %vm408_vm0, %v7606_v41  ;;  %v3971_v41 = vld [vmem:[#allocation3 + $0x112] sm:$0xff] }
 0x4ab   : > { %v3709_v60 = vpop.f32.mrf.mxu1  ;;  %v4007_v2 = vpack.c.bf16 %v3971_v41, %v3971_v41 }
 0x4ac   : > { %v7901_v0 = vadd.f32 %v3709_v60, %v7692_v58 }
 0x4ad   : > { %v3846_v39 = vpop.f32.mrf.mxu2  ;;  %v4084_v10 = vunpack.c.l.b16 %v4007_v2 }
 0x4ae   : > { %5678 = vmatmul.msk.bf16.gmra.mxu1 %vm408_vm0, %v7903_v24  ;;  %5753 = vmatmul.msk.bf16.gmra.mxu3 %vm408_vm0, %v7907_v20  ;;  %v3920_v58 = vadd.f32 %v3846_v39, %v7788_v45  ;;  %v4083_v45 = vunpack.c.l.b16 %v4006_v25  ;;  %v3972_v39 = vld [vmem:[#allocation3 + $0x122] sm:$0xff] }
 0x4af   : > { %v4357_v55 = vpop.f32.mrf.mxu0 }
 0x4b0   : > { %v7913_v44 = vadd.f32 %v4357_v55, %v4272_v61 }
 0x4b1   : > { %v4200_v60 = vpop.f32.mrf.mxu3 }
 0x4b2   : > { %5792 = vmatmul.msk.bf16.gmra.mxu0 %vm408_vm0, %v7907_v20  ;;  %v4274_v63 = vadd.f32 %v4200_v60, %v3920_v58 }
 0x4b3   : > { %v3711_v5 = vpop.f32.mrf.mxu1 }
 0x4b4   : > { %v7919_v59 = vadd.f32 %v3711_v5, %v7701_v36  ;;  %v7929_v36 = vpack.c.b16 %v4084_v10, %v4083_v45 }
 0x4b5   : > { %v3848_v61 = vpop.f32.mrf.mxu2 }
 0x4b6   : > { %v3921_v33 = vadd.f32 %v3848_v61, %v7804_v56 }
 0x4b7   : > { %v4359_v14 = vpop.f32.mrf.mxu0 }
 0x4b8   : > { %v7921_v28 = vadd.f32 %v4359_v14, %v4273_v47 }
 0x4b9   : > { %v4202_v35 = vpop.f32.mrf.mxu3 }
 0x4ba   : > { %v4275_v48 = vadd.f32 %v4202_v35, %v3921_v33  ;;  %5714 = vmatmul.msk.bf16.gmra.mxu2 %vm408_vm0, %v7650_v51  ;;  %v3973_v51 = vld [vmem:[#allocation3 + $0x12a] sm:$0xff] }
 0x4bb   : > { %v3714_v49 = vpop.f32.mrf.mxu1  ;;  %v4009_v41 = vpack.c.bf16 %v3973_v51, %v3973_v51 }
 0x4bc   : > { %v7925_v8 = vadd.f32 %v3714_v49, %v7711_v42 }
 0x4bd   : > { %v3851_v47 = vpop.f32.mrf.mxu2  ;;  %v4086_v14 = vunpack.c.l.b16 %v4009_v41 }
 0x4be   : > { %5823 = vmatmul.msk.bf16.vlgmr.msra.gmra.mxu1 %vm408_vm0, %v7727_v1  ;;  %5754 = vmatmul.msk.bf16.gmra.mxu3 %vm408_vm0, %v7929_v36  ;;  %v3922_v55 = vadd.f32 %v3851_v47, %v7810_v31  ;;  %v4008_v1 = vpack.c.bf16 %v3972_v39, %v3972_v39 }
 0x4bf   : > { %v4362_v16 = vpop.f32.mrf.mxu0 }
 0x4c0   : > { %v7935_v56 = vadd.f32 %v4362_v16, %v4274_v63  ;;  %v4085_v31 = vunpack.c.l.b16 %v4008_v1  ;;  %v3975_v16 = vld [vmem:[#allocation3 + $0x142] sm:$0xff] }
 0x4c1   : > { %v4205_v42 = vpop.f32.mrf.mxu3 }
 0x4c2   : > { %5793 = vmatmul.msk.bf16.gmra.mxu0 %vm408_vm0, %v7929_v36  ;;  %v4276_v60 = vadd.f32 %v4205_v42, %v3922_v55  ;;  %v4011_v42 = vpack.c.bf16 %v3975_v16, %v3975_v16 }
 0x4c3   : > { %v3716_v58 = vpop.f32.mrf.mxu1 }
 0x4c4   : > { %v7941_v37 = vadd.f32 %v3716_v58, %v7717_v11  ;;  %v7951_v11 = vpack.c.b16 %v4086_v14, %v4085_v31  ;;  %v4088_v41 = vunpack.c.l.b16 %v4011_v42 }
 0x4c5   : > { %v3853_v63 = vpop.f32.mrf.mxu2 }
 0x4c6   : > { %v3923_v2 = vadd.f32 %v3853_v63, %v7829_v30 }
 0x4c7   : > { %v4364_v5 = vpop.f32.mrf.mxu0 }
 0x4c8   : > { %v7943_v25 = vadd.f32 %v4364_v5, %v4275_v48  ;;  %v3974_v48 = vld [vmem:[#allocation3 + $0x13a] sm:$0xff] }
 0x4c9   : > { %v4207_v61 = vpop.f32.mrf.mxu3  ;;  %v4010_v55 = vpack.c.bf16 %v3974_v48, %v3974_v48 }
 0x4ca   : > { %v4277_v45 = vadd.f32 %v4207_v61, %v3923_v2  ;;  %5715 = vmatmul.msk.bf16.gmra.mxu2 %vm408_vm0, %v7669_v57 }
 0x4cb   : > { %v3719_v33 = vpop.f32.mrf.mxu1  ;;  %v4087_v1 = vunpack.c.l.b16 %v4010_v55 }
 0x4cc   : > { %v7947_v10 = vadd.f32 %v3719_v33, %v7733_v27 }
 0x4cd   : > { %v3856_v49 = vpop.f32.mrf.mxu2  ;;  %v7973_v14 = vpack.c.b16 %v4088_v41, %v4087_v1 }
 0x4ce   : > { %5824 = vmatmul.msk.bf16.gmra.mxu1 %vm408_vm0, %v7748_v13  ;;  %5755 = vmatmul.msk.bf16.gmra.mxu3 %vm408_vm0, %v7951_v11  ;;  %v3924_v58 = vadd.f32 %v3856_v49, %v7835_v3 }
 0x4cf   : > { %v4367_v35 = vpop.f32.mrf.mxu0 }
 0x4d0   : > { %v7957_v30 = vadd.f32 %v4367_v35, %v4276_v60 }
 0x4d1   : > { %v4210_v27 = vpop.f32.mrf.mxu3 }
 0x4d2   : > { %5794 = vmatmul.msk.bf16.gmra.mxu0 %vm408_vm0, %v7951_v11 }
 0x4d3   : > { %v3721_v47 = vpop.f32.mrf.mxu1 }
 0x4d4   : > { %v7962_v57 = vadd.f32 %v3721_v47, %v7740_v26  ;;  %v4278_v26 = vadd.f32 %v4210_v27, %v3924_v58 }
 0x4d5   : > { %v3858_v51 = vpop.f32.mrf.mxu2 }
 0x4d6   : > { %v3925_v60 = vadd.f32 %v3858_v51, %v7851_v52 }
 0x4d7   : > { %v4369_v13 = vpop.f32.mrf.mxu0 }
 0x4d8   : > { %v7964_v39 = vadd.f32 %v4369_v13, %v4277_v45  ;;  %v3976_v45 = vld [vmem:[#allocation3 + $0x152] sm:$0xff] }
 0x4d9   : > { %v4212_v5 = vpop.f32.mrf.mxu3 }
 0x4da   : > { %v4279_v2 = vadd.f32 %v4212_v5, %v3925_v60  ;;  %5716 = vmatmul.msk.bf16.gmra.mxu2 %vm408_vm0, %v7694_v32  ;;  %v3977_v32 = vld [vmem:[#allocation3 + $0x15a] sm:$0xff] }
 0x4db   : > { %v3724_v63 = vpop.f32.mrf.mxu1  ;;  %v4013_v48 = vpack.c.bf16 %v3977_v32, %v3977_v32  ;;  %v3304_v5 = vld [vmem:[#allocation3 + $0x199] sm:$0xff] }
 0x4dc   : > { %v7969_v31 = vadd.f32 %v3724_v63, %v7754_v19  ;;  %v3305_v63 = vld [vmem:[#allocation3 + $0x1a1] sm:$0xff] }
 0x4dd   : > { %v3861_v61 = vpop.f32.mrf.mxu2  ;;  %v4090_v13 = vunpack.c.l.b16 %v4013_v48 }
 0x4de   : > { %5825 = vmatmul.msk.bf16.gmra.mxu1 %vm408_vm0, %v7770_v22  ;;  %5756 = vmatmul.msk.bf16.gmra.mxu3 %vm408_vm0, %v7973_v14  ;;  %v3926_v33 = vadd.f32 %v3861_v61, %v7857_v29  ;;  %v4012_v22 = vpack.c.bf16 %v3976_v45, %v3976_v45  ;;  %v3978_v61 = vld [vmem:[#allocation3 + $0x16a] sm:$0xff] }
 0x4df   : > { %v4372_v3 = vpop.f32.mrf.mxu0 }
 0x4e0   : > { %v7979_v52 = vadd.f32 %v4372_v3, %v4278_v26  ;;  %v4089_v29 = vunpack.c.l.b16 %v4012_v22  ;;  %v3340_v26 = vpack.c.bf16 %v3304_v5, %v3304_v5  ;;  %v3341_v3 = vpack.c.bf16 %v3305_v63, %v3305_v63 }
 0x4e1   : > { %v4215_v19 = vpop.f32.mrf.mxu3 }
 0x4e2   : > { %5795 = vmatmul.msk.bf16.gmra.mxu0 %vm408_vm0, %v7973_v14  ;;  %v4280_v49 = vadd.f32 %v4215_v19, %v3926_v33  ;;  %v3979_v33 = vld [vmem:[#allocation3 + $0x172] sm:$0xff]  ;;  %v3797_v32 = vunpack.c.l.b16 %v3340_v26 }
 0x4e3   : > { %v3726_v35 = vpop.f32.mrf.mxu1  ;;  %v4015_v22 = vpack.c.bf16 %v3979_v33, %v3979_v33 }
 0x4e4   : > { %v7985_v27 = vadd.f32 %v3726_v35, %v7762_v23  ;;  %v7995_v23 = vpack.c.b16 %v4090_v13, %v4089_v29  ;;  %v3798_v35 = vunpack.c.l.b16 %v3341_v3 }
 0x4e5   : > { %v3863_v55 = vpop.f32.mrf.mxu2  ;;  %v4092_v13 = vunpack.c.l.b16 %v4015_v22 }
 0x4e6   : > { %v3927_v42 = vadd.f32 %v3863_v55, %v7873_v34 }
 0x4e7   : > { %v4374_v16 = vpop.f32.mrf.mxu0 }
 0x4e8   : > { %v7987_v47 = vadd.f32 %v4374_v16, %v4279_v2 }
 0x4e9   : > { %v4217_v51 = vpop.f32.mrf.mxu3 }
 0x4ea   : > { %v4281_v60 = vadd.f32 %v4217_v51, %v3927_v42  ;;  %5717 = vmatmul.msk.bf16.gmra.mxu2 %vm408_vm0, %v7903_v24  ;;  %v3799_v42 = vpack.c.b16 %v3798_v35, %v3797_v32 }
 0x4eb   : > { %v3729_v58 = vpop.f32.mrf.mxu1 }
 0x4ec   : > { %v7991_v1 = vadd.f32 %v3729_v58, %v7776_v4 }
 0x4ed   : > { %v3866_v2 = vpop.f32.mrf.mxu2 }
 0x4ee   : > { %5826 = vmatmul.msk.bf16.gmra.mxu1 %vm408_vm0, %v7792_v40  ;;  %5757 = vmatmul.msk.bf16.gmra.mxu3 %vm408_vm0, %v7995_v23  ;;  %v3928_v4 = vadd.f32 %v3866_v2, %v7879_v54 }
 0x4ef   : > { %v4377_v41 = vpop.f32.mrf.mxu0 }
 0x4f0   : > { %v8001_v34 = vadd.f32 %v4377_v41, %v4280_v49  ;;  %v4014_v49 = vpack.c.bf16 %v3978_v61, %v3978_v61 }
 0x4f1   : > { %v4220_v24 = vpop.f32.mrf.mxu3 }
 0x4f2   : > { %5796 = vmatmul.msk.bf16.gmra.mxu0 %vm408_vm0, %v7995_v23  ;;  %v4282_v19 = vadd.f32 %v4220_v24, %v3928_v4  ;;  %v4091_v29 = vunpack.c.l.b16 %v4014_v49  ;;  %v3980_v24 = vld [vmem:[#allocation3 + $0x182] sm:$0xff] }
 0x4f3   : > { %v3731_v40 = vpop.f32.mrf.mxu1 }
 0x4f4   : > { %v8007_v45 = vadd.f32 %v3731_v40, %v7784_v21  ;;  %v8016_v21 = vpack.c.b16 %v4092_v13, %v4091_v29  ;;  %v4016_v40 = vpack.c.bf16 %v3980_v24, %v3980_v24 }
 0x4f5   : > { %v3868_v54 = vpop.f32.mrf.mxu2 }
 0x4f6   : > { %v3929_v55 = vadd.f32 %v3868_v54, %v7895_v18  ;;  %v4313_v54 = vunpack.c.l.b16 %v4016_v40 }
 0x4f7   : > { %v4379_v48 = vpop.f32.mrf.mxu0 }
 0x4f8   : > { %v8009_v16 = vadd.f32 %v4379_v48, %v4281_v60 }
 0x4f9   : > { %v4222_v51 = vpop.f32.mrf.mxu3 }
 0x4fa   : > { %v4283_v41 = vadd.f32 %v4222_v51, %v3929_v55  ;;  %5718 = vmatmul.msk.bf16.gmra.mxu2 %vm408_vm0, %v3799_v42 }
 0x4fb   : > { %v3734_v58 = vpop.f32.mrf.mxu1 }
 0x4fc   : > { %v8013_v5 = vadd.f32 %v3734_v58, %v7798_v12 }
 0x4fd   : > { %v3871_v63 = vpop.f32.mrf.mxu2 }
 0x4fe   : > { %5827 = vmatmul.msk.bf16.gmra.mxu1 %vm408_vm0, %v7817_v53  ;;  %5758 = vmatmul.msk.bf16.gmra.mxu3 %vm408_vm0, %v8016_v21  ;;  %v3930_v2 = vadd.f32 %v3871_v63, %v7901_v0  ;;  %v3981_v53 = vld [vmem:[#allocation3 + $0x18a] sm:$0xff] }
 0x4ff   : > { %v4382_v60 = vpop.f32.mrf.mxu0 }
 0x500   : > { %v8022_v18 = vadd.f32 %v4382_v60, %v4282_v19  ;;  %v4017_v19 = vpack.c.bf16 %v3981_v53, %v3981_v53 }
 0x501   : > { %v4225_v12 = vpop.f32.mrf.mxu3 }
 0x502   : > { %5797 = vmatmul.msk.bf16.gmra.mxu0 %vm408_vm0, %v8016_v21  ;;  %v4284_v26 = vadd.f32 %v4225_v12, %v3930_v2  ;;  %v4314_v55 = vunpack.c.l.b16 %v4017_v19 }
 0x503   : > { %v3736_v4 = vpop.f32.mrf.mxu1 }
 0x504   : > { %v8028_v3 = vadd.f32 %v3736_v4, %v7806_v7  ;;  %v8040_v29 = vpack.c.b16 %v4314_v55, %v4313_v54 }
 0x505   : > { %v3873_v32 = vpop.f32.mrf.mxu2 }
 0x506   : > { %v3931_v35 = vadd.f32 %v3873_v32, %v7919_v59 }
 0x507   : > { %v4384_v61 = vpop.f32.mrf.mxu0 }
 0x508   : > { %v8030_v33 = vadd.f32 %v4384_v61, %v4283_v41 }
 0x509   : > { %v4227_v0 = vpop.f32.mrf.mxu3 }
 0x50a   : > { %v4285_v22 = vadd.f32 %v4227_v0, %v3931_v35 }
 0x50b   : > { %v3739_v49 = vpop.f32.mrf.mxu1 }
 0x50c   : > { %v8034_v48 = vadd.f32 %v3739_v49, %v7823_v43 }
 0x50d   : > { %v3876_v13 = vpop.f32.mrf.mxu2 }
 0x50e   : > { %5828 = vmatmul.msk.bf16.gmra.mxu1 %vm408_vm0, %v7839_v15  ;;  %v3932_v51 = vadd.f32 %v3876_v13, %v7925_v8 }
 0x50f   : > { %v4387_v7 = vpop.f32.mrf.mxu0 }
 0x510   : > { %v8038_v42 = vadd.f32 %v4387_v7, %v4284_v26 }
 0x511   : > { %v4230_v59 = vpop.f32.mrf.mxu3 }
 0x512   : > { %5798 = vmatmul.msk.bf16.gmra.mxu0 %vm408_vm0, %v8040_v29  ;;  %v4286_v43 = vadd.f32 %v4230_v59, %v3932_v51 }
 0x513   : > { %v3741_v58 = vpop.f32.mrf.mxu1 }
 0x514   : > { %v8046_v41 = vadd.f32 %v3741_v58, %v7831_v17 }
 0x515   : > { %v3878_v15 = vpop.f32.mrf.mxu2 }
 0x516   : > { %v3933_v2 = vadd.f32 %v3878_v15, %v7941_v37 }
 0x517   : > { %v4389_v60 = vpop.f32.mrf.mxu0 }
 0x518   : > { %v8048_v63 = vadd.f32 %v4389_v60, %v4285_v22 }
 0x519   : > { %v4232_v12 = vpop.f32.mrf.mxu3 }
 0x51a   : > { %v4287_v26 = vadd.f32 %v4232_v12, %v3933_v2  ;;  %v8809_v2 = vld [vmem:[#allocation43_spill] sm:$0xff] }
 0x51b   : > { %v3744_v4 = vpop.f32.mrf.mxu1 }
 0x51c   : > { %v8052_v8 = vadd.f32 %v3744_v4, %v7845_v9 }
 0x51d   : > { %v3881_v17 = vpop.f32.mrf.mxu2 }
 0x51e   : > { %5829 = vmatmul.msk.bf16.gmra.mxu1 %vm408_vm0, %v7861_v62  ;;  %v3934_v61 = vadd.f32 %v3881_v17, %v7947_v10 }
 0x51f   : > { %v4392_v24 = vpop.f32.mrf.mxu0 }
 0x520   : > { %v8056_v53 = vadd.f32 %v4392_v24, %v4286_v43  ;;  %v8807_v43 = vld [vmem:[#allocation42_spill] sm:$0xff] }
 0x521   : > { %v4235_v40 = vpop.f32.mrf.mxu3 }
 0x522   : > { %v4288_v32 = vadd.f32 %v4235_v40, %v3934_v61 }
 0x523   : > { %v3746_v19 = vpop.f32.mrf.mxu1 }
 0x524   : > { %v8060_v37 = vadd.f32 %v3746_v19, %v7853_v38 }
 0x525   : > { %v3883_v9 = vpop.f32.mrf.mxu2 }
 0x526   : > { %8805 = vst [vmem:[#allocation44_spill] sm:$0xff] %v8060_v37  ;;  %v3935_v49 = vadd.f32 %v3883_v9, %v7962_v57 }
 0x527   : > { %v4394_v35 = vpop.f32.mrf.mxu0 }
 0x528   : > { %v8062_v0 = vadd.f32 %v4394_v35, %v4287_v26 }
 0x529   : > { %v4237_v22 = vpop.f32.mrf.mxu3 }
 0x52a   : > { %v4289_v54 = vadd.f32 %v4237_v22, %v3935_v49 }
 0x52b   : > { %v3749_v62 = vpop.f32.mrf.mxu1 }
 0x52c   : > { %v8066_v55 = vadd.f32 %v3749_v62, %v7867_v46  ;;  %v4838_v46 = vld [vmem:[%s8722_s8 + $0x38] sm:$0xff] }
 0x52d   : > { %v3886_v38 = vpop.f32.mrf.mxu2  ;;  %4850 = vmatpush.msrb.mxu2 %v4838_v46 }
 0x52e   : > { %8806 = vst [vmem:[#allocation45_spill] sm:$0xff] %v8066_v55  ;;  %5830 = vmatmul.msk.bf16.gmra.mxu1 %vm408_vm0, %v7883_v50  ;;  %v3936_v13 = vadd.f32 %v3886_v38, %v7969_v31 }
 0x52f   : > { %v4397_v10 = vpop.f32.mrf.mxu0 }
 0x530   : > { %v8070_v7 = vadd.f32 %v4397_v10, %v4288_v32  ;;  %v3983_v10 = vld [vmem:[#allocation3 + $0x1a2] sm:$0xff] }
 0x531   : > { %v4240_v51 = vpop.f32.mrf.mxu3 }
 0x532   : > { %v4290_v58 = vadd.f32 %v4240_v51, %v3936_v13 }
 0x533   : > { %v3751_v59 = vpop.f32.mrf.mxu1 }
 0x534   : > { %v8074_v57 = vadd.f32 %v3751_v59, %v8807_v43 }
 0x536   : > { %8808 = vst [vmem:[#allocation42_spill] sm:$0xff] %v8074_v57 }
 0x537   : > { %v4399_v60 = vpop.f32.mrf.mxu0 }
 0x538   : > { %v8079_v15 = vadd.f32 %v4399_v60, %v4289_v54  ;;  %v4834_v60 = vld [vmem:[%s8722_s8 + $0x18] sm:$0xff] }
 0x53b   : > { %v4514_v50 = vpop.f32.mrf.mxu1 }
 0x53c   : > { %v8082_v12 = vadd.f32 %v4514_v50, %v8809_v2 }
 0x53e   : > { %5831 = vmatmul.msk.bf16.gmra.mxu1 %vm408_vm0, %v7907_v20  ;;  %v4837_v20 = vld [vmem:[%s8722_s8 + $0x30] sm:$0xff] }
 0x53f   : > { %v4402_v31 = vpop.f32.mrf.mxu0  ;;  %4851 = vmatpush.msrb.mxu2 %v4837_v20 }
 0x540   : > { %v8086_v4 = vadd.f32 %v4402_v31, %v4290_v58  ;;  %v8164_v31 = vpop.f32.mrf.mxu2 }
 0x543   : > { %v4516_v26 = vpop.f32.mrf.mxu1 }
 0x544   : > { %v8089_v24 = vadd.f32 %v4516_v26, %v7897_v6  ;;  %v8169_v26 = vpop.f32.mrf.mxu3 }
 0x54b   : > { %v4519_v17 = vpop.f32.mrf.mxu1 }
 0x54c   : > { %v8092_v61 = vadd.f32 %v4519_v17, %v7913_v44  ;;  %v8171_v17 = vpop.f32.mrf.mxu0 }
 0x54e   : > { %5832 = vmatmul.msk.bf16.gmra.mxu1 %vm408_vm0, %v7929_v36 }
 0x553   : > { %v4521_v40 = vpop.f32.mrf.mxu1 }
 0x554   : > { %v8097_v19 = vadd.f32 %v4521_v40, %v7921_v28 }
 0x55b   : > { %v4524_v32 = vpop.f32.mrf.mxu1 }
 0x55c   : > { %v8103_v6 = vadd.f32 %v4524_v32, %v7935_v56  ;;  %v4836_v56 = vld [vmem:[%s8722_s8 + $0x28] sm:$0xff]  ;;  %v8176_v32 = vpop.f32.mrf.mxu2 }
 0x55d   : > { %4852 = vmatpush.msrb.mxu2 %v4836_v56 }
 0x55e   : > { %5833 = vmatmul.msk.bf16.gmra.mxu1 %vm408_vm0, %v7951_v11 }
 0x563   : > { %v4526_v44 = vpop.f32.mrf.mxu1 }
 0x564   : > { %v8108_v35 = vadd.f32 %v4526_v44, %v7943_v25  ;;  %v8188_v56 = vpop.f32.mrf.mxu2 }
 0x56b   : > { %v4529_v36 = vpop.f32.mrf.mxu1 }
 0x56c   : > { %v8111_v28 = vadd.f32 %v4529_v36, %v7957_v30  ;;  %v8178_v36 = vpop.f32.mrf.mxu3 }
 0x56e   : > { %5834 = vmatmul.msk.bf16.gmra.mxu1 %vm408_vm0, %v7973_v14 }
 0x573   : > { %v4531_v9 = vpop.f32.mrf.mxu1 }
 0x574   : > { %v8116_v49 = vadd.f32 %v4531_v9, %v7964_v39  ;;  %v8183_v9 = vpop.f32.mrf.mxu0 }
 0x57b   : > { %v4534_v11 = vpop.f32.mrf.mxu1 }
 0x57c   : > { %v8122_v25 = vadd.f32 %v4534_v11, %v7979_v52  ;;  %v4835_v52 = vld [vmem:[%s8722_s8 + $0x20] sm:$0xff] }
 0x57d   : > { %4853 = vmatpush.msrb.mxu2 %v4835_v52 }
 0x57e   : > { %5835 = vmatmul.msk.bf16.gmra.mxu1 %vm408_vm0, %v7995_v23 }
 0x57f   : > { %4854 = vmatpush.msrb.mxu2 %v4834_v60 }
 0x583   : > { %v4536_v30 = vpop.f32.mrf.mxu1 }
 0x584   : > { %v8127_v22 = vadd.f32 %v4536_v30, %v7987_v47  ;;  %v8193_v30 = vpop.f32.mrf.mxu3 }
 0x58b   : > { %v4539_v14 = vpop.f32.mrf.mxu1 }
 0x58c   : > { %v8130_v39 = vadd.f32 %v4539_v14, %v8001_v34  ;;  %v3982_v34 = vld [vmem:[#allocation3 + $0x19a] sm:$0xff]  ;;  %v8195_v14 = vpop.f32.mrf.mxu0  ;;  %v8201_v52 = vpop.f32.mrf.mxu3 }
 0x58d   : > { %v4018_v38 = vpack.c.bf16 %v3982_v34, %v3982_v34 }
 0x58e   : > { %5836 = vmatmul.msk.bf16.gmra.mxu1 %vm408_vm0, %v8016_v21  ;;  %v4019_v21 = vpack.c.bf16 %v3983_v10, %v3983_v10 }
 0x58f   : > { %v4475_v51 = vunpack.c.l.b16 %v4018_v38 }
 0x590   : > { %v4476_v59 = vunpack.c.l.b16 %v4019_v21 }
 0x592   : > { %v4477_v58 = vpack.c.b16 %v4476_v59, %v4475_v51  ;;  %v8223_v51 = vld [vmem:[%s8720_s6] ss:$0 sm:$0xff] }
 0x593   : > { %v4541_v62 = vpop.f32.mrf.mxu1 }
 0x594   : > { %v8135_v54 = vadd.f32 %v4541_v62, %v8009_v16  ;;  %v8197_v62 = vpop.f32.mrf.mxu2  ;;  %v8216_v21 = vpop.f32.mrf.mxu3 }
 0x59b   : > { %v4544_v23 = vpop.f32.mrf.mxu1 }
 0x59c   : > { %v8141_v47 = vadd.f32 %v4544_v23, %v8022_v18  ;;  %v8203_v23 = vpop.f32.mrf.mxu0  ;;  %v8207_v10 = vpop.f32.mrf.mxu2 }
 0x59d   : > { %v8259_v57 = vpop.f32.mrf.mxu3 }
 0x59e   : > { %5837 = vmatmul.msk.bf16.gmra.mxu1 %vm408_vm0, %v8040_v29 }
 0x5a3   : > { %v4546_v13 = vpop.f32.mrf.mxu1 }
 0x5a4   : > { %v8146_v16 = vadd.f32 %v4546_v13, %v8030_v33  ;;  %v4863_v33 = vld [vmem:[%s8723_s9] sm:$0xff]  ;;  %v8225_v59 = vpop.f32.mrf.mxu0  ;;  %v8239_v60 = vpop.f32.mrf.mxu2 }
 0x5a5   : > { %4883 = vmatpush.msrb.mxu3 %v4863_v33 }
 0x5ab   : > { %v4549_v43 = vpop.f32.mrf.mxu1 }
 0x5ac   : > { %v8149_v46 = vadd.f32 %v4549_v43, %v8038_v42  ;;  %v8278_v37 = vpop.f32.mrf.mxu2 }
 0x5ae   : > { %5838 = vmatmul.msk.bf16.gmra.mxu1 %vm408_vm0, %v4477_v58 }
 0x5b3   : > { %v4551_v18 = vpop.f32.mrf.mxu1 }
 0x5b4   : > { %v8153_v29 = vadd.f32 %v4551_v18, %v8048_v63 }
 0x5bb   : > { %v4554_v50 = vpop.f32.mrf.mxu1 }
 0x5bc   : > { %v8162_v42 = vadd.f32 %v4554_v50, %v8056_v53  ;;  %v4699_v50 = vld [vmem:[#allocation4 + $0x8] sm:$0xff] }
 0x5c3   : > { %v4556_v2 = vpop.f32.mrf.mxu1 }
 0x5c4   : > { %v8167_v63 = vadd.f32 %v4556_v2, %v8062_v0  ;;  %v4833_v0 = vld [vmem:[%s8722_s8 + $0x10] sm:$0xff]  ;;  %v4698_v2 = vld [vmem:[#allocation4] sm:$0xff] }
 0x5c5   : > { %4855 = vmatpush.msrb.mxu2 %v4833_v0 }
 0x5cb   : > { %v4559_v40 = vpop.f32.mrf.mxu1 }
 0x5cc   : > { %v8174_v20 = vadd.f32 %v4559_v40, %v8070_v7 }
 0x5d3   : > { %v4561_v44 = vpop.f32.mrf.mxu1 }
 0x5d4   : > { %v8181_v53 = vadd.f32 %v4561_v44, %v8079_v15  ;;  %v4700_v44 = vld [vmem:[#allocation4 + $0x10] sm:$0xff] }
 0x5db   : > { %v4564_v11 = vpop.f32.mrf.mxu1 }
 0x5dc   : > { %v8191_v7 = vadd.f32 %v4564_v11, %v8086_v4  ;;  %v8212_v4 = vld [vmem:[%s8719_s5] ss:$0 sm:$0xff] }
 0x5dd   : > { %v4631_v38 = vmul.f32 %v8212_v4, %v8089_v24  ;;  %v4630_v13 = vmul.f32 %v8212_v4, %v8082_v12  ;;  %v4632_v43 = vmul.f32 %v8212_v4, %v8092_v61  ;;  %v4832_v24 = vld [vmem:[%s8722_s8 + $0x8] sm:$0xff]  ;;  %v4633_v12 = vmul.f32 %v8212_v4, %v8097_v19 }
 0x5de   : > { %4856 = vmatpush.msrb.mxu2 %v4832_v24  ;;  %v4634_v40 = vmul.f32 %v8212_v4, %v8103_v6  ;;  %v4635_v19 = vmul.f32 %v8212_v4, %v8108_v35 }
 0x5df   : > { %v8235_v18 = vadd.f32 %v8223_v51, %v4631_v38  ;;  %v8242_v33 = vadd.f32 %v8223_v51, %v4630_v13  ;;  %v8245_v61 = vadd.f32 %v8223_v51, %v4632_v43  ;;  %v8251_v11 = vadd.f32 %v8223_v51, %v4633_v12  ;;  %v4701_v13 = vld [vmem:[#allocation4 + $0x18] sm:$0xff]  ;;  %v4702_v12 = vld [vmem:[#allocation4 + $0x20] sm:$0xff] }
 0x5e0   : > { %v8262_v6 = vadd.f32 %v8223_v51, %v4634_v40  ;;  %v4703_v40 = vld [vmem:[#allocation4 + $0x28] sm:$0xff] }
 0x5e1   : > { %8810 = vst [vmem:[#allocation43_spill] sm:$0xff] %v8235_v18  ;;  %v4731_v0 = vmul.f32 %v4699_v50, %v8235_v18  ;;  %v4730_v38 = vmul.f32 %v4698_v2, %v8242_v33  ;;  %v4732_v43 = vmul.f32 %v4700_v44, %v8245_v61  ;;  %v4636_v50 = vmul.f32 %v8212_v4, %v8111_v28  ;;  %v8266_v18 = vpop.f32.mrf.mxu0 }
 0x5e2   : > { %8811 = vst [vmem:[#allocation46_spill] sm:$0xff] %v8242_v33  ;;  %v4733_v2 = vmul.f32 %v4701_v13, %v8251_v11  ;;  %v8271_v33 = vadd.f32 %v8223_v51, %v4635_v19  ;;  %v4637_v44 = vmul.f32 %v8212_v4, %v8116_v49  ;;  %v4734_v28 = vmul.f32 %v4702_v12, %v8262_v6  ;;  %v4704_v13 = vld [vmem:[#allocation4 + $0x30] sm:$0xff] }
 0x5e3   : > { %v8199_v15 = vpop.f32.mrf.mxu1  ;;  %8812 = vst [vmem:[#allocation47_spill] sm:$0xff] %v8245_v61  ;;  %v4763_v35 = vsel %vm408_vm0, %v4731_v0, 0.0  ;;  %v4762_v61 = vsel %vm408_vm0, %v4730_v38, 0.0  ;;  %v4765_v55 = vsel %vm408_vm0, %v4732_v43, 0.0  ;;  %v4638_v0 = vmul.f32 %v8212_v4, %v8122_v25 }
 0x5e4   : > { %8813 = vst [vmem:[#allocation48_spill] sm:$0xff] %v8251_v11  ;;  %v4764_v19 = vadd.f32 %v4763_v35, %v4762_v61  ;;  %v4767_v11 = vsel %vm408_vm0, %v4733_v2, 0.0  ;;  %v4735_v49 = vmul.f32 %v4703_v40, %v8271_v33  ;;  %v8288_v38 = vadd.f32 %v8223_v51, %v4637_v44  ;;  %v4706_v44 = vld [vmem:[#allocation4 + $0x40] sm:$0xff]  ;;  %v8301_v40 = vpop.f32.mrf.mxu3 }
 0x5e5   : > { %8815 = vst [vmem:[#allocation50_spill] sm:$0xff] %v8262_v6  ;;  %v4639_v43 = vmul.f32 %v8212_v4, %v8127_v22  ;;  %v4705_v6 = vld [vmem:[#allocation4 + $0x38] sm:$0xff]  ;;  %v8297_v61 = vadd.f32 %v8223_v51, %v4638_v0  ;;  %v4640_v35 = vmul.f32 %v8212_v4, %v8130_v39 }
 0x5e6   : > { %8816 = vst [vmem:[#allocation51_spill] sm:$0xff] %v8266_v18  ;;  %v8281_v18 = vadd.f32 %v8223_v51, %v4636_v50  ;;  %v4766_v12 = vadd.f32 %v4765_v55, %v4764_v19  ;;  %v4769_v50 = vsel %vm408_vm0, %v4734_v28, 0.0  ;;  %v4771_v22 = vsel %vm408_vm0, %v4735_v49, 0.0 }
 0x5e7   : > { %8818 = vst [vmem:[#allocation53_spill] sm:$0xff] %v8288_v38  ;;  %v4737_v55 = vmul.f32 %v4705_v6, %v8288_v38  ;;  %v8306_v19 = vadd.f32 %v8223_v51, %v4639_v43  ;;  %v4641_v28 = vmul.f32 %v8212_v4, %v8135_v54  ;;  %v4642_v6 = vmul.f32 %v8212_v4, %v8141_v47  ;;  %v4708_v43 = vld [vmem:[#allocation4 + $0x50] sm:$0xff]  ;;  %v8319_v38 = vpop.f32.mrf.mxu2 }
 0x5e8   : > { %8817 = vst [vmem:[#allocation52_spill] sm:$0xff] %v8281_v18  ;;  %v4736_v25 = vmul.f32 %v4704_v13, %v8281_v18  ;;  %v4768_v2 = vadd.f32 %v4767_v11, %v4766_v12  ;;  %v4707_v18 = vld [vmem:[#allocation4 + $0x48] sm:$0xff]  ;;  %v4738_v11 = vmul.f32 %v4706_v44, %v8297_v61  ;;  %v8315_v12 = vadd.f32 %v8223_v51, %v4640_v35 }
 0x5e9   : > { %8819 = vst [vmem:[#allocation54_spill] sm:$0xff] %v8306_v19  ;;  %v8310_v0 = vpop.f32.mrf.mxu0  ;;  %v4775_v54 = vsel %vm408_vm0, %v4737_v55, 0.0  ;;  %v3937_v35 = vadd.f32 %v8164_v31, %v7985_v27  ;;  %v3938_v47 = vadd.f32 %v8176_v32, %v7991_v1  ;;  %v3939_v27 = vadd.f32 %v8188_v56, %v8007_v45  ;;  %v4711_v56 = vld [vmem:[#allocation4 + $0x68] sm:$0xff] }
 0x5ea   : > { %v4770_v13 = vadd.f32 %v4769_v50, %v4768_v2  ;;  %v4773_v39 = vsel %vm408_vm0, %v4736_v25, 0.0  ;;  %v4739_v50 = vmul.f32 %v4707_v18, %v8306_v19  ;;  %v8324_v2 = vadd.f32 %v8223_v51, %v4641_v28  ;;  %v4710_v19 = vld [vmem:[#allocation4 + $0x60] sm:$0xff] }
 0x5eb   : > { %v8205_v34 = vpop.f32.mrf.mxu1  ;;  %v4643_v25 = vmul.f32 %v8212_v4, %v8146_v16  ;;  %v4777_v55 = vsel %vm408_vm0, %v4738_v11, 0.0  ;;  %v4740_v18 = vmul.f32 %v4708_v43, %v8315_v12  ;;  %v8337_v28 = vadd.f32 %v8223_v51, %v4642_v6 }
 0x5ec   : > { %v4772_v49 = vadd.f32 %v4771_v22, %v4770_v13  ;;  %v4709_v22 = vld [vmem:[#allocation4 + $0x58] sm:$0xff]  ;;  %v4644_v16 = vmul.f32 %v8212_v4, %v8149_v46  ;;  %v4779_v1 = vsel %vm408_vm0, %v4739_v50, 0.0  ;;  %v4645_v11 = vmul.f32 %v8212_v4, %v8153_v29  ;;  %v8354_v43 = vpop.f32.mrf.mxu3 }
 0x5ed   : > { %v4741_v32 = vmul.f32 %v4709_v22, %v8324_v2  ;;  %v4291_v6 = vadd.f32 %v8169_v26, %v3937_v35  ;;  %v3940_v46 = vadd.f32 %v8197_v62, %v8013_v5  ;;  %v4742_v50 = vmul.f32 %v4710_v19, %v8337_v28 }
 0x5ee   : > { %v4774_v44 = vadd.f32 %v4773_v39, %v4772_v49  ;;  %v8346_v39 = vadd.f32 %v8223_v51, %v4643_v25  ;;  %v4292_v49 = vadd.f32 %v8178_v36, %v3938_v47  ;;  %v8359_v25 = vadd.f32 %v8223_v51, %v4644_v16  ;;  %v4712_v47 = vld [vmem:[#allocation4 + $0x70] sm:$0xff] }
 0x5ef   : > { %v4646_v29 = vmul.f32 %v8212_v4, %v8162_v42  ;;  %v4293_v26 = vadd.f32 %v8193_v30, %v3939_v27  ;;  %v4453_v36 = vadd.f32 %v8171_v17, %v4291_v6  ;;  %v3941_v5 = vadd.f32 %v8207_v10, %v8028_v3  ;;  %v3908_v16 = vpop.f32.mrf.mxu2  ;;  %v4831_v6 = vld [vmem:[%s8722_s8] sm:$0xff] }
 0x5f0   : > { %v4776_v31 = vadd.f32 %v4775_v54, %v4774_v44  ;;  %v4781_v54 = vsel %vm408_vm0, %v4740_v18, 0.0  ;;  %v4783_v44 = vsel %vm408_vm0, %v4741_v32, 0.0  ;;  %v4743_v19 = vmul.f32 %v4711_v56, %v8346_v39  ;;  %v4714_v32 = vld [vmem:[#allocation4 + $0x80] sm:$0xff]  ;;  %4857 = vmatpush.msrb.mxu2 %v4831_v6  ;;  %v4719_v6 = vld [vmem:[#allocation4 + $0xa8] sm:$0xff] }
 0x5f1   : > { %v8367_v62 = vpop.f32.mrf.mxu0  ;;  %v8372_v22 = vadd.f32 %v8223_v51, %v4645_v11  ;;  %v4647_v42 = vmul.f32 %v8212_v4, %v8167_v63  ;;  %v4294_v30 = vadd.f32 %v8201_v52, %v3940_v46  ;;  %v4454_v17 = vadd.f32 %v8183_v9, %v4292_v49 }
 0x5f2   : > { %v4778_v45 = vadd.f32 %v4777_v55, %v4776_v31  ;;  %v4455_v3 = vadd.f32 %v8195_v14, %v4293_v26  ;;  %v4713_v55 = vld [vmem:[#allocation4 + $0x78] sm:$0xff]  ;;  %v4785_v27 = vsel %vm408_vm0, %v4742_v50, 0.0  ;;  %v4744_v31 = vmul.f32 %v4712_v47, %v8359_v25 }
 0x5f3   : > { %v8227_v58 = vpop.f32.mrf.mxu1  ;;  %v4648_v63 = vmul.f32 %v8212_v4, %v8174_v20  ;;  %v4295_v52 = vadd.f32 %v8216_v21, %v3941_v5  ;;  %v3942_v9 = vadd.f32 %v8239_v60, %v8034_v48  ;;  %v4615_v11 = vadd.f32 %v8199_v15, %v4453_v36  ;;  %v4715_v60 = vld [vmem:[#allocation4 + $0x88] sm:$0xff] }
 0x5f4   : > { %v4780_v35 = vadd.f32 %v4779_v1, %v4778_v45  ;;  %v8384_v1 = vadd.f32 %v8223_v51, %v4646_v29  ;;  %v4787_v49 = vsel %vm408_vm0, %v4743_v19, 0.0  ;;  %v4745_v46 = vmul.f32 %v4713_v55, %v8372_v22  ;;  %v4262_v5 = vpop.f32.mrf.mxu3 }
 0x5f5   : > { %v8398_v45 = vadd.f32 %v8223_v51, %v4647_v42  ;;  %v4649_v20 = vmul.f32 %v8212_v4, %v8181_v53  ;;  %v3943_v48 = vadd.f32 %v8278_v37, %v8046_v41  ;;  %v4456_v15 = vadd.f32 %v8203_v23, %v4294_v30  ;;  %v4716_v23 = vld [vmem:[#allocation4 + $0x90] sm:$0xff]  ;;  %v4717_v42 = vld [vmem:[#allocation4 + $0x98] sm:$0xff] }
 0x5f6   : > { %v4782_v10 = vadd.f32 %v4781_v54, %v4780_v35  ;;  %v4650_v56 = vmul.f32 %v8212_v4, %v8191_v7  ;;  %v4789_v54 = vsel %vm408_vm0, %v4744_v31, 0.0  ;;  %v4746_v50 = vmul.f32 %v4714_v32, %v8384_v1 }
 0x5f7   : > { %v8410_v29 = vadd.f32 %v8223_v51, %v4648_v63  ;;  %v4616_v53 = vadd.f32 %v8205_v34, %v4454_v17  ;;  %v4296_v26 = vadd.f32 %v8259_v57, %v3942_v9  ;;  %v4457_v41 = vadd.f32 %v8225_v59, %v4295_v52  ;;  %v8822_v52 = vld [vmem:[#allocation51_spill] sm:$0xff] }
 0x5f8   : > { %v4784_v14 = vadd.f32 %v4783_v44, %v4782_v10  ;;  %v4651_v36 = vmul.f32 %v8212_v4, %v4615_v11  ;;  %v4791_v7 = vsel %vm408_vm0, %v4745_v46, 0.0  ;;  %v4747_v35 = vmul.f32 %v4715_v60, %v8398_v45 }
 0x5f9   : > { %v8419_v47 = vadd.f32 %v8223_v51, %v4649_v20  ;;  %v4617_v44 = vadd.f32 %v8227_v58, %v4455_v3  ;;  %v4297_v34 = vadd.f32 %v8301_v40, %v3943_v48  ;;  %v3944_v57 = vadd.f32 %v8319_v38, %v8052_v8  ;;  %v4424_v59 = vpop.f32.mrf.mxu0  ;;  %v8821_v40 = vld [vmem:[#allocation44_spill] sm:$0xff] }
 0x5fa   : > { %v4786_v21 = vadd.f32 %v4785_v27, %v4784_v14  ;;  %v8426_v30 = vadd.f32 %v8223_v51, %v4650_v56  ;;  %v4793_v10 = vsel %vm408_vm0, %v4746_v50, 0.0  ;;  %v4748_v55 = vmul.f32 %v4716_v23, %v8410_v29  ;;  %v4718_v27 = vld [vmem:[#allocation4 + $0xa0] sm:$0xff]  ;;  %v3911_v14 = vpop.f32.mrf.mxu2 }
 0x5fb   : > { %v8256_v24 = vpop.f32.mrf.mxu1  ;;  %v4652_v31 = vmul.f32 %v8212_v4, %v4616_v53  ;;  %v3945_v63 = vadd.f32 %v3908_v16, %v8821_v40  ;;  %v4458_v8 = vadd.f32 %v8822_v52, %v4296_v26  ;;  %v8435_v9 = vadd.f32 %v8223_v51, %v4651_v36  ;;  %v4720_v26 = vld [vmem:[#allocation4 + $0xb0] sm:$0xff]  ;;  %v8823_v36 = vld [vmem:[#allocation45_spill] sm:$0xff] }
 0x5fc   : > { %8814 = vst [vmem:[#allocation49_spill] sm:$0xff] %v8256_v24  ;;  %v4788_v37 = vadd.f32 %v4787_v49, %v4786_v21  ;;  %v4795_v32 = vsel %vm408_vm0, %v4747_v35, 0.0  ;;  %v4749_v11 = vmul.f32 %v4717_v42, %v8419_v47  ;;  %v4653_v49 = vmul.f32 %v8212_v4, %v4617_v44 }
 0x5fd   : > { %v4298_v20 = vadd.f32 %v8354_v43, %v3944_v57  ;;  %v4459_v16 = vadd.f32 %v8310_v0, %v4297_v34  ;;  %v4797_v21 = vsel %vm408_vm0, %v4748_v55, 0.0  ;;  %v8446_v60 = vadd.f32 %v8223_v51, %v4652_v31  ;;  %v4722_v31 = vld [vmem:[#allocation4 + $0xc0] sm:$0xff] }
 0x5fe   : > { %v4790_v19 = vadd.f32 %v4789_v54, %v4788_v37  ;;  %v4299_v50 = vadd.f32 %v4262_v5, %v3945_v63  ;;  %v4751_v43 = vmul.f32 %v4719_v6, %v8435_v9  ;;  %v4799_v0 = vsel %vm408_vm0, %v4749_v11, 0.0 }
 0x5ff   : > { %v4460_v53 = vadd.f32 %v8367_v62, %v4298_v20  ;;  %v4721_v62 = vld [vmem:[#allocation4 + $0xb8] sm:$0xff]  ;;  %v4752_v34 = vmul.f32 %v4720_v26, %v8446_v60 }
 0x600   : > { %v4792_v38 = vadd.f32 %v4791_v7, %v4790_v19  ;;  %v3946_v7 = vadd.f32 %v3911_v14, %v8823_v36  ;;  %v4461_v35 = vadd.f32 %v4424_v59, %v4299_v50  ;;  %v4725_v50 = vld [vmem:[#allocation4 + $0xd8] sm:$0xff] }
 0x601   : > { %v4427_v55 = vpop.f32.mrf.mxu0 }
 0x602   : > { %v4794_v48 = vadd.f32 %v4793_v10, %v4792_v38  ;;  %v4265_v10 = vpop.f32.mrf.mxu3  ;;  %v3913_v38 = vpop.f32.mrf.mxu2 }
 0x603   : > { %v8292_v24 = vpop.f32.mrf.mxu1  ;;  %v8820_v58 = vld [vmem:[#allocation49_spill] sm:$0xff]  ;;  %v4300_v63 = vadd.f32 %v4265_v10, %v3946_v7 }
 0x604   : > { %v4618_v3 = vadd.f32 %v8820_v58, %v4456_v15  ;;  %v4619_v46 = vadd.f32 %v8292_v24, %v4457_v41  ;;  %v4750_v15 = vmul.f32 %v4718_v27, %v8426_v30  ;;  %v4796_v24 = vadd.f32 %v4795_v32, %v4794_v48 }
 0x605   : > { %v8454_v41 = vadd.f32 %v8223_v51, %v4653_v49  ;;  %v4462_v6 = vadd.f32 %v4427_v55, %v4300_v63 }
 0x606   : > { %v4654_v56 = vmul.f32 %v8212_v4, %v4618_v3  ;;  %v4655_v37 = vmul.f32 %v8212_v4, %v4619_v46  ;;  %v4801_v5 = vsel %vm408_vm0, %v4750_v15, 0.0  ;;  %v4724_v46 = vld [vmem:[#allocation4 + $0xd0] sm:$0xff] }
 0x607   : > { %v4753_v59 = vmul.f32 %v4721_v62, %v8454_v41 }
 0x608   : > { %v8462_v57 = vadd.f32 %v8223_v51, %v4654_v56  ;;  %v8468_v58 = vadd.f32 %v8223_v51, %v4655_v37 }
 0x609   : > { %v4807_v20 = vsel %vm408_vm0, %v4753_v59, 0.0  ;;  %v4429_v62 = vpop.f32.mrf.mxu0 }
 0x60a   : > { %v4754_v14 = vmul.f32 %v4722_v31, %v8462_v57 }
 0x60b   : > { %v8332_v13 = vpop.f32.mrf.mxu1 }
 0x60c   : > { %v4620_v54 = vadd.f32 %v8332_v13, %v4458_v8  ;;  %v4798_v13 = vadd.f32 %v4797_v21, %v4796_v24  ;;  %v4723_v8 = vld [vmem:[#allocation4 + $0xc8] sm:$0xff]  ;;  %v8824_v21 = vld [vmem:[#allocation42_spill] sm:$0xff]  ;;  %v4809_v24 = vsel %vm408_vm0, %v4754_v14, 0.0 }
 0x60d   : > { %v3947_v56 = vadd.f32 %v3913_v38, %v8824_v21 }
 0x60e   : > { %v4656_v19 = vmul.f32 %v8212_v4, %v4620_v54  ;;  %v4800_v27 = vadd.f32 %v4799_v0, %v4798_v13 }
 0x610   : > { %v4802_v52 = vadd.f32 %v4801_v5, %v4800_v27  ;;  %v8474_v32 = vadd.f32 %v8223_v51, %v4656_v19  ;;  %v4267_v5 = vpop.f32.mrf.mxu3 }
 0x611   : > { %v4301_v19 = vadd.f32 %v4267_v5, %v3947_v56 }
 0x613   : > { %v8379_v18 = vpop.f32.mrf.mxu1  ;;  %v4463_v31 = vadd.f32 %v4429_v62, %v4301_v19 }
 0x614   : > { %v4621_v23 = vadd.f32 %v8379_v18, %v4459_v16  ;;  %v4803_v18 = vsel %vm408_vm0, %v4751_v43, 0.0  ;;  %v4755_v16 = vmul.f32 %v4723_v8, %v8468_v58  ;;  %v4756_v43 = vmul.f32 %v4724_v46, %v8474_v32 }
 0x615   : > { %v4804_v49 = vadd.f32 %v4803_v18, %v4802_v52  ;;  %v4728_v18 = vld [vmem:[#allocation4 + $0xf0] sm:$0xff] }
 0x616   : > { %v4657_v3 = vmul.f32 %v8212_v4, %v4621_v23  ;;  %v4726_v23 = vld [vmem:[#allocation4 + $0xe0] sm:$0xff]  ;;  %v4811_v36 = vsel %vm408_vm0, %v4755_v16, 0.0 }
 0x618   : > { %v8480_v48 = vadd.f32 %v8223_v51, %v4657_v3 }
 0x61a   : > { %v4757_v7 = vmul.f32 %v4725_v50, %v8480_v48 }
 0x61b   : > { %v4584_v17 = vpop.f32.mrf.mxu1 }
 0x61c   : > { %v4622_v42 = vadd.f32 %v4584_v17, %v4460_v53  ;;  %v4805_v17 = vsel %vm408_vm0, %v4752_v34, 0.0  ;;  %v4727_v34 = vld [vmem:[#allocation4 + $0xe8] sm:$0xff]  ;;  %v4815_v59 = vsel %vm408_vm0, %v4757_v7, 0.0 }
 0x61d   : > { %v4806_v54 = vadd.f32 %v4805_v17, %v4804_v49  ;;  %v4729_v49 = vld [vmem:[#allocation4 + $0xf8] sm:$0xff] }
 0x61e   : > { %v4658_v11 = vmul.f32 %v8212_v4, %v4622_v42  ;;  %v4813_v42 = vsel %vm408_vm0, %v4756_v43, 0.0 }
 0x61f   : > { %v4808_v37 = vadd.f32 %v4807_v20, %v4806_v54 }
 0x620   : > { %v8487_v26 = vadd.f32 %v8223_v51, %v4658_v11 }
 0x622   : > { %v4758_v10 = vmul.f32 %v4726_v23, %v8487_v26 }
 0x623   : > { %v4586_v44 = vpop.f32.mrf.mxu1 }
 0x624   : > { %v4623_v40 = vadd.f32 %v4586_v44, %v4461_v35  ;;  %v4810_v44 = vadd.f32 %v4809_v24, %v4808_v37  ;;  %v4817_v52 = vsel %vm408_vm0, %v4758_v10, 0.0 }
 0x626   : > { %v4659_v15 = vmul.f32 %v8212_v4, %v4623_v40  ;;  %v4812_v27 = vadd.f32 %v4811_v36, %v4810_v44 }
 0x628   : > { %v8492_v35 = vadd.f32 %v8223_v51, %v4659_v15  ;;  %v4814_v40 = vadd.f32 %v4813_v42, %v4812_v27 }
 0x62a   : > { %v4759_v3 = vmul.f32 %v4727_v34, %v8492_v35  ;;  %v4816_v17 = vadd.f32 %v4815_v59, %v4814_v40  ;;  %v8825_v40 = vld [vmem:[#allocation46_spill] sm:$0xff] }
 0x62b   : > { %v4589_v53 = vpop.f32.mrf.mxu1 }
 0x62c   : > { %v4624_v0 = vadd.f32 %v4589_v53, %v4462_v6  ;;  %v4819_v14 = vsel %vm408_vm0, %v4759_v3, 0.0  ;;  %v4818_v6 = vadd.f32 %v4817_v52, %v4816_v17  ;;  %v8826_v52 = vld [vmem:[#allocation43_spill] sm:$0xff] }
 0x62e   : > { %v4660_v13 = vmul.f32 %v8212_v4, %v4624_v0  ;;  %v4820_v16 = vadd.f32 %v4819_v14, %v4818_v6  ;;  %v8828_v14 = vld [vmem:[#allocation48_spill] sm:$0xff]  ;;  %v8829_v6 = vld [vmem:[#allocation50_spill] sm:$0xff] }
 0x630   : > { %v8498_v55 = vadd.f32 %v8223_v51, %v4660_v13 }
 0x632   : > { %v4760_v8 = vmul.f32 %v4728_v18, %v8498_v55 }
 0x633   : > { %v4591_v63 = vpop.f32.mrf.mxu1 }
 0x634   : > { %v4625_v38 = vadd.f32 %v4591_v63, %v4463_v31  ;;  %v4821_v46 = vsel %vm408_vm0, %v4760_v8, 0.0 }
 0x635   : > { %v4822_v21 = vadd.f32 %v4821_v46, %v4820_v16  ;;  %v8830_v16 = vld [vmem:[#allocation52_spill] sm:$0xff] }
 0x636   : > { %v4661_v11 = vmul.f32 %v8212_v4, %v4625_v38  ;;  %v8827_v38 = vld [vmem:[#allocation47_spill] sm:$0xff] }
 0x638   : > { %v8508_v20 = vadd.f32 %v8223_v51, %v4661_v11 }
 0x63a   : > { %v4761_v15 = vmul.f32 %v4729_v49, %v8508_v20 }
 0x63c   : > { %v4823_v56 = vsel %vm408_vm0, %v4761_v15, 0.0 }
 0x63d   : > { %v4824_v54 = vadd.f32 %v4823_v56, %v4822_v21  ;;  %v8831_v21 = vld [vmem:[#allocation10_spill] sm:$0xff] }
 0x63f   : > { %v4825_v50 = vrot.slane %v4824_v54, 4 }
 0x641   : > { %v4826_v53 = vadd.f32 %v4825_v50, %v4824_v54  ;;  %v8832_v54 = vld [vmem:[#allocation11_spill] sm:$0xff] }
 0x643   : > { %v4827_v24 = vrot.slane %v4826_v53, 2 }
 0x645   : > { %v4828_v43 = vadd.f32 %v4827_v24, %v4826_v53  ;;  %v8833_v53 = vld [vmem:[#allocation16_spill] sm:$0xff] }
 0x647   : > { %v4829_v0 = vrot.slane %v4828_v43, 1 }
 0x649   : > { %v4830_v4 = vadd.f32 %v4829_v0, %v4828_v43  ;;  %v8834_v43 = vld [vmem:[#allocation53_spill] sm:$0xff] }
 0x64b   : > { %5839 = vmatmul.msk.f32.vlgmr.msrb.gmra.mxu2 %vm408_vm0, %v4830_v4  ;;  %v8835_v4 = vld [vmem:[#allocation17_spill] sm:$0xff] }
 0x6ce   : > { %v4859_v37 = vpop.f32.mrf.mxu2 }
 0x6cf   : > { %v4862_v23 = vmax.f32 %v4859_v37, 0.0 }
 0x6d1   : > { %5840 = vmatmul.msk.f32.vlgmr.msrb.gmra.mxu3 %vm4864_vm2, %v4862_v23 }
 0x754   : > { %v4885_v51 = vpop.f32.mrf.mxu3 }
 0x755   : > { %v4888_v36 = vsub.f32 0.0, %v4885_v51 }
 0x757   : > { %v4889_v7 = vmul.f32 1.442695, %v4888_v36  ;;  %v8837_v36 = vld [vmem:[#allocation54_spill] sm:$0xff] }
 0x759   : > { %5987 = vpow2.f32 %v4889_v7 }
 0x75f   : > { %v5988_v13 = vpop.eup %5987 }
 0x760   : > { %v4891_v5 = vadd.f32 1.0, %v5988_v13 }
 0x762   : > { %5989 = vrcp.f32 %v4891_v5  ;;  %v4903_v10 = vand.u32 2147483648, %v4891_v5  ;;  %vm4897_vm4 = vweird.f32 %v4891_v5  ;;  %v4901_v27 = vand.u32 2147483647, %v4891_v5 }
 0x764   : > { %v4904_v31 = vor.u32 1.1754944e-38, %v4903_v10  ;;  %vm4902_vm6 = vcmp.eq.f32.partialorder %v4901_v27, 8.507059e+37 }
 0x768   : > { %v5990_v62 = vpop.eup %5989 }
 0x769   : > { %v4893_v44 = vmul.f32 %v5990_v62, %v4891_v5  ;;  %vm4898_vm3 = vweird.f32 %v5990_v62  ;;  %v8838_v5 = vld [vmem:[#allocation21_spill] sm:$0xff] }
 0x76a   : > { %vm4899_vm5 = vmor %vm4897_vm4, %vm4898_vm3 }
 0x76b   : > { %v4894_v34 = vsub.f32 1.0, %v4893_v44  ;;  %v8839_v44 = vld [vmem:[#allocation24_spill] sm:$0xff] }
 0x76d   : > { %v4895_v19 = vmul.f32 %v5990_v62, %v4894_v34 }
 0x76f   : > { %v4896_v42 = vadd.f32 %v5990_v62, %v4895_v19 }
 0x771   : > { %v4900_v18 = vsel %vm4899_vm5, %v5990_v62, %v4896_v42 }
 0x772   : > { %v4905_v59 = vsel %vm4902_vm6, %v4904_v31, %v4900_v18  ;;  %v8840_v18 = vld [vmem:[#allocation25_spill] sm:$0xff] }
 0x773   : > { %v8513_v3 = vperm.slane %v4905_v59, 0 }
 0x775   : > { %v4908_v63 = vmul.f32 %v8513_v3, %v8825_v40  ;;  %v4909_v8 = vmul.f32 %v8513_v3, %v8826_v52  ;;  %v4910_v17 = vmul.f32 %v8513_v3, %v8827_v38  ;;  %v4911_v11 = vmul.f32 %v8513_v3, %v8828_v14  ;;  %v8841_v40 = vld [vmem:[#allocation28_spill] sm:$0xff] }
 0x776   : > { %v4912_v49 = vmul.f32 %v8513_v3, %v8829_v6  ;;  %v4913_v46 = vmul.f32 %v8513_v3, %v8271_v33  ;;  %v4914_v15 = vmul.f32 %v8513_v3, %v8830_v16  ;;  %v4915_v0 = vmul.f32 %v8513_v3, %v8834_v43  ;;  %v8836_v33 = vld [vmem:[#allocation20_spill] sm:$0xff] }
 0x777   : > { %v4940_v56 = vadd.f32 %v4908_v63, %v8831_v21  ;;  %v4941_v50 = vadd.f32 %v4909_v8, %v8832_v54  ;;  %v4942_v24 = vadd.f32 %v4910_v17, %v8833_v53  ;;  %v4943_v37 = vadd.f32 %v4911_v11, %v8835_v4  ;;  %v8843_v17 = vld [vmem:[#allocation32_spill] sm:$0xff]  ;;  %v8846_v54 = vld [vmem:[#allocation37_spill] sm:$0xff] }
 0x778   : > { %v4916_v23 = vmul.f32 %v8513_v3, %v8297_v61  ;;  %v4944_v51 = vadd.f32 %v4912_v49, %v8836_v33  ;;  %v4917_v7 = vmul.f32 %v8513_v3, %v8837_v36  ;;  %v4918_v13 = vmul.f32 %v8513_v3, %v8315_v12  ;;  %v8844_v49 = vld [vmem:[#allocation33_spill] sm:$0xff]  ;;  %v8849_v33 = vld [vmem:[#allocation14_spill] sm:$0xff] }
 0x779   : > { %v4945_v62 = vadd.f32 %v4913_v46, %v8838_v5  ;;  %v4946_v34 = vadd.f32 %v4914_v15, %v8839_v44  ;;  %v4972_v19 = vmax.f32 %v4940_v56, 0.0  ;;  %v4973_v42 = vmax.f32 %v4941_v50, 0.0  ;;  %v8845_v15 = vld [vmem:[#allocation36_spill] sm:$0xff]  ;;  %v8848_v4 = vld [vmem:[#allocation41_spill] sm:$0xff] }
 0x77a   : > { %v4974_v10 = vmax.f32 %v4942_v24, 0.0  ;;  %v4919_v27 = vmul.f32 %v8513_v3, %v8324_v2  ;;  %v4947_v61 = vadd.f32 %v4915_v0, %v8840_v18  ;;  %v4975_v31 = vmax.f32 %v4943_v37, 0.0  ;;  %v8842_v2 = vld [vmem:[#allocation29_spill] sm:$0xff]  ;;  %v8847_v24 = vld [vmem:[#allocation40_spill] sm:$0xff] }
 0x77b   : > { %v4920_v59 = vmul.f32 %v8513_v3, %v8337_v28  ;;  %v4948_v63 = vadd.f32 %v4916_v23, %v8841_v40  ;;  %v4976_v52 = vmax.f32 %v4944_v51, 0.0  ;;  %5004 = vst.msk [vmem:[%s8553_s29] sm:$0xff] %vm408_vm0, %v4972_v19  ;;  %v4921_v12 = vmul.f32 %v8513_v3, %v8346_v39  ;;  %v8852_v19 = vld [vmem:[#allocation13_spill] sm:$0xff] }
 0x77c   : > { %v4949_v8 = vadd.f32 %v4917_v7, %v8842_v2  ;;  %v4977_v38 = vmax.f32 %v4945_v62, 0.0  ;;  %5005 = vst.msk [vmem:[%s8553_s29 + $0x8] sm:$0xff] %vm408_vm0, %v4973_v42  ;;  %v4922_v28 = vmul.f32 %v8513_v3, %v8359_v25  ;;  %v4950_v14 = vadd.f32 %v4918_v13, %v8843_v17  ;;  %v8850_v7 = vld [vmem:[#allocation15_spill] sm:$0xff]  ;;  %v8851_v62 = vld [vmem:[#allocation12_spill] sm:$0xff] }
 0x77d   : > { %v4978_v11 = vmax.f32 %v4946_v34, 0.0  ;;  %5006 = vst.msk [vmem:[%s8553_s29 + $0x10] sm:$0xff] %vm408_vm0, %v4974_v10  ;;  %v4923_v6 = vmul.f32 %v8513_v3, %v8372_v22  ;;  %v4951_v39 = vadd.f32 %v4919_v27, %v8844_v49  ;;  %v4979_v46 = vmax.f32 %v4947_v61, 0.0  ;;  %v8853_v27 = vld [vmem:[#allocation18_spill] sm:$0xff]  ;;  %v8856_v2 = vld [vmem:[#allocation23_spill] sm:$0xff] }
 0x77e   : > { %5007 = vst.msk [vmem:[%s8553_s29 + $0x18] sm:$0xff] %vm408_vm0, %v4975_v31  ;;  %v4924_v16 = vmul.f32 %v8513_v3, %v8384_v1  ;;  %v4952_v25 = vadd.f32 %v4920_v59, %v8845_v15  ;;  %v4980_v21 = vmax.f32 %v4948_v63, 0.0  ;;  %v4925_v56 = vmul.f32 %v8513_v3, %v8398_v45  ;;  %v8854_v31 = vld [vmem:[#allocation19_spill] sm:$0xff]  ;;  %v8855_v63 = vld [vmem:[#allocation22_spill] sm:$0xff] }
 0x77f   : > { %5008 = vst.msk [vmem:[%s8553_s29 + $0x20] sm:$0xff] %vm408_vm0, %v4976_v52  ;;  %v4953_v22 = vadd.f32 %v4921_v12, %v8846_v54  ;;  %v4981_v50 = vmax.f32 %v4949_v8, 0.0  ;;  %v4926_v53 = vmul.f32 %v8513_v3, %v8410_v29  ;;  %v4954_v1 = vadd.f32 %v4922_v28, %v8847_v24  ;;  %v8857_v28 = vld [vmem:[#allocation26_spill] sm:$0xff]  ;;  %v8860_v15 = vld [vmem:[#allocation31_spill] sm:$0xff] }
 0x780   : > { %5009 = vst.msk [vmem:[%s8553_s29 + $0x28] sm:$0xff] %vm408_vm0, %v4977_v38  ;;  %v4982_v43 = vmax.f32 %v4950_v14, 0.0  ;;  %v4927_v0 = vmul.f32 %v8513_v3, %v8419_v47  ;;  %v4955_v45 = vadd.f32 %v4923_v6, %v8848_v4  ;;  %v4983_v37 = vmax.f32 %v4951_v39, 0.0  ;;  %v8862_v54 = vld [vmem:[#allocation35_spill] sm:$0xff] }
 0x781   : > { %5010 = vst.msk [vmem:[%s8553_s29 + $0x30] sm:$0xff] %vm408_vm0, %v4978_v11  ;;  %v4928_v23 = vmul.f32 %v8513_v3, %v8426_v30  ;;  %v4956_v29 = vadd.f32 %v4924_v16, %v8849_v33  ;;  %v4984_v51 = vmax.f32 %v4952_v25, 0.0  ;;  %v4929_v36 = vmul.f32 %v8513_v3, %v8435_v9  ;;  %v8864_v24 = vld [vmem:[#allocation39_spill] sm:$0xff] }
 0x782   : > { %5011 = vst.msk [vmem:[%s8553_s29 + $0x38] sm:$0xff] %vm408_vm0, %v4979_v46  ;;  %v4957_v47 = vadd.f32 %v4925_v56, %v8850_v7  ;;  %v4985_v13 = vmax.f32 %v4953_v22, 0.0  ;;  %v4930_v5 = vmul.f32 %v8513_v3, %v8446_v60  ;;  %v4958_v30 = vadd.f32 %v4926_v53, %v8851_v62 }
 0x783   : > { %5012 = vst.msk [vmem:[%s8553_s29 + $0x40] sm:$0xff] %vm408_vm0, %v4980_v21  ;;  %v4986_v44 = vmax.f32 %v4954_v1, 0.0  ;;  %v4931_v34 = vmul.f32 %v8513_v3, %v8454_v41  ;;  %v4959_v9 = vadd.f32 %v4927_v0, %v8852_v19  ;;  %v4987_v42 = vmax.f32 %v4955_v45, 0.0  ;;  %v8861_v21 = vld [vmem:[#allocation34_spill] sm:$0xff] }
 0x784   : > { %5013 = vst.msk [vmem:[%s8553_s29 + $0x48] sm:$0xff] %vm408_vm0, %v4981_v50  ;;  %v4932_v10 = vmul.f32 %v8513_v3, %v8462_v57  ;;  %v4960_v60 = vadd.f32 %v4928_v23, %v8853_v27  ;;  %v4988_v18 = vmax.f32 %v4956_v29, 0.0  ;;  %v4933_v61 = vmul.f32 %v8513_v3, %v8468_v58 }
 0x785   : > { %5014 = vst.msk [vmem:[%s8553_s29 + $0x50] sm:$0xff] %vm408_vm0, %v4982_v43  ;;  %v4961_v41 = vadd.f32 %v4929_v36, %v8854_v31  ;;  %v4989_v59 = vmax.f32 %v4957_v47, 0.0  ;;  %v4934_v40 = vmul.f32 %v8513_v3, %v8474_v32  ;;  %v4962_v57 = vadd.f32 %v4930_v5, %v8855_v63 }
 0x786   : > { %5015 = vst.msk [vmem:[%s8553_s29 + $0x58] sm:$0xff] %vm408_vm0, %v4983_v37  ;;  %v4990_v52 = vmax.f32 %v4958_v30, 0.0  ;;  %v4935_v12 = vmul.f32 %v8513_v3, %v8480_v48  ;;  %v4963_v58 = vadd.f32 %v4931_v34, %v8856_v2  ;;  %v4991_v8 = vmax.f32 %v4959_v9, 0.0  ;;  %v8858_v48 = vld [vmem:[#allocation27_spill] sm:$0xff] }
 0x787   : > { %5016 = vst.msk [vmem:[%s8553_s29 + $0x60] sm:$0xff] %vm408_vm0, %v4984_v51  ;;  %v4936_v38 = vmul.f32 %v8513_v3, %v8487_v26  ;;  %v4964_v32 = vadd.f32 %v4932_v10, %v8857_v28  ;;  %v4992_v17 = vmax.f32 %v4960_v60, 0.0  ;;  %v4937_v14 = vmul.f32 %v8513_v3, %v8492_v35  ;;  %v8859_v26 = vld [vmem:[#allocation30_spill] sm:$0xff] }
 0x788   : > { %5017 = vst.msk [vmem:[%s8553_s29 + $0x68] sm:$0xff] %vm408_vm0, %v4985_v13  ;;  %v4965_v11 = vadd.f32 %v4933_v61, %v8858_v48  ;;  %v4993_v6 = vmax.f32 %v4961_v41, 0.0  ;;  %v4938_v49 = vmul.f32 %v8513_v3, %v8498_v55  ;;  %v4966_v39 = vadd.f32 %v4934_v40, %v8859_v26 }
 0x789   : > { %5018 = vst.msk [vmem:[%s8553_s29 + $0x70] sm:$0xff] %vm408_vm0, %v4986_v44  ;;  %v4994_v46 = vmax.f32 %v4962_v57, 0.0  ;;  %v4939_v16 = vmul.f32 %v8513_v3, %v8508_v20  ;;  %v4967_v35 = vadd.f32 %v4935_v12, %v8860_v15  ;;  %v4995_v25 = vmax.f32 %v4963_v58, 0.0  ;;  %v8863_v20 = vld [vmem:[#allocation38_spill] sm:$0xff] }
 0x78a   : > { %5019 = vst.msk [vmem:[%s8553_s29 + $0x78] sm:$0xff] %vm408_vm0, %v4987_v42  ;;  %v4968_v56 = vadd.f32 %v4936_v38, %v8861_v21  ;;  %v4996_v55 = vmax.f32 %v4964_v32, 0.0  ;;  %v4969_v22 = vadd.f32 %v4937_v14, %v8862_v54  ;;  %v4997_v50 = vmax.f32 %v4965_v11, 0.0 }
 0x78b   : > { %5020 = vst.msk [vmem:[%s8553_s29 + $0x80] sm:$0xff] %vm408_vm0, %v4988_v18  ;;  %v4970_v3 = vadd.f32 %v4938_v49, %v8863_v20  ;;  %v4998_v53 = vmax.f32 %v4966_v39, 0.0  ;;  %v4971_v1 = vadd.f32 %v4939_v16, %v8864_v24  ;;  %v4999_v43 = vmax.f32 %v4967_v35, 0.0 }
 0x78c   : > { %5021 = vst.msk [vmem:[%s8553_s29 + $0x88] sm:$0xff] %vm408_vm0, %v4989_v59  ;;  %v5000_v0 = vmax.f32 %v4968_v56, 0.0  ;;  %v5001_v4 = vmax.f32 %v4969_v22, 0.0 }
 0x78d   : > { %5022 = vst.msk [vmem:[%s8553_s29 + $0x90] sm:$0xff] %vm408_vm0, %v4990_v52  ;;  %v5002_v45 = vmax.f32 %v4970_v3, 0.0  ;;  %v5003_v37 = vmax.f32 %v4971_v1, 0.0 }
 0x78e   : > { %5023 = vst.msk [vmem:[%s8553_s29 + $0x98] sm:$0xff] %vm408_vm0, %v4991_v8 }
 0x78f   : > { %5024 = vst.msk [vmem:[%s8553_s29 + $0xa0] sm:$0xff] %vm408_vm0, %v4992_v17 }
 0x790   : > { %5025 = vst.msk [vmem:[%s8553_s29 + $0xa8] sm:$0xff] %vm408_vm0, %v4993_v6 }
 0x791   : > { %5026 = vst.msk [vmem:[%s8553_s29 + $0xb0] sm:$0xff] %vm408_vm0, %v4994_v46 }
 0x792   : > { %5027 = vst.msk [vmem:[%s8553_s29 + $0xb8] sm:$0xff] %vm408_vm0, %v4995_v25 }
 0x793   : > { %5028 = vst.msk [vmem:[%s8553_s29 + $0xc0] sm:$0xff] %vm408_vm0, %v4996_v55 }
 0x794   : > { %5029 = vst.msk [vmem:[%s8553_s29 + $0xc8] sm:$0xff] %vm408_vm0, %v4997_v50 }
 0x795   : > { %5030 = vst.msk [vmem:[%s8553_s29 + $0xd0] sm:$0xff] %vm408_vm0, %v4998_v53 }
 0x796   : > { %5031 = vst.msk [vmem:[%s8553_s29 + $0xd8] sm:$0xff] %vm408_vm0, %v4999_v43 }
 0x797   : > { %5032 = vst.msk [vmem:[%s8553_s29 + $0xe0] sm:$0xff] %vm408_vm0, %v5000_v0 }
 0x798   : > { %5033 = vst.msk [vmem:[%s8553_s29 + $0xe8] sm:$0xff] %vm408_vm0, %v5001_v4 }
 0x799   : > { %5034 = vst.msk [vmem:[%s8553_s29 + $0xf0] sm:$0xff] %vm408_vm0, %v5002_v45 }
 0x79a   : > { %5035 = vst.msk [vmem:[%s8553_s29 + $0xf8] sm:$0xff] %vm408_vm0, %v5003_v37 }
 0x79b   : > { %6050 = shalt.err (!%p6047_p8)
}
 0x79c   : > { %s6095_s27 = smov 128   ;;  %s6096_s29 = smov 8  }
 0x79d   : > { %5932 = dma.vmem_to_hbm [thread:$0]  (%p6190_p5), %s5050_s18, 4096, %s5052_s20, %s5037_s21, %s6095_s27, %s6095_s27, %s6096_s29  }
 0x79e PF: > { %p5944_p9 = scmp.ge.s32.totalorder %s6089_s16, 2  ;;  %s5066_s28 = sand.u32 1, %s6077_s13  }
 0x79f   : > { %s5067_s30 = scalar_lea.sflag [#allocation6], %s5066_s28 }
 0x7a0   : > { %p5939_p10 = pnand %p5944_p9, %p6194_p6 }
 0x7a2   : > { %p5940_p11 = pneg %p5939_p10 }
 0x7a4   : > { %6072 = dma.done.wait (%p5940_p11), %s5067_s30, 4096  }
 0x7a5   : > { %6074 = vsyncadd (%p5940_p11), %s5067_s30, 4294963200  ;;  %p21_p12 = scmp.ge.s32.totalorder %s6177_s19, 6   ;;  %s8865_s13 = smov %s6081_s14 }
 0x7a6   : > { %s8866_s14 = smov %s6085_s15  ;;  %s8867_s15 = smov %s6188_s22 }
 0x7a7   : > { %s8868_s16 = smov %s6177_s19  ;;  %23 = sbr.rel (!%p21_p12) target bundleno = 4 (0x4), region = 118 }
 0x7ac   :  { %5073 = vsyncpa [#allocation5], 1 }
 0x7ad   :  { %5075 = vsyncpa [#allocation5 + $0x1], 1 }
 0x7ae   :  { %5076 = vsyncpa [#allocation6], 1 }
 0x7af   :  { %5078 = vsyncpa [#allocation6 + $0x1], 1 }

</bundles_post_ra>
